<compile_context>
chip_gen: v7x
topology: tpu7x:2x2x1
jax: 0.10.0
libtpu: 0.0.40
codegen_flags: <defaults>
</compile_context>

<pallas_src>
import functools

import jax
import jax.numpy as jnp
from jax.experimental import pallas as pl
from jax.experimental.pallas import tpu as pltpu

LANE = 128
EPS = 1e-5


def _round_up(n, m):
    return (n + m - 1) // m * m


# ----------------------------------------------------------------------------
# Shared conv body: 3x3 "same" conv on one (H, W, C) image as a single im2col
# matmul, + bias, + partial BatchNorm statistics.
# ----------------------------------------------------------------------------
def _conv3x3_im2col(x_hwc_f32, w_ref, b_ref, y_ref, stat_ref, pad_ref, im_ref):
    """
    x_hwc_f32 : (H, W, C) f32 value (already pre-transformed)
    w_ref     : (9*C, Cout_p) bf16   packed conv weights (tap-major)
    b_ref     : (1, Cout_p) f32      conv bias
    y_ref     : (H*W, Cout_p) f32    out: pre-BN conv output
    stat_ref  : (2, Cout_p) f32      out: per-image [sum; sum-of-squares]
    pad_ref   : (H+2, W+2, C) f32    scratch (in-kernel zero padding)
    im_ref    : (H*W, 9*C) bf16      scratch (im2col matrix, bf16 MXU operand)
    """
    H, W, C = x_hwc_f32.shape

    # Zero-pad the image inside VMEM (no wrapper-side jnp.pad / HBM pass).
    # Re-zero every step: with a "parallel" grid each core owns its scratch.
    pad_ref[...] = jnp.zeros_like(pad_ref)
    pad_ref[1:H + 1, 1:W + 1, :] = x_hwc_f32

    # im2col: 9 shifted taps written side-by-side along lanes.
    for dy in range(3):
        for dx in range(3):
            k = dy * 3 + dx
            tap = pad_ref[dy:dy + H, dx:dx + W, :]          # (H, W, C) f32
            im_ref[:, k * C:(k + 1) * C] = (
                tap.reshape(H * W, C).astype(jnp.bfloat16))

    # One MXU matmul (bf16 x bf16 -> f32 accumulate), then bias.
    y = jnp.dot(im_ref[...], w_ref[...], preferred_element_type=jnp.float32)
    y = y + b_ref[...]
    y_ref[...] = y

    # Partial BatchNorm statistics (finalized across the batch in the wrapper).
    stat_ref[0:1, :] = jnp.sum(y, axis=0, keepdims=True)
    stat_ref[1:2, :] = jnp.sum(y * y, axis=0, keepdims=True)


# ----------------------------------------------------------------------------
# Kernel 1: conv1 + bias + partial BN1 stats.
# ----------------------------------------------------------------------------
def conv1_kernel(x_ref, w_ref, b_ref, y_ref, stat_ref, pad_ref, im_ref):
    _conv3x3_im2col(x_ref[...], w_ref, b_ref, y_ref, stat_ref, pad_ref, im_ref)


def _conv1_call(x_nhwc, w1, b1):
    B, H, W, Cin = x_nhwc.shape
    Cp = w1.shape[-1]
    return pl.pallas_call(
        conv1_kernel,
        grid=(B,),
        in_specs=[
            pl.BlockSpec((pl.Squeezed(), H, W, Cin), lambda b: (b, 0, 0, 0)),
            pl.BlockSpec((9 * Cin, Cp), lambda b: (0, 0)),
            pl.BlockSpec((1, Cp), lambda b: (0, 0)),
        ],
        out_specs=(
            pl.BlockSpec((pl.Squeezed(), H * W, Cp), lambda b: (b, 0, 0)),
            pl.BlockSpec((pl.Squeezed(), 2, Cp), lambda b: (b, 0, 0)),
        ),
        out_shape=(
            jax.ShapeDtypeStruct((B, H * W, Cp), jnp.float32),
            jax.ShapeDtypeStruct((B, 2, Cp), jnp.float32),
        ),
        scratch_shapes=[
            pltpu.VMEM((H + 2, W + 2, Cin), jnp.float32),
            pltpu.VMEM((H * W, 9 * Cin), jnp.bfloat16),
        ],
        compiler_params=pltpu.CompilerParams(
            dimension_semantics=("parallel",),
            vmem_limit_bytes=32 * 1024 * 1024),
    )(x_nhwc, w1, b1)


# ----------------------------------------------------------------------------
# Kernel 2: (BN1-normalize + ReLU + time-embedding Linear/ReLU add) fused into
# the load, then conv2 + bias + partial BN2 stats.
# ----------------------------------------------------------------------------
def conv2_kernel(H, W, y1_ref, scale_ref, shift_ref, temb_ref, lw_ref, lb_ref,
                 w_ref, b_ref, y_ref, stat_ref, pad_ref, im_ref):
    C = y1_ref.shape[-1]
    # Fused BN1 normalize + ReLU (scale/shift precomputed from global stats).
    x = jnp.maximum(y1_ref[...] * scale_ref[...] + shift_ref[...], 0.0)
    # Fused time-embedding MLP: t = relu(temb @ lw + lb), broadcast over H*W.
    t = jnp.dot(temb_ref[...], lw_ref[...], preferred_element_type=jnp.float32)
    t = jnp.maximum(t + lb_ref[...], 0.0)                   # (1, C)
    x = x + t                                               # (H*W, C)
    _conv3x3_im2col(x.reshape(H, W, C), w_ref, b_ref,
                    y_ref, stat_ref, pad_ref, im_ref)


def _conv2_call(y1, scale1, shift1, temb3, lw, lb, w2, b2, H, W):
    B, HW, C = y1.shape
    E = temb3.shape[-1]
    kern = functools.partial(conv2_kernel, H, W)
    return pl.pallas_call(
        kern,
        grid=(B,),
        in_specs=[
            pl.BlockSpec((pl.Squeezed(), HW, C), lambda b: (b, 0, 0)),
            pl.BlockSpec((1, C), lambda b: (0, 0)),
            pl.BlockSpec((1, C), lambda b: (0, 0)),
            pl.BlockSpec((pl.Squeezed(), 1, E), lambda b: (b, 0, 0)),
            pl.BlockSpec((E, C), lambda b: (0, 0)),
            pl.BlockSpec((1, C), lambda b: (0, 0)),
            pl.BlockSpec((9 * C, C), lambda b: (0, 0)),
            pl.BlockSpec((1, C), lambda b: (0, 0)),
        ],
        out_specs=(
            pl.BlockSpec((pl.Squeezed(), HW, C), lambda b: (b, 0, 0)),
            pl.BlockSpec((pl.Squeezed(), 2, C), lambda b: (b, 0, 0)),
        ),
        out_shape=(
            jax.ShapeDtypeStruct((B, HW, C), jnp.float32),
            jax.ShapeDtypeStruct((B, 2, C), jnp.float32),
        ),
        scratch_shapes=[
            pltpu.VMEM((H + 2, W + 2, C), jnp.float32),
            pltpu.VMEM((HW, 9 * C), jnp.bfloat16),
        ],
        compiler_params=pltpu.CompilerParams(
            dimension_semantics=("parallel",),
            vmem_limit_bytes=32 * 1024 * 1024),
    )(y1, scale1, shift1, temb3, lw, lb, w2, b2)


# ----------------------------------------------------------------------------
# Kernel 3: final BN2-normalize + ReLU (lane-dense, pipelined over batch).
# ----------------------------------------------------------------------------
def bn_relu_kernel(y_ref, scale_ref, shift_ref, o_ref):
    o_ref[...] = jnp.maximum(y_ref[...] * scale_ref[...] + shift_ref[...], 0.0)


def _bn_relu_call(y2, scale2, shift2):
    B, HW, C = y2.shape
    return pl.pallas_call(
        bn_relu_kernel,
        grid=(B,),
        in_specs=[
            pl.BlockSpec((pl.Squeezed(), HW, C), lambda b: (b, 0, 0)),
            pl.BlockSpec((1, C), lambda b: (0, 0)),
            pl.BlockSpec((1, C), lambda b: (0, 0)),
        ],
        out_specs=pl.BlockSpec((pl.Squeezed(), HW, C), lambda b: (b, 0, 0)),
        out_shape=jax.ShapeDtypeStruct((B, HW, C), jnp.float32),
        compiler_params=pltpu.CompilerParams(
            dimension_semantics=("parallel",)),
    )(y2, scale2, shift2)


# ----------------------------------------------------------------------------
# BN stats finalization: tiny (B, 2, Cp) reduction -> scale/shift; done with
# plain jnp in the wrapper (per review: no dedicated pallas_call for a few
# hundred elements). f32 throughout.
# ----------------------------------------------------------------------------
def _bn_scale_shift(stats, gamma_p, beta_p, count):
    s = jnp.sum(stats[:, 0, :], axis=0, keepdims=True)      # (1, Cp)
    ss = jnp.sum(stats[:, 1, :], axis=0, keepdims=True)     # (1, Cp)
    mean = s / count
    var = jnp.maximum(ss / count - mean * mean, 0.0)        # biased batch var
    scale = gamma_p * jax.lax.rsqrt(var + EPS)
    shift = beta_p - mean * scale
    return scale, shift


# ----------------------------------------------------------------------------
# Parameter packing: pad output channels to a multiple of 128 lanes (zero
# padding keeps padded channels exactly 0 through the whole pipeline), pack
# conv weights tap-major for im2col, cast MXU operands to bf16.
# ----------------------------------------------------------------------------
def pack_params(params):
    w1 = params["conv1_w"]        # (3, 3, Cin, Cout)  HWIO
    w2 = params["conv2_w"]        # (3, 3, Cout, Cout) HWIO
    Cin, Cout = w1.shape[2], w1.shape[3]
    Cp = _round_up(Cout, LANE)

    def pack_w(w, ci_p, co_p):
        kh, kw, ci, co = w.shape
        wp = jnp.zeros((kh, kw, ci_p, co_p), jnp.float32)
        wp = wp.at[:, :, :ci, :co].set(w)
        return wp.reshape(kh * kw * ci_p, co_p).astype(jnp.bfloat16)

    def pad_vec(v, cp):
        out = jnp.zeros((1, cp), jnp.float32)
        return out.at[:, :v.shape[-1]].set(v.reshape(1, -1))

    E = params["lin_w"].shape[0]
    lw = jnp.zeros((E, Cp), jnp.float32).at[:, :Cout].set(params["lin_w"])

    return dict(
        Cin=Cin, Cout=Cout, Cp=Cp,
        w1=pack_w(w1, Cin, Cp), b1=pad_vec(params["conv1_b"], Cp),
        w2=pack_w(w2, Cp, Cp), b2=pad_vec(params["conv2_b"], Cp),
        g1=pad_vec(params["bn1_g"], Cp), bta1=pad_vec(params["bn1_b"], Cp),
        g2=pad_vec(params["bn2_g"], Cp), bta2=pad_vec(params["bn2_b"], Cp),
        lw=lw, lb=pad_vec(params["lin_b"], Cp),
    )


# ----------------------------------------------------------------------------
# Full Conv_Block forward (NCHW in / NCHW out, like the PyTorch module).
# ----------------------------------------------------------------------------
@jax.jit
def conv_block_forward(x_nchw, t_emb, params):
    pk = pack_params(params)
    B, Cin, H, W = x_nchw.shape
    Cout, Cp = pk["Cout"], pk["Cp"]
    count = B * H * W

    x = jnp.transpose(x_nchw, (0, 2, 3, 1))                 # NCHW -> NHWC

    # stage 1: conv1 + bias + partial BN1 stats (single pallas_call)
    y1, st1 = _conv1_call(x, pk["w1"], pk["b1"])
    scale1, shift1 = _bn_scale_shift(st1, pk["g1"], pk["bta1"], count)

    # stage 2: fused (BN1 normalize + ReLU + t-add) -> conv2 + bias + BN2 stats
    temb3 = t_emb[:, None, :]                                # (B, 1, E)
    y2, st2 = _conv2_call(y1, scale1, shift1, temb3, pk["lw"], pk["lb"],
                          pk["w2"], pk["b2"], H, W)
    scale2, shift2 = _bn_scale_shift(st2, pk["g2"], pk["bta2"], count)

    # stage 3: final BN2 normalize + ReLU
    out = _bn_relu_call(y2, scale2, shift2)                  # (B, H*W, Cp)

    out = out.reshape(B, H, W, Cp)[:, :, :, :Cout]
    return jnp.transpose(out, (0, 3, 1, 2))                  # NHWC -> NCHW


# ----------------------------------------------------------------------------
# Pure-JAX f32 reference (faithful to the PyTorch module, training-mode BN).
# ----------------------------------------------------------------------------
def reference_forward(x_nchw, t_emb, p):
    x = jnp.transpose(x_nchw, (0, 2, 3, 1))

    def conv(h, w, b):
        y = jax.lax.conv_general_dilated(
            h, w, window_strides=(1, 1), padding="SAME",
            dimension_numbers=("NHWC", "HWIO", "NHWC"))
        return y + b

    def bn_relu(y, g, bta):
        mean = jnp.mean(y, axis=(0, 1, 2), keepdims=True)
        var = jnp.mean((y - mean) ** 2, axis=(0, 1, 2), keepdims=True)
        return jnp.maximum((y - mean) * jax.lax.rsqrt(var + EPS) * g + bta, 0.0)

    h = bn_relu(conv(x, p["conv1_w"], p["conv1_b"]), p["bn1_g"], p["bn1_b"])
    t = jnp.maximum(t_emb @ p["lin_w"] + p["lin_b"], 0.0)
    h = h + t[:, None, None, :]
    out = bn_relu(conv(h, p["conv2_w"], p["conv2_b"]), p["bn2_g"], p["bn2_b"])
    return jnp.transpose(out, (0, 3, 1, 2))


def init_params(key, in_channel, out_channel, time_emb):
    ks = jax.random.split(key, 10)
    return {
        "conv1_w": 0.1 * jax.random.normal(ks[0], (3, 3, in_channel, out_channel), jnp.float32),
        "conv1_b": 0.05 * jax.random.normal(ks[1], (out_channel,), jnp.float32),
        "bn1_g": 1.0 + 0.1 * jax.random.normal(ks[2], (out_channel,), jnp.float32),
        "bn1_b": 0.1 * jax.random.normal(ks[3], (out_channel,), jnp.float32),
        "lin_w": 0.1 * jax.random.normal(ks[4], (time_emb, out_channel), jnp.float32),
        "lin_b": 0.05 * jax.random.normal(ks[5], (out_channel,), jnp.float32),
        "conv2_w": 0.1 * jax.random.normal(ks[6], (3, 3, out_channel, out_channel), jnp.float32),
        "conv2_b": 0.05 * jax.random.normal(ks[7], (out_channel,), jnp.float32),
        "bn2_g": 1.0 + 0.1 * jax.random.normal(ks[8], (out_channel,), jnp.float32),
        "bn2_b": 0.1 * jax.random.normal(ks[9], (out_channel,), jnp.float32),
    }


if __name__ == "__main__":
    B, Cin, Cout, H, W, E = 2, 4, 8, 16, 16, 32
    key = jax.random.PRNGKey(0)
    kx, kt, kp = jax.random.split(key, 3)

    x = jax.random.normal(kx, (B, Cin, H, W), jnp.float32)   # NCHW like PyTorch
    t_emb = jax.random.normal(kt, (B, E), jnp.float32)
    params = init_params(kp, Cin, Cout, E)

    out = jax.block_until_ready(conv_block_forward(x, t_emb, params))
    assert out.shape == (B, Cout, H, W), out.shape

    ref = reference_forward(x, t_emb, params)
    # bf16 MXU operands vs. f32 reference -> loosened tolerance (accumulation
    # and all BN statistics stay f32, so error is pure bf16 operand rounding).
    err = float(jnp.max(jnp.abs(out - ref)))
    assert jnp.allclose(out, ref, atol=5e-2, rtol=2e-2), err

    print("KERNEL_OK")
</pallas_src>

<mosaic_0001>
module attributes {stable_mosaic.version = 11 : i64} {
  func.func @bn_relu_kernel(%arg0: i32, %arg1: memref<1x256x128xf32, #tpu.memory_space<vmem>>, %arg2: memref<1x128xf32, #tpu.memory_space<vmem>>, %arg3: memref<1x128xf32, #tpu.memory_space<vmem>>, %arg4: memref<1x256x128xf32, #tpu.memory_space<vmem>>) attributes {dimension_semantics = [#tpu.dimension_semantics<parallel>], iteration_bounds = array<i64: 2>, scalar_prefetch = 0 : i64, scratch_operands = 0 : i64, tpu.core_type = #tpu.core_type<tc>, window_params = [{transform_indices = @transform_0, window_bounds = array<i64: 1, 256, 128>}, {pipeline_mode = #tpu.pipeline_mode<synchronous>, transform_indices = @transform_1, window_bounds = array<i64: 1, 128>}, {pipeline_mode = #tpu.pipeline_mode<synchronous>, transform_indices = @transform_2, window_bounds = array<i64: 1, 128>}, {transform_indices = @transform_3, window_bounds = array<i64: 1, 256, 128>}]} {
    %c0 = arith.constant 0 : index
    %c0_0 = arith.constant 0 : index
    %c0_1 = arith.constant 0 : index
    %0 = vector.load %arg1[%c0, %c0_0, %c0_1] : memref<1x256x128xf32, #tpu.memory_space<vmem>>, vector<1x256x128xf32>
    %1 = vector.shape_cast %0 : vector<1x256x128xf32> to vector<256x128xf32>
    %c0_2 = arith.constant 0 : index
    %c0_3 = arith.constant 0 : index
    %2 = vector.load %arg2[%c0_2, %c0_3] : memref<1x128xf32, #tpu.memory_space<vmem>>, vector<1x128xf32>
    %3 = vector.broadcast %2 : vector<1x128xf32> to vector<256x128xf32>
    %4 = arith.mulf %1, %3 : vector<256x128xf32>
    %c0_4 = arith.constant 0 : index
    %c0_5 = arith.constant 0 : index
    %5 = vector.load %arg3[%c0_4, %c0_5] : memref<1x128xf32, #tpu.memory_space<vmem>>, vector<1x128xf32>
    %6 = vector.broadcast %5 : vector<1x128xf32> to vector<256x128xf32>
    %7 = arith.addf %4, %6 : vector<256x128xf32>
    %cst = arith.constant 0.000000e+00 : f32
    %8 = vector.broadcast %cst : f32 to vector<256x128xf32>
    %9 = arith.maximumf %7, %8 : vector<256x128xf32>
    %c0_6 = arith.constant 0 : index
    %c0_7 = arith.constant 0 : index
    %c0_8 = arith.constant 0 : index
    %10 = vector.load %arg4[%c0_6, %c0_7, %c0_8] : memref<1x256x128xf32, #tpu.memory_space<vmem>>, vector<1x256x128xf32>
    %11 = vector.shape_cast %10 : vector<1x256x128xf32> to vector<256x128xf32>
    %12 = vector.shape_cast %9 : vector<256x128xf32> to vector<1x256x128xf32>
    tpu.vector_store %arg4[%c0_6, %c0_7, %c0_8], %12 {strides = array<i32>} : memref<1x256x128xf32, #tpu.memory_space<vmem>>, vector<1x256x128xf32>,
    return
  }
  func.func @transform_0(%arg0: i32) -> (i32, i32, i32) {
    %c0_i32 = arith.constant 0 : i32
    %c0_i32_0 = arith.constant 0 : i32
    %c0_i32_1 = arith.constant 0 : i32
    return %arg0, %c0_i32, %c0_i32_0 : i32, i32, i32
  }
  func.func @transform_1(%arg0: i32) -> (i32, i32) {
    %c0_i32 = arith.constant 0 : i32
    %c0_i32_0 = arith.constant 0 : i32
    %c0_i32_1 = arith.constant 0 : i32
    return %c0_i32, %c0_i32_0 : i32, i32
  }
  func.func @transform_2(%arg0: i32) -> (i32, i32) {
    %c0_i32 = arith.constant 0 : i32
    %c0_i32_0 = arith.constant 0 : i32
    %c0_i32_1 = arith.constant 0 : i32
    return %c0_i32, %c0_i32_0 : i32, i32
  }
  func.func @transform_3(%arg0: i32) -> (i32, i32, i32) {
    %c0_i32 = arith.constant 0 : i32
    %c0_i32_0 = arith.constant 0 : i32
    %c0_i32_1 = arith.constant 0 : i32
    return %arg0, %c0_i32, %c0_i32_0 : i32, i32, i32
  }
}

module attributes {stable_mosaic.version = 11 : i64} {
  func.func @conv2_kernel(%arg0: i32, %arg1: memref<1x256x128xf32, #tpu.memory_space<vmem>>, %arg2: memref<1x128xf32, #tpu.memory_space<vmem>>, %arg3: memref<1x128xf32, #tpu.memory_space<vmem>>, %arg4: memref<1x1x32xf32, #tpu.memory_space<vmem>>, %arg5: memref<32x128xf32, #tpu.memory_space<vmem>>, %arg6: memref<1x128xf32, #tpu.memory_space<vmem>>, %arg7: memref<1152x128xbf16, #tpu.memory_space<vmem>>, %arg8: memref<1x128xf32, #tpu.memory_space<vmem>>, %arg9: memref<1x256x128xf32, #tpu.memory_space<vmem>>, %arg10: memref<1x2x128xf32, #tpu.memory_space<vmem>>, %arg11: memref<18x18x128xf32, #tpu.memory_space<vmem>>, %arg12: memref<256x1152xbf16, #tpu.memory_space<vmem>>) attributes {dimension_semantics = [#tpu.dimension_semantics<parallel>], iteration_bounds = array<i64: 2>, scalar_prefetch = 0 : i64, scratch_operands = 2 : i64, tpu.core_type = #tpu.core_type<tc>, window_params = [{transform_indices = @transform_0, window_bounds = array<i64: 1, 256, 128>}, {pipeline_mode = #tpu.pipeline_mode<synchronous>, transform_indices = @transform_1, window_bounds = array<i64: 1, 128>}, {pipeline_mode = #tpu.pipeline_mode<synchronous>, transform_indices = @transform_2, window_bounds = array<i64: 1, 128>}, {transform_indices = @transform_3, window_bounds = array<i64: 1, 1, 32>}, {pipeline_mode = #tpu.pipeline_mode<synchronous>, transform_indices = @transform_4, window_bounds = array<i64: 32, 128>}, {pipeline_mode = #tpu.pipeline_mode<synchronous>, transform_indices = @transform_5, window_bounds = array<i64: 1, 128>}, {pipeline_mode = #tpu.pipeline_mode<synchronous>, transform_indices = @transform_6, window_bounds = array<i64: 1152, 128>}, {pipeline_mode = #tpu.pipeline_mode<synchronous>, transform_indices = @transform_7, window_bounds = array<i64: 1, 128>}, {transform_indices = @transform_8, window_bounds = array<i64: 1, 256, 128>}, {transform_indices = @transform_9, window_bounds = array<i64: 1, 2, 128>}]} {
    %c0 = arith.constant 0 : index
    %c0_0 = arith.constant 0 : index
    %c0_1 = arith.constant 0 : index
    %0 = vector.load %arg1[%c0, %c0_0, %c0_1] : memref<1x256x128xf32, #tpu.memory_space<vmem>>, vector<1x256x128xf32>
    %1 = vector.shape_cast %0 : vector<1x256x128xf32> to vector<256x128xf32>
    %c0_2 = arith.constant 0 : index
    %c0_3 = arith.constant 0 : index
    %2 = vector.load %arg2[%c0_2, %c0_3] : memref<1x128xf32, #tpu.memory_space<vmem>>, vector<1x128xf32>
    %3 = vector.broadcast %2 : vector<1x128xf32> to vector<256x128xf32>
    %4 = arith.mulf %1, %3 : vector<256x128xf32>
    %c0_4 = arith.constant 0 : index
    %c0_5 = arith.constant 0 : index
    %5 = vector.load %arg3[%c0_4, %c0_5] : memref<1x128xf32, #tpu.memory_space<vmem>>, vector<1x128xf32>
    %6 = vector.broadcast %5 : vector<1x128xf32> to vector<256x128xf32>
    %7 = arith.addf %4, %6 : vector<256x128xf32>
    %cst = arith.constant 0.000000e+00 : f32
    %8 = vector.broadcast %cst : f32 to vector<256x128xf32>
    %9 = arith.maximumf %7, %8 : vector<256x128xf32>
    %c0_6 = arith.constant 0 : index
    %c0_7 = arith.constant 0 : index
    %c0_8 = arith.constant 0 : index
    %10 = vector.load %arg4[%c0_6, %c0_7, %c0_8] : memref<1x1x32xf32, #tpu.memory_space<vmem>>, vector<1x1x32xf32>
    %11 = vector.shape_cast %10 : vector<1x1x32xf32> to vector<1x32xf32>
    %c0_9 = arith.constant 0 : index
    %c0_10 = arith.constant 0 : index
    %12 = vector.load %arg5[%c0_9, %c0_10] : memref<32x128xf32, #tpu.memory_space<vmem>>, vector<32x128xf32>
    %cst_11 = arith.constant dense<0.000000e+00> : vector<1x128xf32>
    %13 = tpu.matmul %11, %12, %cst_11 {dimension_numbers = #tpu.dot_dimension_numbers<[1], [0], [0], [1], [0, 0, 1, 1], [], []>} : vector<1x32xf32>, vector<32x128xf32>, vector<1x128xf32> -> vector<1x128xf32>
    %c0_12 = arith.constant 0 : index
    %c0_13 = arith.constant 0 : index
    %14 = vector.load %arg6[%c0_12, %c0_13] : memref<1x128xf32, #tpu.memory_space<vmem>>, vector<1x128xf32>
    %15 = arith.addf %13, %14 : vector<1x128xf32>
    %cst_14 = arith.constant 0.000000e+00 : f32
    %16 = vector.broadcast %cst_14 : f32 to vector<1x128xf32>
    %17 = arith.maximumf %15, %16 : vector<1x128xf32>
    %18 = vector.broadcast %17 : vector<1x128xf32> to vector<256x128xf32>
    %19 = arith.addf %9, %18 : vector<256x128xf32>
    %20 = vector.shape_cast %19 : vector<256x128xf32> to vector<16x16x128xf32>
    %cst_15 = arith.constant 0.000000e+00 : f32
    %21 = vector.broadcast %cst_15 : f32 to vector<18x18x128xf32>
    %c0_16 = arith.constant 0 : index
    %c0_17 = arith.constant 0 : index
    %c0_18 = arith.constant 0 : index
    %22 = vector.load %arg11[%c0_16, %c0_17, %c0_18] : memref<18x18x128xf32, #tpu.memory_space<vmem>>, vector<18x18x128xf32>
    tpu.vector_store %arg11[%c0_16, %c0_17, %c0_18], %21 {strides = array<i32>} : memref<18x18x128xf32, #tpu.memory_space<vmem>>, vector<18x18x128xf32>,
    %c1 = arith.constant 1 : index
    %c1_19 = arith.constant 1 : index
    %c0_20 = arith.constant 0 : index
    %23 = vector.load %arg11[%c1, %c1_19, %c0_20] : memref<18x18x128xf32, #tpu.memory_space<vmem>>, vector<16x16x128xf32>
    tpu.vector_store %arg11[%c1, %c1_19, %c0_20], %20 {strides = array<i32>} : memref<18x18x128xf32, #tpu.memory_space<vmem>>, vector<16x16x128xf32>,
    %c0_21 = arith.constant 0 : index
    %c0_22 = arith.constant 0 : index
    %c0_23 = arith.constant 0 : index
    %24 = vector.load %arg11[%c0_21, %c0_22, %c0_23] : memref<18x18x128xf32, #tpu.memory_space<vmem>>, vector<16x16x128xf32>
    %25 = vector.shape_cast %24 : vector<16x16x128xf32> to vector<256x128xf32>
    %26 = arith.truncf %25 : vector<256x128xf32> to vector<256x128xbf16>
    %c0_24 = arith.constant 0 : index
    %c0_25 = arith.constant 0 : index
    %27 = vector.load %arg12[%c0_24, %c0_25] : memref<256x1152xbf16, #tpu.memory_space<vmem>>, vector<256x128xbf16>
    tpu.vector_store %arg12[%c0_24, %c0_25], %26 {strides = array<i32>} : memref<256x1152xbf16, #tpu.memory_space<vmem>>, vector<256x128xbf16>,
    %c0_26 = arith.constant 0 : index
    %c1_27 = arith.constant 1 : index
    %c0_28 = arith.constant 0 : index
    %28 = vector.load %arg11[%c0_26, %c1_27, %c0_28] : memref<18x18x128xf32, #tpu.memory_space<vmem>>, vector<16x16x128xf32>
    %29 = vector.shape_cast %28 : vector<16x16x128xf32> to vector<256x128xf32>
    %30 = arith.truncf %29 : vector<256x128xf32> to vector<256x128xbf16>
    %c0_29 = arith.constant 0 : index
    %c128 = arith.constant 128 : index
    %31 = vector.load %arg12[%c0_29, %c128] : memref<256x1152xbf16, #tpu.memory_space<vmem>>, vector<256x128xbf16>
    tpu.vector_store %arg12[%c0_29, %c128], %30 {strides = array<i32>} : memref<256x1152xbf16, #tpu.memory_space<vmem>>, vector<256x128xbf16>,
    %c0_30 = arith.constant 0 : index
    %c2 = arith.constant 2 : index
    %c0_31 = arith.constant 0 : index
    %32 = vector.load %arg11[%c0_30, %c2, %c0_31] : memref<18x18x128xf32, #tpu.memory_space<vmem>>, vector<16x16x128xf32>
    %33 = vector.shape_cast %32 : vector<16x16x128xf32> to vector<256x128xf32>
    %34 = arith.truncf %33 : vector<256x128xf32> to vector<256x128xbf16>
    %c0_32 = arith.constant 0 : index
    %c256 = arith.constant 256 : index
    %35 = vector.load %arg12[%c0_32, %c256] : memref<256x1152xbf16, #tpu.memory_space<vmem>>, vector<256x128xbf16>
    tpu.vector_store %arg12[%c0_32, %c256], %34 {strides = array<i32>} : memref<256x1152xbf16, #tpu.memory_space<vmem>>, vector<256x128xbf16>,
    %c1_33 = arith.constant 1 : index
    %c0_34 = arith.constant 0 : index
    %c0_35 = arith.constant 0 : index
    %36 = vector.load %arg11[%c1_33, %c0_34, %c0_35] : memref<18x18x128xf32, #tpu.memory_space<vmem>>, vector<16x16x128xf32>
    %37 = vector.shape_cast %36 : vector<16x16x128xf32> to vector<256x128xf32>
    %38 = arith.truncf %37 : vector<256x128xf32> to vector<256x128xbf16>
    %c0_36 = arith.constant 0 : index
    %c384 = arith.constant 384 : index
    %39 = vector.load %arg12[%c0_36, %c384] : memref<256x1152xbf16, #tpu.memory_space<vmem>>, vector<256x128xbf16>
    tpu.vector_store %arg12[%c0_36, %c384], %38 {strides = array<i32>} : memref<256x1152xbf16, #tpu.memory_space<vmem>>, vector<256x128xbf16>,
    %c1_37 = arith.constant 1 : index
    %c1_38 = arith.constant 1 : index
    %c0_39 = arith.constant 0 : index
    %40 = vector.load %arg11[%c1_37, %c1_38, %c0_39] : memref<18x18x128xf32, #tpu.memory_space<vmem>>, vector<16x16x128xf32>
    %41 = vector.shape_cast %40 : vector<16x16x128xf32> to vector<256x128xf32>
    %42 = arith.truncf %41 : vector<256x128xf32> to vector<256x128xbf16>
    %c0_40 = arith.constant 0 : index
    %c512 = arith.constant 512 : index
    %43 = vector.load %arg12[%c0_40, %c512] : memref<256x1152xbf16, #tpu.memory_space<vmem>>, vector<256x128xbf16>
    tpu.vector_store %arg12[%c0_40, %c512], %42 {strides = array<i32>} : memref<256x1152xbf16, #tpu.memory_space<vmem>>, vector<256x128xbf16>,
    %c1_41 = arith.constant 1 : index
    %c2_42 = arith.constant 2 : index
    %c0_43 = arith.constant 0 : index
    %44 = vector.load %arg11[%c1_41, %c2_42, %c0_43] : memref<18x18x128xf32, #tpu.memory_space<vmem>>, vector<16x16x128xf32>
    %45 = vector.shape_cast %44 : vector<16x16x128xf32> to vector<256x128xf32>
    %46 = arith.truncf %45 : vector<256x128xf32> to vector<256x128xbf16>
    %c0_44 = arith.constant 0 : index
    %c640 = arith.constant 640 : index
    %47 = vector.load %arg12[%c0_44, %c640] : memref<256x1152xbf16, #tpu.memory_space<vmem>>, vector<256x128xbf16>
    tpu.vector_store %arg12[%c0_44, %c640], %46 {strides = array<i32>} : memref<256x1152xbf16, #tpu.memory_space<vmem>>, vector<256x128xbf16>,
    %c2_45 = arith.constant 2 : index
    %c0_46 = arith.constant 0 : index
    %c0_47 = arith.constant 0 : index
    %48 = vector.load %arg11[%c2_45, %c0_46, %c0_47] : memref<18x18x128xf32, #tpu.memory_space<vmem>>, vector<16x16x128xf32>
    %49 = vector.shape_cast %48 : vector<16x16x128xf32> to vector<256x128xf32>
    %50 = arith.truncf %49 : vector<256x128xf32> to vector<256x128xbf16>
    %c0_48 = arith.constant 0 : index
    %c768 = arith.constant 768 : index
    %51 = vector.load %arg12[%c0_48, %c768] : memref<256x1152xbf16, #tpu.memory_space<vmem>>, vector<256x128xbf16>
    tpu.vector_store %arg12[%c0_48, %c768], %50 {strides = array<i32>} : memref<256x1152xbf16, #tpu.memory_space<vmem>>, vector<256x128xbf16>,
    %c2_49 = arith.constant 2 : index
    %c1_50 = arith.constant 1 : index
    %c0_51 = arith.constant 0 : index
    %52 = vector.load %arg11[%c2_49, %c1_50, %c0_51] : memref<18x18x128xf32, #tpu.memory_space<vmem>>, vector<16x16x128xf32>
    %53 = vector.shape_cast %52 : vector<16x16x128xf32> to vector<256x128xf32>
    %54 = arith.truncf %53 : vector<256x128xf32> to vector<256x128xbf16>
    %c0_52 = arith.constant 0 : index
    %c896 = arith.constant 896 : index
    %55 = vector.load %arg12[%c0_52, %c896] : memref<256x1152xbf16, #tpu.memory_space<vmem>>, vector<256x128xbf16>
    tpu.vector_store %arg12[%c0_52, %c896], %54 {strides = array<i32>} : memref<256x1152xbf16, #tpu.memory_space<vmem>>, vector<256x128xbf16>,
    %c2_53 = arith.constant 2 : index
    %c2_54 = arith.constant 2 : index
    %c0_55 = arith.constant 0 : index
    %56 = vector.load %arg11[%c2_53, %c2_54, %c0_55] : memref<18x18x128xf32, #tpu.memory_space<vmem>>, vector<16x16x128xf32>
    %57 = vector.shape_cast %56 : vector<16x16x128xf32> to vector<256x128xf32>
    %58 = arith.truncf %57 : vector<256x128xf32> to vector<256x128xbf16>
    %c0_56 = arith.constant 0 : index
    %c1024 = arith.constant 1024 : index
    %59 = vector.load %arg12[%c0_56, %c1024] : memref<256x1152xbf16, #tpu.memory_space<vmem>>, vector<256x128xbf16>
    tpu.vector_store %arg12[%c0_56, %c1024], %58 {strides = array<i32>} : memref<256x1152xbf16, #tpu.memory_space<vmem>>, vector<256x128xbf16>,
    %c0_57 = arith.constant 0 : index
    %c0_58 = arith.constant 0 : index
    %60 = vector.load %arg12[%c0_57, %c0_58] : memref<256x1152xbf16, #tpu.memory_space<vmem>>, vector<256x1152xbf16>
    %c0_59 = arith.constant 0 : index
    %c0_60 = arith.constant 0 : index
    %61 = vector.load %arg7[%c0_59, %c0_60] : memref<1152x128xbf16, #tpu.memory_space<vmem>>, vector<1152x128xbf16>
    %cst_61 = arith.constant dense<0.000000e+00> : vector<256x128xf32>
    %62 = tpu.matmul %60, %61, %cst_61 {dimension_numbers = #tpu.dot_dimension_numbers<[1], [0], [0], [1], [0, 0, 1, 1], [], []>} : vector<256x1152xbf16>, vector<1152x128xbf16>, vector<256x128xf32> -> vector<256x128xf32>
    %c0_62 = arith.constant 0 : index
    %c0_63 = arith.constant 0 : index
    %63 = vector.load %arg8[%c0_62, %c0_63] : memref<1x128xf32, #tpu.memory_space<vmem>>, vector<1x128xf32>
    %64 = vector.broadcast %63 : vector<1x128xf32> to vector<256x128xf32>
    %65 = arith.addf %62, %64 : vector<256x128xf32>
    %c0_64 = arith.constant 0 : index
    %c0_65 = arith.constant 0 : index
    %c0_66 = arith.constant 0 : index
    %66 = vector.load %arg9[%c0_64, %c0_65, %c0_66] : memref<1x256x128xf32, #tpu.memory_space<vmem>>, vector<1x256x128xf32>
    %67 = vector.shape_cast %66 : vector<1x256x128xf32> to vector<256x128xf32>
    %68 = vector.shape_cast %65 : vector<256x128xf32> to vector<1x256x128xf32>
    tpu.vector_store %arg9[%c0_64, %c0_65, %c0_66], %68 {strides = array<i32>} : memref<1x256x128xf32, #tpu.memory_space<vmem>>, vector<1x256x128xf32>,
    %cst_67 = arith.constant dense<0.000000e+00> : vector<128xf32>
    %69 = vector.multi_reduction <add>, %65, %cst_67 [0] : vector<256x128xf32> to vector<128xf32>
    %70 = vector.shape_cast %69 : vector<128xf32> to vector<1x128xf32>
    %c0_68 = arith.constant 0 : index
    %c0_69 = arith.constant 0 : index
    %c0_70 = arith.constant 0 : index
    %71 = vector.load %arg10[%c0_68, %c0_69, %c0_70] : memref<1x2x128xf32, #tpu.memory_space<vmem>>, vector<1x1x128xf32>
    %72 = vector.shape_cast %71 : vector<1x1x128xf32> to vector<1x128xf32>
    %73 = vector.shape_cast %70 : vector<1x128xf32> to vector<1x1x128xf32>
    tpu.vector_store %arg10[%c0_68, %c0_69, %c0_70], %73 {strides = array<i32>} : memref<1x2x128xf32, #tpu.memory_space<vmem>>, vector<1x1x128xf32>,
    %74 = arith.mulf %65, %65 : vector<256x128xf32>
    %cst_71 = arith.constant dense<0.000000e+00> : vector<128xf32>
    %75 = vector.multi_reduction <add>, %74, %cst_71 [0] : vector<256x128xf32> to vector<128xf32>
    %76 = vector.shape_cast %75 : vector<128xf32> to vector<1x128xf32>
    %c0_72 = arith.constant 0 : index
    %c1_73 = arith.constant 1 : index
    %c0_74 = arith.constant 0 : index
    %77 = vector.load %arg10[%c0_72, %c1_73, %c0_74] : memref<1x2x128xf32, #tpu.memory_space<vmem>>, vector<1x1x128xf32>
    %78 = vector.shape_cast %77 : vector<1x1x128xf32> to vector<1x128xf32>
    %79 = vector.shape_cast %76 : vector<1x128xf32> to vector<1x1x128xf32>
    tpu.vector_store %arg10[%c0_72, %c1_73, %c0_74], %79 {strides = array<i32>} : memref<1x2x128xf32, #tpu.memory_space<vmem>>, vector<1x1x128xf32>,
    return
  }
  func.func @transform_0(%arg0: i32) -> (i32, i32, i32) {
    %c0_i32 = arith.constant 0 : i32
    %c0_i32_0 = arith.constant 0 : i32
    %c0_i32_1 = arith.constant 0 : i32
    return %arg0, %c0_i32, %c0_i32_0 : i32, i32, i32
  }
  func.func @transform_1(%arg0: i32) -> (i32, i32) {
    %c0_i32 = arith.constant 0 : i32
    %c0_i32_0 = arith.constant 0 : i32
    %c0_i32_1 = arith.constant 0 : i32
    return %c0_i32, %c0_i32_0 : i32, i32
  }
  func.func @transform_2(%arg0: i32) -> (i32, i32) {
    %c0_i32 = arith.constant 0 : i32
    %c0_i32_0 = arith.constant 0 : i32
    %c0_i32_1 = arith.constant 0 : i32
    return %c0_i32, %c0_i32_0 : i32, i32
  }
  func.func @transform_3(%arg0: i32) -> (i32, i32, i32) {
    %c0_i32 = arith.constant 0 : i32
    %c0_i32_0 = arith.constant 0 : i32
    %c0_i32_1 = arith.constant 0 : i32
    return %arg0, %c0_i32, %c0_i32_0 : i32, i32, i32
  }
  func.func @transform_4(%arg0: i32) -> (i32, i32) {
    %c0_i32 = arith.constant 0 : i32
    %c0_i32_0 = arith.constant 0 : i32
    %c0_i32_1 = arith.constant 0 : i32
    return %c0_i32, %c0_i32_0 : i32, i32
  }
  func.func @transform_5(%arg0: i32) -> (i32, i32) {
    %c0_i32 = arith.constant 0 : i32
    %c0_i32_0 = arith.constant 0 : i32
    %c0_i32_1 = arith.constant 0 : i32
    return %c0_i32, %c0_i32_0 : i32, i32
  }
  func.func @transform_6(%arg0: i32) -> (i32, i32) {
    %c0_i32 = arith.constant 0 : i32
    %c0_i32_0 = arith.constant 0 : i32
    %c0_i32_1 = arith.constant 0 : i32
    return %c0_i32, %c0_i32_0 : i32, i32
  }
  func.func @transform_7(%arg0: i32) -> (i32, i32) {
    %c0_i32 = arith.constant 0 : i32
    %c0_i32_0 = arith.constant 0 : i32
    %c0_i32_1 = arith.constant 0 : i32
    return %c0_i32, %c0_i32_0 : i32, i32
  }
  func.func @transform_8(%arg0: i32) -> (i32, i32, i32) {
    %c0_i32 = arith.constant 0 : i32
    %c0_i32_0 = arith.constant 0 : i32
    %c0_i32_1 = arith.constant 0 : i32
    return %arg0, %c0_i32, %c0_i32_0 : i32, i32, i32
  }
  func.func @transform_9(%arg0: i32) -> (i32, i32, i32) {
    %c0_i32 = arith.constant 0 : i32
    %c0_i32_0 = arith.constant 0 : i32
    %c0_i32_1 = arith.constant 0 : i32
    return %arg0, %c0_i32, %c0_i32_0 : i32, i32, i32
  }
}

module attributes {stable_mosaic.version = 11 : i64} {
  func.func @conv1_kernel(%arg0: i32, %arg1: memref<1x16x16x4xf32, #tpu.memory_space<vmem>>, %arg2: memref<36x128xbf16, #tpu.memory_space<vmem>>, %arg3: memref<1x128xf32, #tpu.memory_space<vmem>>, %arg4: memref<1x256x128xf32, #tpu.memory_space<vmem>>, %arg5: memref<1x2x128xf32, #tpu.memory_space<vmem>>, %arg6: memref<18x18x4xf32, #tpu.memory_space<vmem>>, %arg7: memref<256x36xbf16, #tpu.memory_space<vmem>>) attributes {dimension_semantics = [#tpu.dimension_semantics<parallel>], iteration_bounds = array<i64: 2>, scalar_prefetch = 0 : i64, scratch_operands = 2 : i64, tpu.core_type = #tpu.core_type<tc>, window_params = [{transform_indices = @transform_0, window_bounds = array<i64: 1, 16, 16, 4>}, {pipeline_mode = #tpu.pipeline_mode<synchronous>, transform_indices = @transform_1, window_bounds = array<i64: 36, 128>}, {pipeline_mode = #tpu.pipeline_mode<synchronous>, transform_indices = @transform_2, window_bounds = array<i64: 1, 128>}, {transform_indices = @transform_3, window_bounds = array<i64: 1, 256, 128>}, {transform_indices = @transform_4, window_bounds = array<i64: 1, 2, 128>}]} {
    %c0 = arith.constant 0 : index
    %c0_0 = arith.constant 0 : index
    %c0_1 = arith.constant 0 : index
    %c0_2 = arith.constant 0 : index
    %0 = vector.load %arg1[%c0, %c0_0, %c0_1, %c0_2] : memref<1x16x16x4xf32, #tpu.memory_space<vmem>>, vector<1x16x16x4xf32>
    %1 = vector.shape_cast %0 : vector<1x16x16x4xf32> to vector<16x16x4xf32>
    %cst = arith.constant 0.000000e+00 : f32
    %2 = vector.broadcast %cst : f32 to vector<18x18x4xf32>
    %c0_3 = arith.constant 0 : index
    %c0_4 = arith.constant 0 : index
    %c0_5 = arith.constant 0 : index
    %3 = vector.load %arg6[%c0_3, %c0_4, %c0_5] : memref<18x18x4xf32, #tpu.memory_space<vmem>>, vector<18x18x4xf32>
    tpu.vector_store %arg6[%c0_3, %c0_4, %c0_5], %2 {strides = array<i32>} : memref<18x18x4xf32, #tpu.memory_space<vmem>>, vector<18x18x4xf32>,
    %c1 = arith.constant 1 : index
    %c1_6 = arith.constant 1 : index
    %c0_7 = arith.constant 0 : index
    %4 = vector.load %arg6[%c1, %c1_6, %c0_7] : memref<18x18x4xf32, #tpu.memory_space<vmem>>, vector<16x16x4xf32>
    tpu.vector_store %arg6[%c1, %c1_6, %c0_7], %1 {strides = array<i32>} : memref<18x18x4xf32, #tpu.memory_space<vmem>>, vector<16x16x4xf32>,
    %c0_8 = arith.constant 0 : index
    %c0_9 = arith.constant 0 : index
    %c0_10 = arith.constant 0 : index
    %5 = vector.load %arg6[%c0_8, %c0_9, %c0_10] : memref<18x18x4xf32, #tpu.memory_space<vmem>>, vector<16x16x4xf32>
    %6 = vector.shape_cast %5 : vector<16x16x4xf32> to vector<256x4xf32>
    %7 = arith.truncf %6 : vector<256x4xf32> to vector<256x4xbf16>
    %c0_11 = arith.constant 0 : index
    %c0_12 = arith.constant 0 : index
    %8 = vector.load %arg7[%c0_11, %c0_12] : memref<256x36xbf16, #tpu.memory_space<vmem>>, vector<256x4xbf16>
    tpu.vector_store %arg7[%c0_11, %c0_12], %7 {strides = array<i32>} : memref<256x36xbf16, #tpu.memory_space<vmem>>, vector<256x4xbf16>,
    %c0_13 = arith.constant 0 : index
    %c1_14 = arith.constant 1 : index
    %c0_15 = arith.constant 0 : index
    %9 = vector.load %arg6[%c0_13, %c1_14, %c0_15] : memref<18x18x4xf32, #tpu.memory_space<vmem>>, vector<16x16x4xf32>
    %10 = vector.shape_cast %9 : vector<16x16x4xf32> to vector<256x4xf32>
    %11 = arith.truncf %10 : vector<256x4xf32> to vector<256x4xbf16>
    %c0_16 = arith.constant 0 : index
    %c4 = arith.constant 4 : index
    %12 = vector.load %arg7[%c0_16, %c4] : memref<256x36xbf16, #tpu.memory_space<vmem>>, vector<256x4xbf16>
    tpu.vector_store %arg7[%c0_16, %c4], %11 {strides = array<i32>} : memref<256x36xbf16, #tpu.memory_space<vmem>>, vector<256x4xbf16>,
    %c0_17 = arith.constant 0 : index
    %c2 = arith.constant 2 : index
    %c0_18 = arith.constant 0 : index
    %13 = vector.load %arg6[%c0_17, %c2, %c0_18] : memref<18x18x4xf32, #tpu.memory_space<vmem>>, vector<16x16x4xf32>
    %14 = vector.shape_cast %13 : vector<16x16x4xf32> to vector<256x4xf32>
    %15 = arith.truncf %14 : vector<256x4xf32> to vector<256x4xbf16>
    %c0_19 = arith.constant 0 : index
    %c8 = arith.constant 8 : index
    %16 = vector.load %arg7[%c0_19, %c8] : memref<256x36xbf16, #tpu.memory_space<vmem>>, vector<256x4xbf16>
    tpu.vector_store %arg7[%c0_19, %c8], %15 {strides = array<i32>} : memref<256x36xbf16, #tpu.memory_space<vmem>>, vector<256x4xbf16>,
    %c1_20 = arith.constant 1 : index
    %c0_21 = arith.constant 0 : index
    %c0_22 = arith.constant 0 : index
    %17 = vector.load %arg6[%c1_20, %c0_21, %c0_22] : memref<18x18x4xf32, #tpu.memory_space<vmem>>, vector<16x16x4xf32>
    %18 = vector.shape_cast %17 : vector<16x16x4xf32> to vector<256x4xf32>
    %19 = arith.truncf %18 : vector<256x4xf32> to vector<256x4xbf16>
    %c0_23 = arith.constant 0 : index
    %c12 = arith.constant 12 : index
    %20 = vector.load %arg7[%c0_23, %c12] : memref<256x36xbf16, #tpu.memory_space<vmem>>, vector<256x4xbf16>
    tpu.vector_store %arg7[%c0_23, %c12], %19 {strides = array<i32>} : memref<256x36xbf16, #tpu.memory_space<vmem>>, vector<256x4xbf16>,
    %c1_24 = arith.constant 1 : index
    %c1_25 = arith.constant 1 : index
    %c0_26 = arith.constant 0 : index
    %21 = vector.load %arg6[%c1_24, %c1_25, %c0_26] : memref<18x18x4xf32, #tpu.memory_space<vmem>>, vector<16x16x4xf32>
    %22 = vector.shape_cast %21 : vector<16x16x4xf32> to vector<256x4xf32>
    %23 = arith.truncf %22 : vector<256x4xf32> to vector<256x4xbf16>
    %c0_27 = arith.constant 0 : index
    %c16 = arith.constant 16 : index
    %24 = vector.load %arg7[%c0_27, %c16] : memref<256x36xbf16, #tpu.memory_space<vmem>>, vector<256x4xbf16>
    tpu.vector_store %arg7[%c0_27, %c16], %23 {strides = array<i32>} : memref<256x36xbf16, #tpu.memory_space<vmem>>, vector<256x4xbf16>,
    %c1_28 = arith.constant 1 : index
    %c2_29 = arith.constant 2 : index
    %c0_30 = arith.constant 0 : index
    %25 = vector.load %arg6[%c1_28, %c2_29, %c0_30] : memref<18x18x4xf32, #tpu.memory_space<vmem>>, vector<16x16x4xf32>
    %26 = vector.shape_cast %25 : vector<16x16x4xf32> to vector<256x4xf32>
    %27 = arith.truncf %26 : vector<256x4xf32> to vector<256x4xbf16>
    %c0_31 = arith.constant 0 : index
    %c20 = arith.constant 20 : index
    %28 = vector.load %arg7[%c0_31, %c20] : memref<256x36xbf16, #tpu.memory_space<vmem>>, vector<256x4xbf16>
    tpu.vector_store %arg7[%c0_31, %c20], %27 {strides = array<i32>} : memref<256x36xbf16, #tpu.memory_space<vmem>>, vector<256x4xbf16>,
    %c2_32 = arith.constant 2 : index
    %c0_33 = arith.constant 0 : index
    %c0_34 = arith.constant 0 : index
    %29 = vector.load %arg6[%c2_32, %c0_33, %c0_34] : memref<18x18x4xf32, #tpu.memory_space<vmem>>, vector<16x16x4xf32>
    %30 = vector.shape_cast %29 : vector<16x16x4xf32> to vector<256x4xf32>
    %31 = arith.truncf %30 : vector<256x4xf32> to vector<256x4xbf16>
    %c0_35 = arith.constant 0 : index
    %c24 = arith.constant 24 : index
    %32 = vector.load %arg7[%c0_35, %c24] : memref<256x36xbf16, #tpu.memory_space<vmem>>, vector<256x4xbf16>
    tpu.vector_store %arg7[%c0_35, %c24], %31 {strides = array<i32>} : memref<256x36xbf16, #tpu.memory_space<vmem>>, vector<256x4xbf16>,
    %c2_36 = arith.constant 2 : index
    %c1_37 = arith.constant 1 : index
    %c0_38 = arith.constant 0 : index
    %33 = vector.load %arg6[%c2_36, %c1_37, %c0_38] : memref<18x18x4xf32, #tpu.memory_space<vmem>>, vector<16x16x4xf32>
    %34 = vector.shape_cast %33 : vector<16x16x4xf32> to vector<256x4xf32>
    %35 = arith.truncf %34 : vector<256x4xf32> to vector<256x4xbf16>
    %c0_39 = arith.constant 0 : index
    %c28 = arith.constant 28 : index
    %36 = vector.load %arg7[%c0_39, %c28] : memref<256x36xbf16, #tpu.memory_space<vmem>>, vector<256x4xbf16>
    tpu.vector_store %arg7[%c0_39, %c28], %35 {strides = array<i32>} : memref<256x36xbf16, #tpu.memory_space<vmem>>, vector<256x4xbf16>,
    %c2_40 = arith.constant 2 : index
    %c2_41 = arith.constant 2 : index
    %c0_42 = arith.constant 0 : index
    %37 = vector.load %arg6[%c2_40, %c2_41, %c0_42] : memref<18x18x4xf32, #tpu.memory_space<vmem>>, vector<16x16x4xf32>
    %38 = vector.shape_cast %37 : vector<16x16x4xf32> to vector<256x4xf32>
    %39 = arith.truncf %38 : vector<256x4xf32> to vector<256x4xbf16>
    %c0_43 = arith.constant 0 : index
    %c32 = arith.constant 32 : index
    %40 = vector.load %arg7[%c0_43, %c32] : memref<256x36xbf16, #tpu.memory_space<vmem>>, vector<256x4xbf16>
    tpu.vector_store %arg7[%c0_43, %c32], %39 {strides = array<i32>} : memref<256x36xbf16, #tpu.memory_space<vmem>>, vector<256x4xbf16>,
    %c0_44 = arith.constant 0 : index
    %c0_45 = arith.constant 0 : index
    %41 = vector.load %arg7[%c0_44, %c0_45] : memref<256x36xbf16, #tpu.memory_space<vmem>>, vector<256x36xbf16>
    %c0_46 = arith.constant 0 : index
    %c0_47 = arith.constant 0 : index
    %42 = vector.load %arg2[%c0_46, %c0_47] : memref<36x128xbf16, #tpu.memory_space<vmem>>, vector<36x128xbf16>
    %cst_48 = arith.constant dense<0.000000e+00> : vector<256x128xf32>
    %43 = tpu.matmul %41, %42, %cst_48 {dimension_numbers = #tpu.dot_dimension_numbers<[1], [0], [0], [1], [0, 0, 1, 1], [], []>} : vector<256x36xbf16>, vector<36x128xbf16>, vector<256x128xf32> -> vector<256x128xf32>
    %c0_49 = arith.constant 0 : index
    %c0_50 = arith.constant 0 : index
    %44 = vector.load %arg3[%c0_49, %c0_50] : memref<1x128xf32, #tpu.memory_space<vmem>>, vector<1x128xf32>
    %45 = vector.broadcast %44 : vector<1x128xf32> to vector<256x128xf32>
    %46 = arith.addf %43, %45 : vector<256x128xf32>
    %c0_51 = arith.constant 0 : index
    %c0_52 = arith.constant 0 : index
    %c0_53 = arith.constant 0 : index
    %47 = vector.load %arg4[%c0_51, %c0_52, %c0_53] : memref<1x256x128xf32, #tpu.memory_space<vmem>>, vector<1x256x128xf32>
    %48 = vector.shape_cast %47 : vector<1x256x128xf32> to vector<256x128xf32>
    %49 = vector.shape_cast %46 : vector<256x128xf32> to vector<1x256x128xf32>
    tpu.vector_store %arg4[%c0_51, %c0_52, %c0_53], %49 {strides = array<i32>} : memref<1x256x128xf32, #tpu.memory_space<vmem>>, vector<1x256x128xf32>,
    %cst_54 = arith.constant dense<0.000000e+00> : vector<128xf32>
    %50 = vector.multi_reduction <add>, %46, %cst_54 [0] : vector<256x128xf32> to vector<128xf32>
    %51 = vector.shape_cast %50 : vector<128xf32> to vector<1x128xf32>
    %c0_55 = arith.constant 0 : index
    %c0_56 = arith.constant 0 : index
    %c0_57 = arith.constant 0 : index
    %52 = vector.load %arg5[%c0_55, %c0_56, %c0_57] : memref<1x2x128xf32, #tpu.memory_space<vmem>>, vector<1x1x128xf32>
    %53 = vector.shape_cast %52 : vector<1x1x128xf32> to vector<1x128xf32>
    %54 = vector.shape_cast %51 : vector<1x128xf32> to vector<1x1x128xf32>
    tpu.vector_store %arg5[%c0_55, %c0_56, %c0_57], %54 {strides = array<i32>} : memref<1x2x128xf32, #tpu.memory_space<vmem>>, vector<1x1x128xf32>,
    %55 = arith.mulf %46, %46 : vector<256x128xf32>
    %cst_58 = arith.constant dense<0.000000e+00> : vector<128xf32>
    %56 = vector.multi_reduction <add>, %55, %cst_58 [0] : vector<256x128xf32> to vector<128xf32>
    %57 = vector.shape_cast %56 : vector<128xf32> to vector<1x128xf32>
    %c0_59 = arith.constant 0 : index
    %c1_60 = arith.constant 1 : index
    %c0_61 = arith.constant 0 : index
    %58 = vector.load %arg5[%c0_59, %c1_60, %c0_61] : memref<1x2x128xf32, #tpu.memory_space<vmem>>, vector<1x1x128xf32>
    %59 = vector.shape_cast %58 : vector<1x1x128xf32> to vector<1x128xf32>
    %60 = vector.shape_cast %57 : vector<1x128xf32> to vector<1x1x128xf32>
    tpu.vector_store %arg5[%c0_59, %c1_60, %c0_61], %60 {strides = array<i32>} : memref<1x2x128xf32, #tpu.memory_space<vmem>>, vector<1x1x128xf32>,
    return
  }
  func.func @transform_0(%arg0: i32) -> (i32, i32, i32, i32) {
    %c0_i32 = arith.constant 0 : i32
    %c0_i32_0 = arith.constant 0 : i32
    %c0_i32_1 = arith.constant 0 : i32
    %c0_i32_2 = arith.constant 0 : i32
    return %arg0, %c0_i32, %c0_i32_0, %c0_i32_1 : i32, i32, i32, i32
  }
  func.func @transform_1(%arg0: i32) -> (i32, i32) {
    %c0_i32 = arith.constant 0 : i32
    %c0_i32_0 = arith.constant 0 : i32
    %c0_i32_1 = arith.constant 0 : i32
    return %c0_i32, %c0_i32_0 : i32, i32
  }
  func.func @transform_2(%arg0: i32) -> (i32, i32) {
    %c0_i32 = arith.constant 0 : i32
    %c0_i32_0 = arith.constant 0 : i32
    %c0_i32_1 = arith.constant 0 : i32
    return %c0_i32, %c0_i32_0 : i32, i32
  }
  func.func @transform_3(%arg0: i32) -> (i32, i32, i32) {
    %c0_i32 = arith.constant 0 : i32
    %c0_i32_0 = arith.constant 0 : i32
    %c0_i32_1 = arith.constant 0 : i32
    return %arg0, %c0_i32, %c0_i32_0 : i32, i32, i32
  }
  func.func @transform_4(%arg0: i32) -> (i32, i32, i32) {
    %c0_i32 = arith.constant 0 : i32
    %c0_i32_0 = arith.constant 0 : i32
    %c0_i32_1 = arith.constant 0 : i32
    return %arg0, %c0_i32, %c0_i32_0 : i32, i32, i32
  }
}

</mosaic_0001>

<bundles_post_ra>
// kernel: conv_block_forward.5
= control target key start
LH: loop header
LB: loop body
LE: loop exit
PB: predicated region body
PF: predicated region fallthrough
CT: control target
= control target key end

     0   :  { %s451_s12 = smov 0   ;;  %s610_s0 = inlined_call_operand.vmem [shape: f32[2,256,128], index: 0, kind: input, shape index: {}]   ;;  %s611_s1 = inlined_call_operand.vmem [shape: f32[1,128], index: 1, kind: input, shape index: {}]   ;;  %s612_s2 = inlined_call_operand.vmem [shape: f32[1,128], index: 2, kind: input, shape index: {}]   ;;  %s613_s3 = inlined_call_operand.vmem [shape: f32[2,256,128], index: 3, kind: output, shape index: {}]  }
   0x1 LB: > { %s400_s13 = sadd.s32 4294967295, %s429_s12   ;;  %p404_p0 = scmp.ge.s32.totalorder %s429_s12, 1  ;;  %s429_s12 = sphi %s451_s12, %s13_s12  }
   0x2   : > { %p137_p1 = scmp.lt.s32.totalorder %s429_s12, 3 }
   0x4   : > { %p138_p2 = pnand %p404_p0, %p137_p1 }
   0x5   : > { %p161_p3 = scmp.lt.s32.totalorder (!%p138_p2), %s400_s13, 1  ;;  %v462_v0 = vld [vmem:[%s611_s1] ss:$0 sm:$0xff] (!%p138_p2) }
   0x6   : > { %141 = sbr.rel (%p138_p2) target bundleno = 46 (0x2e), region = 32  ;;  %v472_v1 = vld [vmem:[%s612_s2] ss:$0 sm:$0xff] (!%p138_p2) }
   0xd   : > { %s615_s13 = smov (!%p161_p3, %s400_s13), 1 }
   0xe   : > { %s413_s14 = sshll.u32 %s615_s13, 8 }
   0xf   : > { %s467_s19 = scalar_lea.vmem %s610_s0, %s413_s14  ;;  %s495_s24 = scalar_lea.vmem %s613_s3, %s413_s14 }
  0x10   : > { %v171_v2 = vld [vmem:[%s467_s19] sm:$0xff]  ;;  %v172_v3 = vld [vmem:[%s467_s19 + $0x8] sm:$0xff]  ;;  %v173_v4 = vld [vmem:[%s467_s19 + $0x10] sm:$0xff] }
  0x11   : > { %v210_v5 = vmul.f32 %v462_v0, %v171_v2  ;;  %v211_v6 = vmul.f32 %v462_v0, %v172_v3  ;;  %v212_v7 = vmul.f32 %v462_v0, %v173_v4  ;;  %v174_v8 = vld [vmem:[%s467_s19 + $0x18] sm:$0xff]  ;;  %v175_v9 = vld [vmem:[%s467_s19 + $0x20] sm:$0xff]  ;;  %v176_v10 = vld [vmem:[%s467_s19 + $0x28] sm:$0xff] }
  0x12   : > { %v213_v11 = vmul.f32 %v462_v0, %v174_v8  ;;  %v214_v12 = vmul.f32 %v462_v0, %v175_v9  ;;  %v215_v13 = vmul.f32 %v462_v0, %v176_v10  ;;  %v177_v14 = vld [vmem:[%s467_s19 + $0x30] sm:$0xff]  ;;  %v178_v15 = vld [vmem:[%s467_s19 + $0x38] sm:$0xff]  ;;  %v179_v24 = vld [vmem:[%s467_s19 + $0x40] sm:$0xff] }
  0x13   : > { %v249_v16 = vadd.f32 %v472_v1, %v210_v5  ;;  %v250_v17 = vadd.f32 %v472_v1, %v211_v6  ;;  %v251_v18 = vadd.f32 %v472_v1, %v212_v7  ;;  %v216_v19 = vmul.f32 %v462_v0, %v177_v14  ;;  %v180_v25 = vld [vmem:[%s467_s19 + $0x48] sm:$0xff]  ;;  %v181_v26 = vld [vmem:[%s467_s19 + $0x50] sm:$0xff]  ;;  %v182_v31 = vld [vmem:[%s467_s19 + $0x58] sm:$0xff] }
  0x14   : > { %v252_v20 = vadd.f32 %v472_v1, %v213_v11  ;;  %v253_v21 = vadd.f32 %v472_v1, %v214_v12  ;;  %v254_v22 = vadd.f32 %v472_v1, %v215_v13  ;;  %v217_v23 = vmul.f32 %v462_v0, %v178_v15  ;;  %v183_v32 = vld [vmem:[%s467_s19 + $0x60] sm:$0xff]  ;;  %v184_v33 = vld [vmem:[%s467_s19 + $0x68] sm:$0xff]  ;;  %v185_v38 = vld [vmem:[%s467_s19 + $0x70] sm:$0xff] }
  0x15   : > { %v281_v27 = vmax.f32 %v249_v16, 0.0  ;;  %v282_v28 = vmax.f32 %v250_v17, 0.0  ;;  %v283_v29 = vmax.f32 %v251_v18, 0.0  ;;  %v255_v30 = vadd.f32 %v472_v1, %v216_v19  ;;  %v186_v43 = vld [vmem:[%s467_s19 + $0x78] sm:$0xff]  ;;  %v187_v56 = vld [vmem:[%s467_s19 + $0x80] sm:$0xff]  ;;  %v188_v57 = vld [vmem:[%s467_s19 + $0x88] sm:$0xff] }
  0x16   : > { %v284_v34 = vmax.f32 %v252_v20, 0.0  ;;  %v285_v35 = vmax.f32 %v253_v21, 0.0  ;;  %v286_v36 = vmax.f32 %v254_v22, 0.0  ;;  %v256_v37 = vadd.f32 %v472_v1, %v217_v23  ;;  %v189_v58 = vld [vmem:[%s467_s19 + $0x90] sm:$0xff]  ;;  %v190_v63 = vld [vmem:[%s467_s19 + $0x98] sm:$0xff]  ;;  %v191_v2 = vld [vmem:[%s467_s19 + $0xa0] sm:$0xff] }
  0x17   : > { %313 = vst [vmem:[%s495_s24] sm:$0xff] %v281_v27  ;;  %314 = vst [vmem:[%s495_s24 + $0x8] sm:$0xff] %v282_v28  ;;  %v287_v39 = vmax.f32 %v255_v30, 0.0  ;;  %v218_v40 = vmul.f32 %v462_v0, %v179_v24  ;;  %v219_v41 = vmul.f32 %v462_v0, %v180_v25  ;;  %v220_v42 = vmul.f32 %v462_v0, %v181_v26  ;;  %v192_v3 = vld [vmem:[%s467_s19 + $0xa8] sm:$0xff]  ;;  %v193_v8 = vld [vmem:[%s467_s19 + $0xb0] sm:$0xff] }
  0x18   : > { %315 = vst [vmem:[%s495_s24 + $0x10] sm:$0xff] %v283_v29  ;;  %316 = vst [vmem:[%s495_s24 + $0x18] sm:$0xff] %v284_v34  ;;  %v288_v44 = vmax.f32 %v256_v37, 0.0  ;;  %v221_v45 = vmul.f32 %v462_v0, %v182_v31  ;;  %v222_v46 = vmul.f32 %v462_v0, %v183_v32  ;;  %v223_v47 = vmul.f32 %v462_v0, %v184_v33  ;;  %v194_v13 = vld [vmem:[%s467_s19 + $0xb8] sm:$0xff]  ;;  %v195_v26 = vld [vmem:[%s467_s19 + $0xc0] sm:$0xff] }
  0x19   : > { %317 = vst [vmem:[%s495_s24 + $0x20] sm:$0xff] %v285_v35  ;;  %318 = vst [vmem:[%s495_s24 + $0x28] sm:$0xff] %v286_v36  ;;  %v257_v48 = vadd.f32 %v472_v1, %v218_v40  ;;  %v258_v49 = vadd.f32 %v472_v1, %v219_v41  ;;  %v259_v50 = vadd.f32 %v472_v1, %v220_v42  ;;  %v196_v27 = vld [vmem:[%s467_s19 + $0xc8] sm:$0xff]  ;;  %v197_v28 = vld [vmem:[%s467_s19 + $0xd0] sm:$0xff] }
  0x1a   : > { %319 = vst [vmem:[%s495_s24 + $0x30] sm:$0xff] %v287_v39  ;;  %v224_v51 = vmul.f32 %v462_v0, %v185_v38  ;;  %320 = vst [vmem:[%s495_s24 + $0x38] sm:$0xff] %v288_v44  ;;  %v260_v52 = vadd.f32 %v472_v1, %v221_v45  ;;  %v261_v53 = vadd.f32 %v472_v1, %v222_v46  ;;  %v198_v33 = vld [vmem:[%s467_s19 + $0xd8] sm:$0xff]  ;;  %v199_v34 = vld [vmem:[%s467_s19 + $0xe0] sm:$0xff] }
  0x1b   : > { %v262_v54 = vadd.f32 %v472_v1, %v223_v47  ;;  %v225_v55 = vmul.f32 %v462_v0, %v186_v43  ;;  %v289_v59 = vmax.f32 %v257_v48, 0.0  ;;  %v290_v60 = vmax.f32 %v258_v49, 0.0  ;;  %v200_v35 = vld [vmem:[%s467_s19 + $0xe8] sm:$0xff]  ;;  %v201_v40 = vld [vmem:[%s467_s19 + $0xf0] sm:$0xff]  ;;  %v202_v45 = vld [vmem:[%s467_s19 + $0xf8] sm:$0xff] }
  0x1c   : > { %v291_v61 = vmax.f32 %v259_v50, 0.0  ;;  %v263_v62 = vadd.f32 %v472_v1, %v224_v51  ;;  %v292_v4 = vmax.f32 %v260_v52, 0.0  ;;  %v293_v5 = vmax.f32 %v261_v53, 0.0 }
  0x1d   : > { %v294_v6 = vmax.f32 %v262_v54, 0.0  ;;  %v264_v7 = vadd.f32 %v472_v1, %v225_v55  ;;  %321 = vst [vmem:[%s495_s24 + $0x40] sm:$0xff] %v289_v59  ;;  %322 = vst [vmem:[%s495_s24 + $0x48] sm:$0xff] %v290_v60  ;;  %v226_v10 = vmul.f32 %v462_v0, %v187_v56  ;;  %v227_v11 = vmul.f32 %v462_v0, %v188_v57 }
  0x1e   : > { %323 = vst [vmem:[%s495_s24 + $0x50] sm:$0xff] %v291_v61  ;;  %v295_v9 = vmax.f32 %v263_v62, 0.0  ;;  %v228_v12 = vmul.f32 %v462_v0, %v189_v58  ;;  %324 = vst [vmem:[%s495_s24 + $0x58] sm:$0xff] %v292_v4  ;;  %v229_v15 = vmul.f32 %v462_v0, %v190_v63  ;;  %v230_v16 = vmul.f32 %v462_v0, %v191_v2 }
  0x1f   : > { %325 = vst [vmem:[%s495_s24 + $0x60] sm:$0xff] %v293_v5  ;;  %326 = vst [vmem:[%s495_s24 + $0x68] sm:$0xff] %v294_v6  ;;  %v296_v14 = vmax.f32 %v264_v7, 0.0  ;;  %v231_v17 = vmul.f32 %v462_v0, %v192_v3  ;;  %v265_v18 = vadd.f32 %v472_v1, %v226_v10  ;;  %v266_v19 = vadd.f32 %v472_v1, %v227_v11 }
  0x20   : > { %327 = vst [vmem:[%s495_s24 + $0x70] sm:$0xff] %v295_v9  ;;  %v267_v20 = vadd.f32 %v472_v1, %v228_v12  ;;  %v232_v21 = vmul.f32 %v462_v0, %v193_v8  ;;  %v268_v22 = vadd.f32 %v472_v1, %v229_v15  ;;  %v269_v23 = vadd.f32 %v472_v1, %v230_v16 }
  0x21   : > { %328 = vst [vmem:[%s495_s24 + $0x78] sm:$0xff] %v296_v14  ;;  %v270_v24 = vadd.f32 %v472_v1, %v231_v17  ;;  %v233_v25 = vmul.f32 %v462_v0, %v194_v13  ;;  %v297_v29 = vmax.f32 %v265_v18, 0.0  ;;  %v298_v30 = vmax.f32 %v266_v19, 0.0 }
  0x22   : > { %v299_v31 = vmax.f32 %v267_v20, 0.0  ;;  %v271_v32 = vadd.f32 %v472_v1, %v232_v21  ;;  %v300_v36 = vmax.f32 %v268_v22, 0.0  ;;  %v301_v37 = vmax.f32 %v269_v23, 0.0 }
  0x23   : > { %v302_v38 = vmax.f32 %v270_v24, 0.0  ;;  %v272_v39 = vadd.f32 %v472_v1, %v233_v25  ;;  %329 = vst [vmem:[%s495_s24 + $0x80] sm:$0xff] %v297_v29  ;;  %330 = vst [vmem:[%s495_s24 + $0x88] sm:$0xff] %v298_v30  ;;  %v234_v42 = vmul.f32 %v462_v0, %v195_v26  ;;  %v235_v43 = vmul.f32 %v462_v0, %v196_v27 }
  0x24   : > { %331 = vst [vmem:[%s495_s24 + $0x90] sm:$0xff] %v299_v31  ;;  %v303_v41 = vmax.f32 %v271_v32, 0.0  ;;  %v236_v44 = vmul.f32 %v462_v0, %v197_v28  ;;  %332 = vst [vmem:[%s495_s24 + $0x98] sm:$0xff] %v300_v36  ;;  %v237_v47 = vmul.f32 %v462_v0, %v198_v33  ;;  %v238_v48 = vmul.f32 %v462_v0, %v199_v34 }
  0x25   : > { %333 = vst [vmem:[%s495_s24 + $0xa0] sm:$0xff] %v301_v37  ;;  %334 = vst [vmem:[%s495_s24 + $0xa8] sm:$0xff] %v302_v38  ;;  %v304_v46 = vmax.f32 %v272_v39, 0.0  ;;  %v239_v49 = vmul.f32 %v462_v0, %v200_v35  ;;  %v273_v50 = vadd.f32 %v472_v1, %v234_v42  ;;  %v274_v51 = vadd.f32 %v472_v1, %v235_v43 }
  0x26   : > { %335 = vst [vmem:[%s495_s24 + $0xb0] sm:$0xff] %v303_v41  ;;  %v275_v52 = vadd.f32 %v472_v1, %v236_v44  ;;  %v240_v53 = vmul.f32 %v462_v0, %v201_v40  ;;  %v276_v54 = vadd.f32 %v472_v1, %v237_v47  ;;  %v277_v55 = vadd.f32 %v472_v1, %v238_v48 }
  0x27   : > { %336 = vst [vmem:[%s495_s24 + $0xb8] sm:$0xff] %v304_v46  ;;  %v278_v56 = vadd.f32 %v472_v1, %v239_v49  ;;  %v241_v57 = vmul.f32 %v462_v0, %v202_v45  ;;  %v305_v58 = vmax.f32 %v273_v50, 0.0  ;;  %v306_v59 = vmax.f32 %v274_v51, 0.0 }
  0x28   : > { %v307_v60 = vmax.f32 %v275_v52, 0.0  ;;  %v279_v61 = vadd.f32 %v472_v1, %v240_v53  ;;  %v308_v62 = vmax.f32 %v276_v54, 0.0  ;;  %v309_v63 = vmax.f32 %v277_v55, 0.0 }
  0x29   : > { %v310_v2 = vmax.f32 %v278_v56, 0.0  ;;  %v280_v3 = vadd.f32 %v472_v1, %v241_v57  ;;  %337 = vst [vmem:[%s495_s24 + $0xc0] sm:$0xff] %v305_v58  ;;  %338 = vst [vmem:[%s495_s24 + $0xc8] sm:$0xff] %v306_v59 }
  0x2a   : > { %339 = vst [vmem:[%s495_s24 + $0xd0] sm:$0xff] %v307_v60  ;;  %v311_v4 = vmax.f32 %v279_v61, 0.0  ;;  %340 = vst [vmem:[%s495_s24 + $0xd8] sm:$0xff] %v308_v62 }
  0x2b   : > { %341 = vst [vmem:[%s495_s24 + $0xe0] sm:$0xff] %v309_v63  ;;  %342 = vst [vmem:[%s495_s24 + $0xe8] sm:$0xff] %v310_v2  ;;  %v312_v0 = vmax.f32 %v280_v3, 0.0 }
  0x2c   : > { %343 = vst [vmem:[%s495_s24 + $0xf0] sm:$0xff] %v311_v4 }
  0x2d   : > { %344 = vst [vmem:[%s495_s24 + $0xf8] sm:$0xff] %v312_v0 }
  0x2e PF: > { %s13_s12 = sadd.s32 1, %s429_s12  }
  0x2f   : > { %p10_p4 = scmp.ge.s32.totalorder %s13_s12, 4  }
  0x31   :  { %12 = sbr.rel (!%p10_p4) target bundleno = 1 (0x1), region = 62 }

// kernel: conv_block_forward.3
= control target key start
LH: loop header
LB: loop body
LE: loop exit
PB: predicated region body
PF: predicated region fallthrough
CT: control target
= control target key end

     0   :  { %s2072_s15 = smov 0   ;;  %s2667_s0 = inlined_call_operand.vmem [shape: f32[2,16,16,4], index: 0, kind: input, shape index: {}]   ;;  %s2668_s1 = inlined_call_operand.vmem [shape: bf16[36,128], index: 1, kind: input, shape index: {}]   ;;  %s2669_s2 = inlined_call_operand.vmem [shape: f32[1,128], index: 2, kind: input, shape index: {}]   ;;  %s2670_s3 = inlined_call_operand.vmem [shape: f32[2,256,128], index: 3, kind: output, shape index: {0}]   ;;  %s2671_s4 = inlined_call_operand.vmem [shape: f32[2,2,128], index: 4, kind: output, shape index: {1}]  }
   0x1 LB: > { %s1911_s16 = sadd.s32 4294967295, %s2036_s15   ;;  %p1915_p0 = scmp.ge.s32.totalorder %s2036_s15, 1  ;;  %s2036_s15 = sphi %s2072_s15, %s15_s15  }
   0x2   : > { %p165_p1 = scmp.lt.s32.totalorder %s2036_s15, 3 }
   0x4   : > { %p166_p2 = pnand %p1915_p0, %p165_p1 }
   0x5   : > { %vm242_vm0 = vcmask (!%p166_p2), 31744   ;;  %vm245_vm1 = vcmask (!%p166_p2), 25600   ;;  %v2038_v0 = vmov (!%p166_p2), 0.0   ;;  %p195_p3 = scmp.lt.s32.totalorder (!%p166_p2), %s1911_s16, 1  ;;  %s2039_s21 = smov (!%p166_p2), 4   ;;  %vm1520_vm2 = vcmask (!%p166_p2), 1041408  }
   0x6   : > { %169 = sbr.rel (%p166_p2) target bundleno = 653 (0x28d), region = 32  ;;  %243 = vst.msk [vmem:[#allocation2] sm:$0xff] (!%p166_p2), %vm242_vm0, %v2038_v0  ;;  %244 = vst.msk [vmem:[#allocation2 + $0x8] sm:$0xff] (!%p166_p2), %vm242_vm0, %v2038_v0  ;;  %s2040_s22 = smov (!%p166_p2), 8   ;;  %vm507_vm3 = vcmask (!%p166_p2), 64544   ;;  %vm636_vm4 = vcmask (!%p166_p2), 97344  }
   0x7   : > { %246 = vst.msk [vmem:[#allocation2 + $0x10] sm:$0x3] (!%p166_p2), %vm245_vm1, %v2038_v0  ;;  %249 = vst.msk [vmem:[#allocation2 + $0x28] sm:$0x3] (!%p166_p2), %vm245_vm1, %v2038_v0  ;;  %s2041_s23 = smov (!%p166_p2), 12   ;;  %s2042_s24 = smov (!%p166_p2), 16  }
   0x8   : > { %247 = vst.msk [vmem:[#allocation2 + $0x18] sm:$0xff] (!%p166_p2), %vm242_vm0, %v2038_v0  ;;  %248 = vst.msk [vmem:[#allocation2 + $0x20] sm:$0xff] (!%p166_p2), %vm242_vm0, %v2038_v0  ;;  %s2043_s25 = smov (!%p166_p2), 20   ;;  %s2044_s28 = smov (!%p166_p2), 24   ;;  %vm765_vm5 = vcmask (!%p166_p2), 130144   ;;  %vm894_vm6 = vcmask (!%p166_p2), 162944  }
   0x9   : > { %250 = vst.msk [vmem:[#allocation2 + $0x30] sm:$0xff] (!%p166_p2), %vm242_vm0, %v2038_v0  ;;  %251 = vst.msk [vmem:[#allocation2 + $0x38] sm:$0xff] (!%p166_p2), %vm242_vm0, %v2038_v0  ;;  %s2045_s7 = smov (!%p166_p2), 28   ;;  %s2046_s8 = smov (!%p166_p2), 32   ;;  %vm1023_vm7 = vcmask (!%p166_p2), 195744   ;;  %vm1153_vm8 = vcmask (!%p166_p2), 228544  }
   0xa   : > { %252 = vst.msk [vmem:[#allocation2 + $0x40] sm:$0x3] (!%p166_p2), %vm245_vm1, %v2038_v0  ;;  %255 = vst.msk [vmem:[#allocation2 + $0x58] sm:$0x3] (!%p166_p2), %vm245_vm1, %v2038_v0  ;;  %vm1282_vm9 = vcmask (!%p166_p2), 261344   ;;  %vm1411_vm10 = vcmask (!%p166_p2), 294144  }
   0xb   : > { %253 = vst.msk [vmem:[#allocation2 + $0x48] sm:$0xff] (!%p166_p2), %vm242_vm0, %v2038_v0  ;;  %254 = vst.msk [vmem:[#allocation2 + $0x50] sm:$0xff] (!%p166_p2), %vm242_vm0, %v2038_v0  ;;  %vm1471_vm11 = vcmask (!%p166_p2), 293888  }
   0xc   : > { %256 = vst.msk [vmem:[#allocation2 + $0x60] sm:$0xff] (!%p166_p2), %vm242_vm0, %v2038_v0  ;;  %257 = vst.msk [vmem:[#allocation2 + $0x68] sm:$0xff] (!%p166_p2), %vm242_vm0, %v2038_v0 }
   0xd   : > { %258 = vst.msk [vmem:[#allocation2 + $0x70] sm:$0x3] %vm245_vm1, %v2038_v0  ;;  %261 = vst.msk [vmem:[#allocation2 + $0x88] sm:$0x3] %vm245_vm1, %v2038_v0  ;;  %s2673_s16 = smov (!%p195_p3, %s1911_s16), 1  ;;  %v395_v4 = vld [vmem:[#allocation2 + $0x1] sm:$0xff] }
   0xe   : > { %259 = vst.msk [vmem:[#allocation2 + $0x78] sm:$0xff] %vm242_vm0, %v2038_v0  ;;  %260 = vst.msk [vmem:[#allocation2 + $0x80] sm:$0xff] %vm242_vm0, %v2038_v0  ;;  %s1943_s17 = sshll.u32 %s2673_s16, 8  ;;  %v396_v5 = vld [vmem:[#allocation2 + $0x9] sm:$0xff]  ;;  %v331_v24 = vld [vmem:[#allocation2] sm:$0xff]  ;;  %s1920_s14 = sshll.u32 %s2673_s16, 1 }
   0xf   : > { %262 = vst.msk [vmem:[#allocation2 + $0x90] sm:$0xff] %vm242_vm0, %v2038_v0  ;;  %263 = vst.msk [vmem:[#allocation2 + $0x98] sm:$0xff] %vm242_vm0, %v2038_v0  ;;  %s2146_s20 = scalar_lea.vmem %s2667_s0, %s1943_s17  ;;  %v524_v6 = vld [vmem:[#allocation2 + $0x2] sm:$0xff]  ;;  %v427_v7 = vpack.c.bf16 %v396_v5, %v395_v4  ;;  %v525_v8 = vld [vmem:[#allocation2 + $0xa] sm:$0xff]  ;;  %s2590_s13 = scalar_lea.vmem %s2670_s3, %s1943_s17 }
  0x10   : > { %264 = vst.msk [vmem:[#allocation2 + $0xa0] sm:$0x3] %vm245_vm1, %v2038_v0  ;;  %267 = vst.msk [vmem:[#allocation2 + $0xb8] sm:$0x3] %vm245_vm1, %v2038_v0  ;;  %v210_v1 = vld [vmem:[%s2146_s20] sm:$0xff]  ;;  %v211_v2 = vld [vmem:[%s2146_s20 + $0x8] sm:$0xff]  ;;  %v556_v11 = vpack.c.bf16 %v525_v8, %v524_v6  ;;  %s208_s19 = scalar_lea.vmem %s2671_s4, %s1920_s14 }
  0x11   : > { %265 = vst.msk [vmem:[#allocation2 + $0xa8] sm:$0xff] %vm242_vm0, %v2038_v0  ;;  %266 = vst.msk [vmem:[#allocation2 + $0xb0] sm:$0xff] %vm242_vm0, %v2038_v0  ;;  %v212_v3 = vld [vmem:[%s2146_s20 + $0x10] sm:$0xff]  ;;  %v213_v9 = vld [vmem:[%s2146_s20 + $0x18] sm:$0xff]  ;;  %459 = vrot.lane.b32.xlu0 %v427_v7, %s2039_s21 }
  0x12   : > { %268 = vst.msk [vmem:[#allocation2 + $0xc0] sm:$0xff] %vm242_vm0, %v2038_v0  ;;  %269 = vst.msk [vmem:[#allocation2 + $0xc8] sm:$0xff] %vm242_vm0, %v2038_v0  ;;  %v214_v10 = vld [vmem:[%s2146_s20 + $0x20] sm:$0xff]  ;;  %v215_v12 = vld [vmem:[%s2146_s20 + $0x28] sm:$0xff]  ;;  %588 = vrot.lane.b32.xlu1 %v556_v11, %s2040_s22 }
  0x13   : > { %270 = vst.msk [vmem:[#allocation2 + $0xd0] sm:$0x3] %vm245_vm1, %v2038_v0  ;;  %273 = vst.msk [vmem:[#allocation2 + $0xe8] sm:$0x3] %vm245_vm1, %v2038_v0  ;;  %v216_v13 = vld [vmem:[%s2146_s20 + $0x30] sm:$0xff]  ;;  %v217_v14 = vld [vmem:[%s2146_s20 + $0x38] sm:$0xff] }
  0x14   : > { %271 = vst.msk [vmem:[#allocation2 + $0xd8] sm:$0xff] %vm242_vm0, %v2038_v0  ;;  %272 = vst.msk [vmem:[#allocation2 + $0xe0] sm:$0xff] %vm242_vm0, %v2038_v0  ;;  %v218_v15 = vld [vmem:[%s2146_s20 + $0x40] sm:$0xff]  ;;  %v219_v16 = vld [vmem:[%s2146_s20 + $0x48] sm:$0xff] }
  0x15   : > { %274 = vst.msk [vmem:[#allocation2 + $0xf0] sm:$0xff] %vm242_vm0, %v2038_v0  ;;  %275 = vst.msk [vmem:[#allocation2 + $0xf8] sm:$0xff] %vm242_vm0, %v2038_v0  ;;  %v220_v17 = vld [vmem:[%s2146_s20 + $0x50] sm:$0xff]  ;;  %v221_v18 = vld [vmem:[%s2146_s20 + $0x58] sm:$0xff] }
  0x16   : > { %276 = vst.msk [vmem:[#allocation2 + $0x100] sm:$0x3] %vm245_vm1, %v2038_v0  ;;  %279 = vst.msk [vmem:[#allocation2 + $0x118] sm:$0x3] %vm245_vm1, %v2038_v0  ;;  %v222_v19 = vld [vmem:[%s2146_s20 + $0x60] sm:$0xff]  ;;  %v223_v20 = vld [vmem:[%s2146_s20 + $0x68] sm:$0xff] }
  0x17   : > { %277 = vst.msk [vmem:[#allocation2 + $0x108] sm:$0xff] %vm242_vm0, %v2038_v0  ;;  %278 = vst.msk [vmem:[#allocation2 + $0x110] sm:$0xff] %vm242_vm0, %v2038_v0  ;;  %v224_v21 = vld [vmem:[%s2146_s20 + $0x70] sm:$0xff]  ;;  %v225_v22 = vld [vmem:[%s2146_s20 + $0x78] sm:$0xff] }
  0x18   : > { %280 = vst.msk [vmem:[#allocation2 + $0x120] sm:$0xff] %vm242_vm0, %v2038_v0  ;;  %281 = vst.msk [vmem:[#allocation2 + $0x128] sm:$0xff] %vm242_vm0, %v2038_v0  ;;  %v332_v23 = vld [vmem:[#allocation2 + $0x8] sm:$0xff]  ;;  %v226_v25 = vld [vmem:[%s2146_s20 + $0x80] sm:$0xff] }
  0x19   : > { %282 = vst.msk [vmem:[#allocation2 + $0x130] sm:$0x3] %vm245_vm1, %v2038_v0  ;;  %285 = vst.msk [vmem:[#allocation2 + $0x148] sm:$0x3] %vm245_vm1, %v2038_v0  ;;  %v227_v26 = vld [vmem:[%s2146_s20 + $0x88] sm:$0xff]  ;;  %v363_v30 = vpack.c.bf16 %v332_v23, %v331_v24  ;;  %v228_v5 = vld [vmem:[%s2146_s20 + $0x90] sm:$0xff] }
  0x1a   : > { %283 = vst.msk [vmem:[#allocation2 + $0x138] sm:$0xff] %vm242_vm0, %v2038_v0  ;;  %284 = vst.msk [vmem:[#allocation2 + $0x140] sm:$0xff] %vm242_vm0, %v2038_v0  ;;  %v229_v6 = vld [vmem:[%s2146_s20 + $0x98] sm:$0xff]  ;;  %v2027_v7 = vld [vmem:[%s2668_s1] sm:$0xff]  }
  0x1b   : > { %286 = vst.msk [vmem:[#allocation2 + $0x150] sm:$0xff] %vm242_vm0, %v2038_v0  ;;  %287 = vst.msk [vmem:[#allocation2 + $0x158] sm:$0xff] %vm242_vm0, %v2038_v0  ;;  %v2028_v8 = vld [vmem:[%s2668_s1 + $0x8] sm:$0xff]   ;;  %1964 = vmatprep.subr.bf16.mxu0 %v2027_v7  ;;  %2002 = vmatprep.subr.bf16.mxu1 %v2027_v7  ;;  %v232_v23 = vld [vmem:[%s2146_s20 + $0xb0] sm:$0xff] }
  0x1c   : > { %288 = vst.msk [vmem:[#allocation2 + $0x160] sm:$0x3] %vm245_vm1, %v2038_v0  ;;  %291 = vst.msk [vmem:[#allocation2 + $0x178] sm:$0x3] %vm245_vm1, %v2038_v0  ;;  %1965 = vmatpush3.bf16.msra.mxu0 %v2027_v7  ;;  %2005 = vmatpush3.bf16.msra.mxu1 %v2027_v7  ;;  %v233_v24 = vld [vmem:[%s2146_s20 + $0xb8] sm:$0xff] }
  0x1d   : > { %289 = vst.msk [vmem:[#allocation2 + $0x168] sm:$0xff] %vm242_vm0, %v2038_v0  ;;  %290 = vst.msk [vmem:[#allocation2 + $0x170] sm:$0xff] %vm242_vm0, %v2038_v0  ;;  %1966 = vmatprep.subr.bf16.mxu0 %v2028_v8  ;;  %2003 = vmatprep.subr.bf16.mxu1 %v2028_v8  ;;  %v241_v7 = vld [vmem:[%s2146_s20 + $0xf8] sm:$0xff] }
  0x1e   : > { %292 = vst.msk [vmem:[#allocation2 + $0x180] sm:$0xff] %vm242_vm0, %v2038_v0  ;;  %293 = vst.msk [vmem:[#allocation2 + $0x188] sm:$0xff] %vm242_vm0, %v2038_v0 }
  0x1f   : > { %294 = vst.msk [vmem:[#allocation2 + $0x190] sm:$0x3] %vm245_vm1, %v2038_v0  ;;  %297 = vst.msk [vmem:[#allocation2 + $0x1a8] sm:$0x3] %vm245_vm1, %v2038_v0 }
  0x20   : > { %295 = vst.msk [vmem:[#allocation2 + $0x198] sm:$0xff] %vm242_vm0, %v2038_v0  ;;  %296 = vst.msk [vmem:[#allocation2 + $0x1a0] sm:$0xff] %vm242_vm0, %v2038_v0  ;;  %1967 = vmatpush3.bf16.msra.mxu0 %v2028_v8  ;;  %2006 = vmatpush3.bf16.msra.mxu1 %v2028_v8 }
  0x21   : > { %299 = vst.msk [vmem:[#allocation2 + $0x19] sm:$0xff] %vm242_vm0, %v210_v1  ;;  %300 = vst.msk [vmem:[#allocation2 + $0x21] sm:$0xff] %vm242_vm0, %v211_v2 }
  0x22   : > { %301 = vst.msk [vmem:[#allocation2 + $0x31] sm:$0xff] %vm242_vm0, %v212_v3  ;;  %302 = vst.msk [vmem:[#allocation2 + $0x39] sm:$0xff] %vm242_vm0, %v213_v9  ;;  %v230_v9 = vld [vmem:[%s2146_s20 + $0xa0] sm:$0xff] }
  0x23   : > { %303 = vst.msk [vmem:[#allocation2 + $0x49] sm:$0xff] %vm242_vm0, %v214_v10  ;;  %304 = vst.msk [vmem:[#allocation2 + $0x51] sm:$0xff] %vm242_vm0, %v215_v12  ;;  %v231_v10 = vld [vmem:[%s2146_s20 + $0xa8] sm:$0xff]  ;;  %v2029_v12 = vld [vmem:[%s2668_s1 + $0x10] ss:$0 sps:$4 sm:$0x33]  }
  0x24   : > { %305 = vst.msk [vmem:[#allocation2 + $0x61] sm:$0xff] %vm242_vm0, %v216_v13  ;;  %306 = vst.msk [vmem:[#allocation2 + $0x69] sm:$0xff] %vm242_vm0, %v217_v14  ;;  %2008 = vmatprep.subr.msk.bf16.mxu0 %vm1520_vm2, %v2029_v12  ;;  %2009 = vmatprep.subr.msk.bf16.mxu1 %vm1520_vm2, %v2029_v12 }
  0x25   : > { %307 = vst.msk [vmem:[#allocation2 + $0x79] sm:$0xff] %vm242_vm0, %v218_v15  ;;  %308 = vst.msk [vmem:[#allocation2 + $0x81] sm:$0xff] %vm242_vm0, %v219_v16 }
  0x26   : > { %309 = vst.msk [vmem:[#allocation2 + $0x91] sm:$0xff] %vm242_vm0, %v220_v17  ;;  %310 = vst.msk [vmem:[#allocation2 + $0x99] sm:$0xff] %vm242_vm0, %v221_v18  ;;  %v1522_v17 = vsel %vm1520_vm2, %v2029_v12, 0 }
  0x27   : > { %311 = vst.msk [vmem:[#allocation2 + $0xa9] sm:$0xff] %vm242_vm0, %v222_v19  ;;  %312 = vst.msk [vmem:[#allocation2 + $0xb1] sm:$0xff] %vm242_vm0, %v223_v20  ;;  %1969 = vmatpush3.bf16.msra.mxu0 %v1522_v17  ;;  %2007 = vmatpush3.bf16.msra.mxu1 %v1522_v17 }
  0x28   : > { %313 = vst.msk [vmem:[#allocation2 + $0xc1] sm:$0xff] %vm242_vm0, %v224_v21  ;;  %314 = vst.msk [vmem:[#allocation2 + $0xc9] sm:$0xff] %vm242_vm0, %v225_v22  ;;  %v397_v27 = vld [vmem:[#allocation2 + $0x19] sm:$0xff]  ;;  %v398_v28 = vld [vmem:[#allocation2 + $0x21] sm:$0xff] }
  0x29   : > { %v526_v29 = vld [vmem:[#allocation2 + $0x1a] sm:$0xff]  ;;  %315 = vst.msk [vmem:[#allocation2 + $0xd9] sm:$0xff] %vm242_vm0, %v226_v25  ;;  %316 = vst.msk [vmem:[#allocation2 + $0xe1] sm:$0xff] %vm242_vm0, %v227_v26  ;;  %v428_v31 = vpack.c.bf16 %v398_v28, %v397_v27  ;;  %v527_v32 = vld [vmem:[#allocation2 + $0x22] sm:$0xff] }
  0x2a   : > { %v653_v33 = vld [vmem:[#allocation2 + $0x18] sm:$0xff]  ;;  %v654_v34 = vld [vmem:[#allocation2 + $0x20] sm:$0xff]  ;;  %v557_v35 = vpack.c.bf16 %v527_v32, %v526_v29  ;;  %v655_v37 = vld [vmem:[#allocation2 + $0x30] sm:$0xff]  ;;  %379 = vst.msk [vmem:[#allocation3] sm:$0xff] %vm242_vm0, %v363_v30 }
  0x2b   : > { %v685_v36 = vpack.c.bf16 %v654_v34, %v653_v33  ;;  %v656_v38 = vld [vmem:[#allocation2 + $0x38] sm:$0xff]  ;;  %461 = vrot.lane.b32.xlu0 %v428_v31, %s2039_s21  ;;  %v1043_v40 = vld [vmem:[#allocation2 + $0x48] sm:$0xff]  ;;  %v1044_v41 = vld [vmem:[#allocation2 + $0x50] sm:$0xff]  ;;  %317 = vst.msk [vmem:[#allocation2 + $0xf1] sm:$0xff] %vm242_vm0, %v228_v5 }
  0x2c   : > { %v686_v39 = vpack.c.bf16 %v656_v38, %v655_v37  ;;  %590 = vrot.lane.b32.xlu1 %v557_v35, %s2040_s22  ;;  %v784_v42 = vld [vmem:[#allocation2 + $0x31] sm:$0xff]  ;;  %v785_v43 = vld [vmem:[#allocation2 + $0x39] sm:$0xff]  ;;  %v2190_v44 = vpack.c.bf16 %v1044_v41, %v1043_v40  ;;  %v660_v46 = vld [vmem:[#allocation2 + $0x68] sm:$0xff]  ;;  %318 = vst.msk [vmem:[#allocation2 + $0xf9] sm:$0xff] %vm242_vm0, %v229_v6 }
  0x2d   : > { %380 = vst.msk [vmem:[#allocation3 + $0x8] sm:$0xff] %vm242_vm0, %v685_v36  ;;  %v659_v45 = vld [vmem:[#allocation2 + $0x60] sm:$0xff]  ;;  %v2199_v48 = vpack.c.bf16 %v785_v43, %v784_v42  ;;  %v1047_v49 = vld [vmem:[#allocation2 + $0x78] sm:$0xff]  ;;  %v663_v54 = vld [vmem:[#allocation2 + $0x90] sm:$0xff] }
  0x2e   : > { %381 = vst.msk [vmem:[#allocation3 + $0x10] sm:$0xff] %vm242_vm0, %v686_v39  ;;  %v2194_v47 = vpack.c.bf16 %v660_v46, %v659_v45  ;;  %382 = vst.msk [vmem:[#allocation3 + $0x18] sm:$0xff] %vm242_vm0, %v2190_v44  ;;  %v1048_v50 = vld [vmem:[#allocation2 + $0x80] sm:$0xff]  ;;  %v913_v51 = vld [vmem:[#allocation2 + $0x32] sm:$0xff] }
  0x2f   : > { %717 = vrot.lane.b32.xlu0 %v685_v36, %s2041_s23  ;;  %v914_v52 = vld [vmem:[#allocation2 + $0x3a] sm:$0xff]  ;;  %v2201_v53 = vpack.c.bf16 %v1048_v50, %v1047_v49  ;;  %v1051_v58 = vld [vmem:[#allocation2 + $0xa8] sm:$0xff]  ;;  %v1052_v59 = vld [vmem:[#allocation2 + $0xb0] sm:$0xff]  ;;  %319 = vst.msk [vmem:[#allocation2 + $0x109] sm:$0xff] %vm242_vm0, %v230_v9 }
  0x30   : > { %719 = vrot.lane.b32.xlu1 %v686_v39, %s2041_s23  ;;  %383 = vst.msk [vmem:[#allocation3 + $0x20] sm:$0xff] %vm242_vm0, %v2194_v47  ;;  %v664_v55 = vld [vmem:[#allocation2 + $0x98] sm:$0xff]  ;;  %v2212_v57 = vpack.c.bf16 %v914_v52, %v913_v51  ;;  %v2214_v60 = vpack.c.bf16 %v1052_v59, %v1051_v58  ;;  %v667_v61 = vld [vmem:[#allocation2 + $0xc0] sm:$0xff]  ;;  %v668_v62 = vld [vmem:[#allocation2 + $0xc8] sm:$0xff] }
  0x31   : > { %v2206_v56 = vpack.c.bf16 %v664_v55, %v663_v54  ;;  %384 = vst.msk [vmem:[#allocation3 + $0x28] sm:$0xff] %vm242_vm0, %v2201_v53  ;;  %v2219_v63 = vpack.c.bf16 %v668_v62, %v667_v61  ;;  %v1055_v0 = vld [vmem:[#allocation2 + $0xd8] sm:$0xff]  ;;  %v1056_v1 = vld [vmem:[#allocation2 + $0xe0] sm:$0xff]  ;;  %v1172_v2 = vld [vmem:[#allocation2 + $0x49] sm:$0xff] }
  0x32   : > { %386 = vst.msk [vmem:[#allocation3 + $0x38] sm:$0xff] %vm242_vm0, %v2214_v60  ;;  %v1173_v3 = vld [vmem:[#allocation2 + $0x51] sm:$0xff]  ;;  %v2225_v4 = vpack.c.bf16 %v1056_v1, %v1055_v0  ;;  %320 = vst.msk [vmem:[#allocation2 + $0x111] sm:$0xff] %vm242_vm0, %v231_v10  ;;  %v788_v25 = vld [vmem:[#allocation2 + $0x61] sm:$0xff] }
  0x33   : > { %846 = vrot.lane.b32.xlu0 %v428_v31, %s2042_s24  ;;  %385 = vst.msk [vmem:[#allocation3 + $0x30] sm:$0xff] %vm242_vm0, %v2206_v56  ;;  %387 = vst.msk [vmem:[#allocation3 + $0x40] sm:$0xff] %vm242_vm0, %v2219_v63  ;;  %v1203_v11 = vpack.c.bf16 %v1173_v3, %v1172_v2  ;;  %v1301_v13 = vld [vmem:[#allocation2 + $0x4a] sm:$0xff]  ;;  %v1302_v14 = vld [vmem:[#allocation2 + $0x52] sm:$0xff] }
  0x34   : > { %848 = vrot.lane.b32.xlu1 %v2199_v48, %s2042_s24  ;;  %388 = vst.msk [vmem:[#allocation3 + $0x48] sm:$0xff] %vm242_vm0, %v2225_v4  ;;  %v671_v15 = vld [vmem:[#allocation2 + $0xf0] sm:$0xff]  ;;  %v672_v16 = vld [vmem:[#allocation2 + $0xf8] sm:$0xff]  ;;  %v1332_v18 = vpack.c.bf16 %v1302_v14, %v1301_v13  ;;  %321 = vst.msk [vmem:[#allocation2 + $0x121] sm:$0xff] %vm242_vm0, %v232_v23 }
  0x35   : > { %v2256_v19 = vpack.c.bf16 %v672_v16, %v671_v15  ;;  %322 = vst.msk [vmem:[#allocation2 + $0x129] sm:$0xff] %vm242_vm0, %v233_v24  ;;  %v789_v26 = vld [vmem:[#allocation2 + $0x69] sm:$0xff]  ;;  %v234_v33 = vld [vmem:[%s2146_s20 + $0xc0] sm:$0xff]  ;;  %v237_v46 = vld [vmem:[%s2146_s20 + $0xd8] sm:$0xff] }
  0x36   : > { %v1059_v20 = vld [vmem:[#allocation2 + $0x108] sm:$0xff]  ;;  %v817_v30 = vpack.c.bf16 %v789_v26, %v788_v25  ;;  %323 = vst.msk [vmem:[#allocation2 + $0x139] sm:$0xff] %vm242_vm0, %v234_v33  ;;  %v1176_v36 = vld [vmem:[#allocation2 + $0x79] sm:$0xff]  ;;  %v236_v45 = vld [vmem:[%s2146_s20 + $0xd0] sm:$0xff] }
  0x37   : > { %975 = vrot.lane.b32.xlu0 %v557_v35, %s2043_s25  ;;  %389 = vst.msk [vmem:[#allocation3 + $0x50] sm:$0xff] %vm242_vm0, %v2256_v19  ;;  %v917_v31 = vld [vmem:[#allocation2 + $0x62] sm:$0xff]  ;;  %v918_v32 = vld [vmem:[#allocation2 + $0x6a] sm:$0xff]  ;;  %v1305_v42 = vld [vmem:[#allocation2 + $0x7a] sm:$0xff] }
  0x38   : > { %977 = vrot.lane.b32.xlu1 %v2212_v57, %s2043_s25  ;;  %v235_v34 = vld [vmem:[%s2146_s20 + $0xc8] sm:$0xff]  ;;  %v946_v35 = vpack.c.bf16 %v918_v32, %v917_v31  ;;  %325 = vst.msk [vmem:[#allocation2 + $0x151] sm:$0xff] %vm242_vm0, %v236_v45  ;;  %326 = vst.msk [vmem:[#allocation2 + $0x159] sm:$0xff] %vm242_vm0, %v237_v46  ;;  %v921_v54 = vld [vmem:[#allocation2 + $0x92] sm:$0xff] }
  0x39   : > { %v1060_v21 = vld [vmem:[#allocation2 + $0x110] sm:$0xff]  ;;  %324 = vst.msk [vmem:[#allocation2 + $0x141] sm:$0xff] %vm242_vm0, %v235_v34  ;;  %v1177_v37 = vld [vmem:[#allocation2 + $0x81] sm:$0xff]  ;;  %330 = vst.msk [vmem:[#allocation2 + $0x189] sm:$0xff] %vm242_vm0, %v241_v7 }
  0x3a   : > { %v2260_v22 = vpack.c.bf16 %v1060_v21, %v1059_v20  ;;  %v1205_v41 = vpack.c.bf16 %v1177_v37, %v1176_v36  ;;  %v1306_v43 = vld [vmem:[#allocation2 + $0x82] sm:$0xff]  ;;  %v922_v55 = vld [vmem:[#allocation2 + $0x9a] sm:$0xff]  ;;  %v1181_v61 = vld [vmem:[#allocation2 + $0xb1] sm:$0xff] }
  0x3b   : > { %1105 = vrot.lane.b32.xlu0 %v686_v39, %s2044_s28  ;;  %v675_v27 = vld [vmem:[#allocation2 + $0x120] sm:$0xff]  ;;  %v239_v58 = vld [vmem:[%s2146_s20 + $0xe8] sm:$0xff]  ;;  %v1310_v5 = vld [vmem:[#allocation2 + $0xb2] sm:$0xff] }
  0x3c   : > { %1107 = vrot.lane.b32.xlu1 %v2190_v44, %s2044_s28  ;;  %390 = vst.msk [vmem:[#allocation3 + $0x58] sm:$0xff] %vm242_vm0, %v2260_v22  ;;  %v676_v28 = vld [vmem:[#allocation2 + $0x128] sm:$0xff]  ;;  %328 = vst.msk [vmem:[#allocation2 + $0x171] sm:$0xff] %vm242_vm0, %v239_v58  ;;  %v1313_v21 = vld [vmem:[#allocation2 + $0xda] sm:$0xff] }
  0x3d   : > { %v2277_v29 = vpack.c.bf16 %v676_v28, %v675_v27  ;;  %v1063_v38 = vld [vmem:[#allocation2 + $0x138] sm:$0xff]  ;;  %v1180_v59 = vld [vmem:[#allocation2 + $0xa9] sm:$0xff]  ;;  %v796_v8 = vld [vmem:[#allocation2 + $0xc1] sm:$0xff] }
  0x3e   : > { %v1207_v2 = vpack.c.bf16 %v1181_v61, %v1180_v59  ;;  %v1309_v3 = vld [vmem:[#allocation2 + $0xaa] sm:$0xff]  ;;  %v1185_v16 = vld [vmem:[#allocation2 + $0xe1] sm:$0xff]  ;;  %v801_v33 = vld [vmem:[#allocation2 + $0xf9] sm:$0xff] }
  0x3f   : > { %1234 = vrot.lane.b32.xlu0 %v2199_v48, %s2045_s7  ;;  %391 = vst.msk [vmem:[#allocation3 + $0x60] sm:$0xff] %vm242_vm0, %v2277_v29  ;;  %v679_v49 = vld [vmem:[#allocation2 + $0x150] sm:$0xff]  ;;  %v680_v50 = vld [vmem:[#allocation2 + $0x158] sm:$0xff]  ;;  %v1336_v6 = vpack.c.bf16 %v1310_v5, %v1309_v3  ;;  %v1314_v23 = vld [vmem:[#allocation2 + $0xe2] sm:$0xff] }
  0x40   : > { %1236 = vrot.lane.b32.xlu1 %v1203_v11, %s2045_s7  ;;  %v1064_v39 = vld [vmem:[#allocation2 + $0x140] sm:$0xff]  ;;  %v2311_v51 = vpack.c.bf16 %v680_v50, %v679_v49  ;;  %v797_v9 = vld [vmem:[#allocation2 + $0xc9] sm:$0xff]  ;;  %v1338_v25 = vpack.c.bf16 %v1314_v23, %v1313_v21  ;;  %v800_v32 = vld [vmem:[#allocation2 + $0xf1] sm:$0xff] }
  0x41   : > { %v2293_v40 = vpack.c.bf16 %v1064_v39, %v1063_v38  ;;  %v821_v10 = vpack.c.bf16 %v797_v9, %v796_v8  ;;  %v926_v12 = vld [vmem:[#allocation2 + $0xca] sm:$0xff]  ;;  %v929_v37 = vld [vmem:[#allocation2 + $0xf2] sm:$0xff]  ;;  %v930_v38 = vld [vmem:[#allocation2 + $0xfa] sm:$0xff] }
  0x42   : > { %393 = vst.msk [vmem:[#allocation3 + $0x70] sm:$0xff] %vm242_vm0, %v2311_v51  ;;  %v1189_v45 = vld [vmem:[#allocation2 + $0x111] sm:$0xff]  ;;  %v805_v3 = vld [vmem:[#allocation2 + $0x129] sm:$0xff] }
  0x43   : > { %1363 = vrot.lane.b32.xlu0 %v2212_v57, %s2046_s8  ;;  %392 = vst.msk [vmem:[#allocation3 + $0x68] sm:$0xff] %vm242_vm0, %v2293_v40  ;;  %v933_v7 = vld [vmem:[#allocation2 + $0x122] sm:$0xff]  ;;  %v934_v8 = vld [vmem:[#allocation2 + $0x12a] sm:$0xff] }
  0x44   : > { %463 = vrot.lane.b32.xlu1 %v2199_v48, %s2039_s21  ;;  %v793_v48 = vld [vmem:[#allocation2 + $0x99] sm:$0xff]  ;;  %v1322_v21 = vld [vmem:[#allocation2 + $0x142] sm:$0xff] }
  0x47   : > { %1365 = vrot.lane.b32.xlu0 %v1332_v18, %s2046_s8 }
  0x48   : > { %465 = vrot.lane.b32.xlu1 %v1203_v11, %s2039_s21 }
  0x4b   : > { %592 = vrot.lane.b32.xlu0 %v2212_v57, %s2040_s22  ;;  %v238_v57 = vld [vmem:[%s2146_s20 + $0xe0] sm:$0xff] }
  0x4c   : > { %594 = vrot.lane.b32.xlu1 %v1332_v18, %s2040_s22  ;;  %327 = vst.msk [vmem:[#allocation2 + $0x169] sm:$0xff] %vm242_vm0, %v238_v57 }
  0x4f   : > { %721 = vrot.lane.b32.xlu0 %v2190_v44, %s2041_s23  ;;  %v1334_v44 = vpack.c.bf16 %v1306_v43, %v1305_v42 }
  0x50   : > { %723 = vrot.lane.b32.xlu1 %v2194_v47, %s2041_s23 }
  0x53   : > { %850 = vrot.lane.b32.xlu0 %v1203_v11, %s2042_s24  ;;  %v1067_v62 = vld [vmem:[#allocation2 + $0x168] sm:$0xff]  ;;  %v1068_v0 = vld [vmem:[#allocation2 + $0x170] sm:$0xff] }
  0x54   : > { %852 = vrot.lane.b32.xlu1 %v817_v30, %s2042_s24  ;;  %v2329_v1 = vpack.c.bf16 %v1068_v0, %v1067_v62  ;;  %v925_v11 = vld [vmem:[#allocation2 + $0xc2] sm:$0xff] }
  0x55   : > { %v950_v13 = vpack.c.bf16 %v926_v12, %v925_v11 }
  0x56   : > { %394 = vst.msk [vmem:[#allocation3 + $0x78] sm:$0xff] %vm242_vm0, %v2329_v1 }
  0x57   : > { %979 = vrot.lane.b32.xlu0 %v1332_v18, %s2043_s25 }
  0x58   : > { %981 = vrot.lane.b32.xlu1 %v946_v35, %s2043_s25 }
  0x5b   : > { %1109 = vrot.lane.b32.xlu0 %v2194_v47, %s2044_s28  ;;  %v792_v47 = vld [vmem:[#allocation2 + $0x91] sm:$0xff] }
  0x5c   : > { %1111 = vrot.lane.b32.xlu1 %v2201_v53, %s2044_s28  ;;  %v819_v52 = vpack.c.bf16 %v793_v48, %v792_v47 }
  0x5f   : > { %1238 = vrot.lane.b32.xlu0 %v817_v30, %s2045_s7 }
  0x60   : > { %1240 = vrot.lane.b32.xlu1 %v1205_v41, %s2045_s7 }
  0x63   : > { %1367 = vrot.lane.b32.xlu0 %v946_v35, %s2046_s8 }
  0x64   : > { %467 = vrot.lane.b32.xlu1 %v817_v30, %s2039_s21 }
  0x67   : > { %1369 = vrot.lane.b32.xlu0 %v1334_v44, %s2046_s8 }
  0x68   : > { %469 = vrot.lane.b32.xlu1 %v1205_v41, %s2039_s21 }
  0x6b   : > { %596 = vrot.lane.b32.xlu0 %v946_v35, %s2040_s22  ;;  %v823_v35 = vpack.c.bf16 %v801_v33, %v800_v32  ;;  %v809_v32 = vld [vmem:[#allocation2 + $0x159] sm:$0xff] }
  0x6c   : > { %598 = vrot.lane.b32.xlu1 %v1334_v44, %s2040_s22 }
  0x6f   : > { %725 = vrot.lane.b32.xlu0 %v2201_v53, %s2041_s23  ;;  %v948_v53 = vpack.c.bf16 %v922_v55, %v921_v54 }
  0x70   : > { %727 = vrot.lane.b32.xlu1 %v2206_v56, %s2041_s23 }
  0x73   : > { %854 = vrot.lane.b32.xlu0 %v1205_v41, %s2042_s24  ;;  %v952_v41 = vpack.c.bf16 %v930_v38, %v929_v37  ;;  %v938_v37 = vld [vmem:[#allocation2 + $0x15a] sm:$0xff] }
  0x74   : > { %856 = vrot.lane.b32.xlu1 %v819_v52, %s2042_s24 }
  0x77   : > { %983 = vrot.lane.b32.xlu0 %v1334_v44, %s2043_s25  ;;  %v1188_v44 = vld [vmem:[#allocation2 + $0x109] sm:$0xff] }
  0x78   : > { %985 = vrot.lane.b32.xlu1 %v948_v53, %s2043_s25  ;;  %v1211_v47 = vpack.c.bf16 %v1189_v45, %v1188_v44 }
  0x7b   : > { %1113 = vrot.lane.b32.xlu0 %v2206_v56, %s2044_s28  ;;  %v240_v56 = vld [vmem:[%s2146_s20 + $0xf0] sm:$0xff] }
  0x7c   : > { %1115 = vrot.lane.b32.xlu1 %v2214_v60, %s2044_s28  ;;  %329 = vst.msk [vmem:[#allocation2 + $0x181] sm:$0xff] %vm242_vm0, %v240_v56 }
  0x7f   : > { %1242 = vrot.lane.b32.xlu0 %v819_v52, %s2045_s7 }
  0x80   : > { %1244 = vrot.lane.b32.xlu1 %v1207_v2, %s2045_s7 }
  0x83   : > { %1371 = vrot.lane.b32.xlu0 %v948_v53, %s2046_s8  ;;  %v460_v14 = vpop.permute.xlu0 %459 }
  0x84   : > { %471 = vrot.lane.b32.xlu1 %v819_v52, %s2039_s21  ;;  %508 = vst.msk [vmem:[#allocation3] sm:$0xff] %vm507_vm3, %v460_v14  ;;  %v589_v15 = vpop.permute.xlu1 %588  ;;  %v1317_v52 = vld [vmem:[#allocation2 + $0x10a] sm:$0xff]  ;;  %v1193_v14 = vld [vmem:[#allocation2 + $0x141] sm:$0xff] }
  0x85   : > { %637 = vst.msk [vmem:[#allocation3] sm:$0xff] %vm636_vm4, %v589_v15 }
  0x87   : > { %1373 = vrot.lane.b32.xlu0 %v1336_v6, %s2046_s8 }
  0x88   : > { %473 = vrot.lane.b32.xlu1 %v1207_v2, %s2039_s21 }
  0x8b   : > { %600 = vrot.lane.b32.xlu0 %v948_v53, %s2040_s22 }
  0x8c   : > { %602 = vrot.lane.b32.xlu1 %v1336_v6, %s2040_s22 }
  0x8f   : > { %729 = vrot.lane.b32.xlu0 %v2214_v60, %s2041_s23  ;;  %v1184_v60 = vld [vmem:[#allocation2 + $0xd9] sm:$0xff] }
  0x90   : > { %731 = vrot.lane.b32.xlu1 %v2219_v63, %s2041_s23  ;;  %v1209_v17 = vpack.c.bf16 %v1185_v16, %v1184_v60 }
  0x93   : > { %858 = vrot.lane.b32.xlu0 %v1207_v2, %s2042_s24  ;;  %v804_v2 = vld [vmem:[#allocation2 + $0x121] sm:$0xff] }
  0x94   : > { %860 = vrot.lane.b32.xlu1 %v821_v10, %s2042_s24 }
  0x97   : > { %987 = vrot.lane.b32.xlu0 %v1336_v6, %s2043_s25  ;;  %v825_v6 = vpack.c.bf16 %v805_v3, %v804_v2  ;;  %v812_v2 = vld [vmem:[#allocation2 + $0x181] sm:$0xff]  ;;  %v813_v3 = vld [vmem:[#allocation2 + $0x189] sm:$0xff] }
  0x98   : > { %989 = vrot.lane.b32.xlu1 %v950_v13, %s2043_s25 }
  0x9b   : > { %1117 = vrot.lane.b32.xlu0 %v2219_v63, %s2044_s28 }
  0x9c   : > { %1119 = vrot.lane.b32.xlu1 %v2225_v4, %s2044_s28 }
  0x9d   : > { %v462_v18 = vpop.permute.xlu0 %461 }
  0x9e   : > { %509 = vst.msk [vmem:[#allocation3 + $0x8] sm:$0xff] %vm507_vm3, %v462_v18  ;;  %v591_v20 = vpop.permute.xlu1 %590 }
  0x9f   : > { %638 = vst.msk [vmem:[#allocation3 + $0x8] sm:$0xff] %vm636_vm4, %v591_v20  ;;  %1246 = vrot.lane.b32.xlu0 %v821_v10, %s2045_s7  ;;  %v1321_v20 = vld [vmem:[#allocation2 + $0x13a] sm:$0xff] }
  0xa0   : > { %1248 = vrot.lane.b32.xlu1 %v1209_v17, %s2045_s7 }
  0xa1   : > { %v718_v24 = vpop.permute.xlu0 %717 }
  0xa2   : > { %766 = vst.msk [vmem:[#allocation3] sm:$0xff] %vm765_vm5, %v718_v24  ;;  %v720_v63 = vpop.permute.xlu1 %719 }
  0xa3   : > { %767 = vst.msk [vmem:[#allocation3 + $0x8] sm:$0xff] %vm765_vm5, %v720_v63  ;;  %1375 = vrot.lane.b32.xlu0 %v950_v13, %s2046_s8  ;;  %v1342_v63 = vpack.c.bf16 %v1322_v21, %v1321_v20  ;;  %v1329_v21 = vld [vmem:[#allocation2 + $0x19a] sm:$0xff] }
  0xa4   : > { %475 = vrot.lane.b32.xlu1 %v821_v10, %s2039_s21  ;;  %v954_v10 = vpack.c.bf16 %v934_v8, %v933_v7  ;;  %v941_v7 = vld [vmem:[#allocation2 + $0x182] sm:$0xff]  ;;  %v942_v8 = vld [vmem:[#allocation2 + $0x18a] sm:$0xff] }
  0xa5   : > { %v847_v26 = vpop.permute.xlu0 %846 }
  0xa6   : > { %895 = vst.msk [vmem:[#allocation3] sm:$0xff] %vm894_vm6, %v847_v26  ;;  %v849_v27 = vpop.permute.xlu1 %848 }
  0xa7   : > { %896 = vst.msk [vmem:[#allocation3 + $0x8] sm:$0xff] %vm894_vm6, %v849_v27  ;;  %1377 = vrot.lane.b32.xlu0 %v1338_v25, %s2046_s8 }
  0xa8   : > { %477 = vrot.lane.b32.xlu1 %v1209_v17, %s2039_s21 }
  0xa9   : > { %v976_v28 = vpop.permute.xlu0 %975 }
  0xaa   : > { %1024 = vst.msk [vmem:[#allocation3] sm:$0xff] %vm1023_vm7, %v976_v28  ;;  %v978_v30 = vpop.permute.xlu1 %977 }
  0xab   : > { %1025 = vst.msk [vmem:[#allocation3 + $0x8] sm:$0xff] %vm1023_vm7, %v978_v30  ;;  %604 = vrot.lane.b32.xlu0 %v950_v13, %s2040_s22  ;;  %v1192_v13 = vld [vmem:[#allocation2 + $0x139] sm:$0xff] }
  0xac   : > { %606 = vrot.lane.b32.xlu1 %v1338_v25, %s2040_s22  ;;  %v1213_v60 = vpack.c.bf16 %v1193_v14, %v1192_v13 }
  0xad   : > { %v1106_v31 = vpop.permute.xlu0 %1105 }
  0xae   : > { %1154 = vst.msk [vmem:[#allocation3] sm:$0xff] %vm1153_vm8, %v1106_v31  ;;  %v1108_v34 = vpop.permute.xlu1 %1107  ;;  %v808_v31 = vld [vmem:[#allocation2 + $0x151] sm:$0xff] }
  0xaf   : > { %1155 = vst.msk [vmem:[#allocation3 + $0x8] sm:$0xff] %vm1153_vm8, %v1108_v34  ;;  %733 = vrot.lane.b32.xlu0 %v2225_v4, %s2041_s23  ;;  %v827_v34 = vpack.c.bf16 %v809_v32, %v808_v31 }
  0xb0   : > { %735 = vrot.lane.b32.xlu1 %v2256_v19, %s2041_s23 }
  0xb1   : > { %v1235_v36 = vpop.permute.xlu0 %1234 }
  0xb2   : > { %1283 = vst.msk [vmem:[#allocation3] sm:$0xff] %vm1282_vm9, %v1235_v36  ;;  %v1237_v39 = vpop.permute.xlu1 %1236  ;;  %v937_v36 = vld [vmem:[#allocation2 + $0x152] sm:$0xff] }
  0xb3   : > { %1284 = vst.msk [vmem:[#allocation3 + $0x8] sm:$0xff] %vm1282_vm9, %v1237_v39  ;;  %862 = vrot.lane.b32.xlu0 %v1209_v17, %s2042_s24  ;;  %v956_v39 = vpack.c.bf16 %v938_v37, %v937_v36 }
  0xb4   : > { %864 = vrot.lane.b32.xlu1 %v823_v35, %s2042_s24 }
  0xb5   : > { %v1364_v4 = vpop.permute.xlu0 %1363 }
  0xb6   : > { %1412 = vst.msk [vmem:[#allocation3] sm:$0xff] %vm1411_vm10, %v1364_v4  ;;  %v464_v42 = vpop.permute.xlu1 %463 }
  0xb7   : > { %510 = vst.msk [vmem:[#allocation3 + $0x10] sm:$0xff] %vm507_vm3, %v464_v42  ;;  %991 = vrot.lane.b32.xlu0 %v1338_v25, %s2043_s25  ;;  %v1196_v42 = vld [vmem:[#allocation2 + $0x169] sm:$0xff] }
  0xb8   : > { %993 = vrot.lane.b32.xlu1 %v952_v41, %s2043_s25 }
  0xb9   : > { %v1366_v43 = vpop.permute.xlu0 %1365 }
  0xba   : > { %1413 = vst.msk [vmem:[#allocation3 + $0x8] sm:$0xff] %vm1411_vm10, %v1366_v43  ;;  %v466_v46 = vpop.permute.xlu1 %465  ;;  %v1197_v43 = vld [vmem:[#allocation2 + $0x171] sm:$0xff] }
  0xbb   : > { %511 = vst.msk [vmem:[#allocation3 + $0x18] sm:$0xff] %vm507_vm3, %v466_v46  ;;  %1121 = vrot.lane.b32.xlu0 %v2256_v19, %s2044_s28  ;;  %v1318_v19 = vld [vmem:[#allocation2 + $0x112] sm:$0xff]  ;;  %v1215_v45 = vpack.c.bf16 %v1197_v43, %v1196_v42 }
  0xbc   : > { %1123 = vrot.lane.b32.xlu1 %v2260_v22, %s2044_s28  ;;  %v1340_v58 = vpack.c.bf16 %v1318_v19, %v1317_v52 }
  0xbd   : > { %v593_v48 = vpop.permute.xlu0 %592  ;;  %v1428_v49 = vld [vmem:[#allocation3] sm:$0xff] }
  0xbe   : > { %639 = vst.msk [vmem:[#allocation3 + $0x10] sm:$0xff] %vm636_vm4, %v593_v48  ;;  %v595_v50 = vpop.permute.xlu1 %594  ;;  %1970 = vmatprep.mubr.msk.bf16.mxu0 %vm1471_vm11, %v1428_v49  ;;  %v1325_v49 = vld [vmem:[#allocation2 + $0x16a] sm:$0xff] }
  0xbf   : > { %640 = vst.msk [vmem:[#allocation3 + $0x18] sm:$0xff] %vm636_vm4, %v595_v50  ;;  %1250 = vrot.lane.b32.xlu0 %v823_v35, %s2045_s7  ;;  %v1326_v50 = vld [vmem:[#allocation2 + $0x172] sm:$0xff] }
  0xc0   : > { %1252 = vrot.lane.b32.xlu1 %v1211_v47, %s2045_s7 }
  0xc1   : > { %v722_v54 = vpop.permute.xlu0 %721  ;;  %v1429_v55 = vld [vmem:[#allocation3 + $0x8] sm:$0xff] }
  0xc2   : > { %768 = vst.msk [vmem:[#allocation3 + $0x10] sm:$0xff] %vm765_vm5, %v722_v54  ;;  %v724_v57 = vpop.permute.xlu1 %723  ;;  %1971 = vmatmul.mubr.msk.bf16.vlgmr.msra.gmra.mrb[0].mxu0 %vm1471_vm11, %v1429_v55  ;;  %v1344_v54 = vpack.c.bf16 %v1326_v50, %v1325_v49 }
  0xc3   : > { %769 = vst.msk [vmem:[#allocation3 + $0x18] sm:$0xff] %vm765_vm5, %v724_v57  ;;  %1379 = vrot.lane.b32.xlu0 %v952_v41, %s2046_s8 }
  0xc4   : > { %479 = vrot.lane.b32.xlu1 %v823_v35, %s2039_s21 }
  0xc5   : > { %v851_v53 = vpop.permute.xlu0 %850 }
  0xc6   : > { %897 = vst.msk [vmem:[#allocation3 + $0x10] sm:$0xff] %vm894_vm6, %v851_v53  ;;  %v853_v59 = vpop.permute.xlu1 %852  ;;  %v683_v53 = vld [vmem:[#allocation2 + $0x180] sm:$0xff] }
  0xc7   : > { %898 = vst.msk [vmem:[#allocation3 + $0x18] sm:$0xff] %vm894_vm6, %v853_v59  ;;  %1381 = vrot.lane.b32.xlu0 %v1340_v58, %s2046_s8  ;;  %v684_v59 = vld [vmem:[#allocation2 + $0x188] sm:$0xff] }
  0xc8   : > { %481 = vrot.lane.b32.xlu1 %v1211_v47, %s2039_s21 }
  0xc9   : > { %v980_v61 = vpop.permute.xlu0 %979 }
  0xca   : > { %1026 = vst.msk [vmem:[#allocation3 + $0x10] sm:$0xff] %vm1023_vm7, %v980_v61  ;;  %v982_v62 = vpop.permute.xlu1 %981 }
  0xcb   : > { %1027 = vst.msk [vmem:[#allocation3 + $0x18] sm:$0xff] %vm1023_vm7, %v982_v62  ;;  %608 = vrot.lane.b32.xlu0 %v952_v41, %s2040_s22  ;;  %v700_v62 = vpack.c.bf16 %v684_v59, %v683_v53 }
  0xcc   : > { %610 = vrot.lane.b32.xlu1 %v1340_v58, %s2040_s22 }
  0xcd   : > { %v1110_v0 = vpop.permute.xlu0 %1109 }
  0xce   : > { %1156 = vst.msk [vmem:[#allocation3 + $0x10] sm:$0xff] %vm1153_vm8, %v1110_v0  ;;  %v1112_v5 = vpop.permute.xlu1 %1111 }
  0xcf   : > { %1157 = vst.msk [vmem:[#allocation3 + $0x18] sm:$0xff] %vm1153_vm8, %v1112_v5  ;;  %737 = vrot.lane.b32.xlu0 %v2260_v22, %s2041_s23 }
  0xd0   : > { %739 = vrot.lane.b32.xlu1 %v2277_v29, %s2041_s23 }
  0xd1   : > { %v1239_v56 = vpop.permute.xlu0 %1238 }
  0xd2   : > { %1285 = vst.msk [vmem:[#allocation3 + $0x10] sm:$0xff] %vm1282_vm9, %v1239_v56  ;;  %v1241_v9 = vpop.permute.xlu1 %1240 }
  0xd3   : > { %1286 = vst.msk [vmem:[#allocation3 + $0x18] sm:$0xff] %vm1282_vm9, %v1241_v9  ;;  %866 = vrot.lane.b32.xlu0 %v1211_v47, %s2042_s24 }
  0xd4   : > { %868 = vrot.lane.b32.xlu1 %v825_v6, %s2042_s24 }
  0xd5   : > { %v1368_v11 = vpop.permute.xlu0 %1367 }
  0xd6   : > { %1414 = vst.msk [vmem:[#allocation3 + $0x10] sm:$0xff] %vm1411_vm10, %v1368_v11  ;;  %v468_v22 = vpop.permute.xlu1 %467 }
  0xd7   : > { %512 = vst.msk [vmem:[#allocation3 + $0x20] sm:$0xff] %vm507_vm3, %v468_v22  ;;  %995 = vrot.lane.b32.xlu0 %v1340_v58, %s2043_s25  ;;  %v1071_v22 = vld [vmem:[#allocation2 + $0x198] sm:$0xff] }
  0xd8   : > { %997 = vrot.lane.b32.xlu1 %v954_v10, %s2043_s25 }
  0xd9   : > { %v1370_v12 = vpop.permute.xlu0 %1369 }
  0xda   : > { %1415 = vst.msk [vmem:[#allocation3 + $0x18] sm:$0xff] %vm1411_vm10, %v1370_v12  ;;  %v470_v15 = vpop.permute.xlu1 %469  ;;  %v1072_v12 = vld [vmem:[#allocation2 + $0x1a0] sm:$0xff] }
  0xdb   : > { %513 = vst.msk [vmem:[#allocation3 + $0x28] sm:$0xff] %vm507_vm3, %v470_v15  ;;  %1125 = vrot.lane.b32.xlu0 %v2277_v29, %s2044_s28  ;;  %v1088_v13 = vpack.c.bf16 %v1072_v12, %v1071_v22  ;;  %v1200_v15 = vld [vmem:[#allocation2 + $0x199] sm:$0xff] }
  0xdc   : > { %1127 = vrot.lane.b32.xlu1 %v2293_v40, %s2044_s28 }
  0xdd   : > { %v597_v16 = vpop.permute.xlu0 %596  ;;  %v1430_v17 = vld [vmem:[#allocation3 + $0x10] sm:$0xff] }
  0xde   : > { %641 = vst.msk [vmem:[#allocation3 + $0x20] sm:$0xff] %vm636_vm4, %v597_v16  ;;  %v599_v18 = vpop.permute.xlu1 %598  ;;  %1974 = vmatprep.mubr.msk.bf16.mxu0 %vm1471_vm11, %v1430_v17 }
  0xdf   : > { %642 = vst.msk [vmem:[#allocation3 + $0x28] sm:$0xff] %vm636_vm4, %v599_v18  ;;  %1254 = vrot.lane.b32.xlu0 %v825_v6, %s2045_s7 }
  0xe0   : > { %1256 = vrot.lane.b32.xlu1 %v1213_v60, %s2045_s7 }
  0xe1   : > { %v726_v29 = vpop.permute.xlu0 %725  ;;  %v1431_v23 = vld [vmem:[#allocation3 + $0x18] sm:$0xff] }
  0xe2   : > { %770 = vst.msk [vmem:[#allocation3 + $0x20] sm:$0xff] %vm765_vm5, %v726_v29  ;;  %v728_v24 = vpop.permute.xlu1 %727  ;;  %1975 = vmatmul.mubr.msk.bf16.gmra.mrb[4].mxu0 %vm1471_vm11, %v1431_v23  ;;  %v1330_v29 = vld [vmem:[#allocation2 + $0x1a2] sm:$0xff] }
  0xe3   : > { %771 = vst.msk [vmem:[#allocation3 + $0x28] sm:$0xff] %vm765_vm5, %v728_v24  ;;  %1383 = vrot.lane.b32.xlu0 %v954_v10, %s2046_s8  ;;  %v1346_v24 = vpack.c.bf16 %v1330_v29, %v1329_v21 }
  0xe4   : > { %483 = vrot.lane.b32.xlu1 %v825_v6, %s2039_s21  ;;  %v829_v6 = vpack.c.bf16 %v813_v3, %v812_v2 }
  0xe5   : > { %v855_v25 = vpop.permute.xlu0 %854 }
  0xe6   : > { %899 = vst.msk [vmem:[#allocation3 + $0x20] sm:$0xff] %vm894_vm6, %v855_v25  ;;  %v857_v26 = vpop.permute.xlu1 %856 }
  0xe7   : > { %900 = vst.msk [vmem:[#allocation3 + $0x28] sm:$0xff] %vm894_vm6, %v857_v26  ;;  %1385 = vrot.lane.b32.xlu0 %v1342_v63, %s2046_s8 }
  0xe8   : > { %485 = vrot.lane.b32.xlu1 %v1213_v60, %s2039_s21 }
  0xe9   : > { %v984_v27 = vpop.permute.xlu0 %983 }
  0xea   : > { %1028 = vst.msk [vmem:[#allocation3 + $0x20] sm:$0xff] %vm1023_vm7, %v984_v27  ;;  %v986_v28 = vpop.permute.xlu1 %985 }
  0xeb   : > { %1029 = vst.msk [vmem:[#allocation3 + $0x28] sm:$0xff] %vm1023_vm7, %v986_v28  ;;  %612 = vrot.lane.b32.xlu0 %v954_v10, %s2040_s22  ;;  %v958_v10 = vpack.c.bf16 %v942_v8, %v941_v7 }
  0xec   : > { %614 = vrot.lane.b32.xlu1 %v1342_v63, %s2040_s22 }
  0xed   : > { %v1114_v30 = vpop.permute.xlu0 %1113 }
  0xee   : > { %1158 = vst.msk [vmem:[#allocation3 + $0x20] sm:$0xff] %vm1153_vm8, %v1114_v30  ;;  %v1116_v33 = vpop.permute.xlu1 %1115 }
  0xef   : > { %1159 = vst.msk [vmem:[#allocation3 + $0x28] sm:$0xff] %vm1153_vm8, %v1116_v33  ;;  %741 = vrot.lane.b32.xlu0 %v2293_v40, %s2041_s23 }
  0xf0   : > { %743 = vrot.lane.b32.xlu1 %v2311_v51, %s2041_s23 }
  0xf1   : > { %v1243_v35 = vpop.permute.xlu0 %1242 }
  0xf2   : > { %1287 = vst.msk [vmem:[#allocation3 + $0x20] sm:$0xff] %vm1282_vm9, %v1243_v35  ;;  %v1245_v38 = vpop.permute.xlu1 %1244 }
  0xf3   : > { %1288 = vst.msk [vmem:[#allocation3 + $0x28] sm:$0xff] %vm1282_vm9, %v1245_v38  ;;  %870 = vrot.lane.b32.xlu0 %v1213_v60, %s2042_s24  ;;  %v1201_v60 = vld [vmem:[#allocation2 + $0x1a1] sm:$0xff] }
  0xf4   : > { %872 = vrot.lane.b32.xlu1 %v827_v34, %s2042_s24  ;;  %v1217_v17 = vpack.c.bf16 %v1201_v60, %v1200_v15 }
  0xf5   : > { %v1372_v41 = vpop.permute.xlu0 %1371 }
  0xf6   : > { %1416 = vst.msk [vmem:[#allocation3 + $0x20] sm:$0xff] %vm1411_vm10, %v1372_v41  ;;  %v472_v40 = vpop.permute.xlu1 %471 }
  0xf7   : > { %514 = vst.msk [vmem:[#allocation3 + $0x30] sm:$0xff] %vm507_vm3, %v472_v40  ;;  %999 = vrot.lane.b32.xlu0 %v1342_v63, %s2043_s25 }
  0xf8   : > { %1001 = vrot.lane.b32.xlu1 %v956_v39, %s2043_s25 }
  0xf9   : > { %v1374_v4 = vpop.permute.xlu0 %1373 }
  0xfa   : > { %1417 = vst.msk [vmem:[#allocation3 + $0x28] sm:$0xff] %vm1411_vm10, %v1374_v4  ;;  %v474_v44 = vpop.permute.xlu1 %473 }
  0xfb   : > { %515 = vst.msk [vmem:[#allocation3 + $0x38] sm:$0xff] %vm507_vm3, %v474_v44  ;;  %1129 = vrot.lane.b32.xlu0 %v2311_v51, %s2044_s28 }
  0xfc   : > { %1131 = vrot.lane.b32.xlu1 %v2329_v1, %s2044_s28 }
  0xfd   : > { %v601_v46 = vpop.permute.xlu0 %600  ;;  %v1432_v47 = vld [vmem:[#allocation3 + $0x20] sm:$0xff] }
  0xfe   : > { %643 = vst.msk [vmem:[#allocation3 + $0x30] sm:$0xff] %vm636_vm4, %v601_v46  ;;  %v603_v48 = vpop.permute.xlu1 %602  ;;  %1978 = vmatprep.mubr.msk.bf16.mxu0 %vm1471_vm11, %v1432_v47 }
  0xff   : > { %644 = vst.msk [vmem:[#allocation3 + $0x38] sm:$0xff] %vm636_vm4, %v603_v48  ;;  %1258 = vrot.lane.b32.xlu0 %v827_v34, %s2045_s7 }
 0x100   : > { %1260 = vrot.lane.b32.xlu1 %v1215_v45, %s2045_s7 }
 0x101   : > { %v730_v51 = vpop.permute.xlu0 %729  ;;  %v1433_v52 = vld [vmem:[#allocation3 + $0x28] sm:$0xff] }
 0x102   : > { %772 = vst.msk [vmem:[#allocation3 + $0x30] sm:$0xff] %vm765_vm5, %v730_v51  ;;  %v732_v19 = vpop.permute.xlu1 %731  ;;  %1979 = vmatmul.mubr.msk.bf16.gmra.mrb[8].mxu0 %vm1471_vm11, %v1433_v52 }
 0x103   : > { %773 = vst.msk [vmem:[#allocation3 + $0x38] sm:$0xff] %vm765_vm5, %v732_v19  ;;  %1387 = vrot.lane.b32.xlu0 %v956_v39, %s2046_s8 }
 0x104   : > { %487 = vrot.lane.b32.xlu1 %v827_v34, %s2039_s21 }
 0x105   : > { %v859_v55 = vpop.permute.xlu0 %858 }
 0x106   : > { %901 = vst.msk [vmem:[#allocation3 + $0x30] sm:$0xff] %vm894_vm6, %v859_v55  ;;  %v861_v57 = vpop.permute.xlu1 %860 }
 0x107   : > { %902 = vst.msk [vmem:[#allocation3 + $0x38] sm:$0xff] %vm894_vm6, %v861_v57  ;;  %1389 = vrot.lane.b32.xlu0 %v1344_v54, %s2046_s8 }
 0x108   : > { %489 = vrot.lane.b32.xlu1 %v1215_v45, %s2039_s21 }
 0x109   : > { %v988_v58 = vpop.permute.xlu0 %987 }
 0x10a   : > { %1030 = vst.msk [vmem:[#allocation3 + $0x30] sm:$0xff] %vm1023_vm7, %v988_v58  ;;  %v990_v61 = vpop.permute.xlu1 %989 }
 0x10b   : > { %1031 = vst.msk [vmem:[#allocation3 + $0x38] sm:$0xff] %vm1023_vm7, %v990_v61  ;;  %616 = vrot.lane.b32.xlu0 %v956_v39, %s2040_s22 }
 0x10c   : > { %618 = vrot.lane.b32.xlu1 %v1344_v54, %s2040_s22 }
 0x10d   : > { %v1118_v0 = vpop.permute.xlu0 %1117 }
 0x10e   : > { %1160 = vst.msk [vmem:[#allocation3 + $0x30] sm:$0xff] %vm1153_vm8, %v1118_v0  ;;  %v1120_v5 = vpop.permute.xlu1 %1119 }
 0x10f   : > { %1161 = vst.msk [vmem:[#allocation3 + $0x38] sm:$0xff] %vm1153_vm8, %v1120_v5  ;;  %745 = vrot.lane.b32.xlu0 %v2329_v1, %s2041_s23 }
 0x110   : > { %747 = vrot.lane.b32.xlu1 %v700_v62, %s2041_s23 }
 0x111   : > { %v1247_v56 = vpop.permute.xlu0 %1246 }
 0x112   : > { %1289 = vst.msk [vmem:[#allocation3 + $0x30] sm:$0xff] %vm1282_vm9, %v1247_v56  ;;  %v1249_v9 = vpop.permute.xlu1 %1248 }
 0x113   : > { %1290 = vst.msk [vmem:[#allocation3 + $0x38] sm:$0xff] %vm1282_vm9, %v1249_v9  ;;  %874 = vrot.lane.b32.xlu0 %v1215_v45, %s2042_s24 }
 0x114   : > { %876 = vrot.lane.b32.xlu1 %v829_v6, %s2042_s24 }
 0x115   : > { %v1376_v11 = vpop.permute.xlu0 %1375 }
 0x116   : > { %1418 = vst.msk [vmem:[#allocation3 + $0x30] sm:$0xff] %vm1411_vm10, %v1376_v11  ;;  %v476_v1 = vpop.permute.xlu1 %475 }
 0x117   : > { %516 = vst.msk [vmem:[#allocation3 + $0x40] sm:$0xff] %vm507_vm3, %v476_v1  ;;  %1003 = vrot.lane.b32.xlu0 %v1344_v54, %s2043_s25 }
 0x118   : > { %1005 = vrot.lane.b32.xlu1 %v958_v10, %s2043_s25 }
 0x119   : > { %v1378_v14 = vpop.permute.xlu0 %1377 }
 0x11a   : > { %1419 = vst.msk [vmem:[#allocation3 + $0x38] sm:$0xff] %vm1411_vm10, %v1378_v14  ;;  %v478_v16 = vpop.permute.xlu1 %477 }
 0x11b   : > { %517 = vst.msk [vmem:[#allocation3 + $0x48] sm:$0xff] %vm507_vm3, %v478_v16  ;;  %1133 = vrot.lane.b32.xlu0 %v700_v62, %s2044_s28 }
 0x11c   : > { %1135 = vrot.lane.b32.xlu1 %v1088_v13, %s2044_s28 }
 0x11d   : > { %v605_v18 = vpop.permute.xlu0 %604  ;;  %v1434_v20 = vld [vmem:[#allocation3 + $0x30] sm:$0xff] }
 0x11e   : > { %645 = vst.msk [vmem:[#allocation3 + $0x40] sm:$0xff] %vm636_vm4, %v605_v18  ;;  %v607_v23 = vpop.permute.xlu1 %606  ;;  %1982 = vmatprep.mubr.msk.bf16.mxu0 %vm1471_vm11, %v1434_v20 }
 0x11f   : > { %646 = vst.msk [vmem:[#allocation3 + $0x48] sm:$0xff] %vm636_vm4, %v607_v23  ;;  %1262 = vrot.lane.b32.xlu0 %v829_v6, %s2045_s7 }
 0x120   : > { %1264 = vrot.lane.b32.xlu1 %v1217_v17, %s2045_s7 }
 0x121   : > { %v734_v63 = vpop.permute.xlu0 %733  ;;  %v1435_v25 = vld [vmem:[#allocation3 + $0x38] sm:$0xff] }
 0x122   : > { %774 = vst.msk [vmem:[#allocation3 + $0x40] sm:$0xff] %vm765_vm5, %v734_v63  ;;  %v736_v26 = vpop.permute.xlu1 %735  ;;  %1983 = vmatmul.mubr.msk.bf16.gmra.mrb[12].mxu0 %vm1471_vm11, %v1435_v25  ;;  %v2583_v25 = vld [vmem:[%s2669_s2] ss:$0 sm:$0xff] }
 0x123   : > { %775 = vst.msk [vmem:[#allocation3 + $0x48] sm:$0xff] %vm765_vm5, %v736_v26  ;;  %1391 = vrot.lane.b32.xlu0 %v958_v10, %s2046_s8 }
 0x124   : > { %1393 = vrot.lane.b32.xlu1 %v1346_v24, %s2046_s8 }
 0x125   : > { %v863_v27 = vpop.permute.xlu0 %862 }
 0x126   : > { %903 = vst.msk [vmem:[#allocation3 + $0x40] sm:$0xff] %vm894_vm6, %v863_v27  ;;  %v865_v28 = vpop.permute.xlu1 %864 }
 0x127   : > { %904 = vst.msk [vmem:[#allocation3 + $0x48] sm:$0xff] %vm894_vm6, %v865_v28 }
 0x129   : > { %v992_v30 = vpop.permute.xlu0 %991 }
 0x12a   : > { %1032 = vst.msk [vmem:[#allocation3 + $0x40] sm:$0xff] %vm1023_vm7, %v992_v30  ;;  %v994_v31 = vpop.permute.xlu1 %993 }
 0x12b   : > { %1033 = vst.msk [vmem:[#allocation3 + $0x48] sm:$0xff] %vm1023_vm7, %v994_v31 }
 0x12d   : > { %v1122_v32 = vpop.permute.xlu0 %1121 }
 0x12e   : > { %1162 = vst.msk [vmem:[#allocation3 + $0x40] sm:$0xff] %vm1153_vm8, %v1122_v32  ;;  %v1124_v33 = vpop.permute.xlu1 %1123 }
 0x12f   : > { %1163 = vst.msk [vmem:[#allocation3 + $0x48] sm:$0xff] %vm1153_vm8, %v1124_v33 }
 0x131   : > { %v1251_v34 = vpop.permute.xlu0 %1250 }
 0x132   : > { %1291 = vst.msk [vmem:[#allocation3 + $0x40] sm:$0xff] %vm1282_vm9, %v1251_v34  ;;  %v1253_v35 = vpop.permute.xlu1 %1252 }
 0x133   : > { %1292 = vst.msk [vmem:[#allocation3 + $0x48] sm:$0xff] %vm1282_vm9, %v1253_v35 }
 0x135   : > { %v1380_v36 = vpop.permute.xlu0 %1379 }
 0x136   : > { %1420 = vst.msk [vmem:[#allocation3 + $0x40] sm:$0xff] %vm1411_vm10, %v1380_v36  ;;  %v480_v37 = vpop.permute.xlu1 %479 }
 0x137   : > { %518 = vst.msk [vmem:[#allocation3 + $0x50] sm:$0xff] %vm507_vm3, %v480_v37 }
 0x139   : > { %v1382_v38 = vpop.permute.xlu0 %1381 }
 0x13a   : > { %1421 = vst.msk [vmem:[#allocation3 + $0x48] sm:$0xff] %vm1411_vm10, %v1382_v38  ;;  %v482_v39 = vpop.permute.xlu1 %481 }
 0x13b   : > { %519 = vst.msk [vmem:[#allocation3 + $0x58] sm:$0xff] %vm507_vm3, %v482_v39 }
 0x13d   : > { %v609_v41 = vpop.permute.xlu0 %608  ;;  %v1436_v40 = vld [vmem:[#allocation3 + $0x40] sm:$0xff] }
 0x13e   : > { %647 = vst.msk [vmem:[#allocation3 + $0x50] sm:$0xff] %vm636_vm4, %v609_v41  ;;  %v611_v4 = vpop.permute.xlu1 %610  ;;  %1986 = vmatprep.mubr.msk.bf16.mxu1 %vm1471_vm11, %v1436_v40 }
 0x13f   : > { %648 = vst.msk [vmem:[#allocation3 + $0x58] sm:$0xff] %vm636_vm4, %v611_v4 }
 0x141   : > { %v738_v42 = vpop.permute.xlu0 %737  ;;  %v1437_v43 = vld [vmem:[#allocation3 + $0x48] sm:$0xff] }
 0x142   : > { %776 = vst.msk [vmem:[#allocation3 + $0x50] sm:$0xff] %vm765_vm5, %v738_v42  ;;  %v740_v44 = vpop.permute.xlu1 %739  ;;  %1987 = vmatmul.mubr.msk.bf16.vlgmr.msra.gmra.mrb[0].mxu1 %vm1471_vm11, %v1437_v43 }
 0x143   : > { %777 = vst.msk [vmem:[#allocation3 + $0x58] sm:$0xff] %vm765_vm5, %v740_v44 }
 0x145   : > { %v867_v45 = vpop.permute.xlu0 %866 }
 0x146   : > { %905 = vst.msk [vmem:[#allocation3 + $0x50] sm:$0xff] %vm894_vm6, %v867_v45  ;;  %v869_v46 = vpop.permute.xlu1 %868 }
 0x147   : > { %906 = vst.msk [vmem:[#allocation3 + $0x58] sm:$0xff] %vm894_vm6, %v869_v46 }
 0x149   : > { %v996_v47 = vpop.permute.xlu0 %995 }
 0x14a   : > { %1034 = vst.msk [vmem:[#allocation3 + $0x50] sm:$0xff] %vm1023_vm7, %v996_v47  ;;  %v998_v48 = vpop.permute.xlu1 %997 }
 0x14b   : > { %1035 = vst.msk [vmem:[#allocation3 + $0x58] sm:$0xff] %vm1023_vm7, %v998_v48 }
 0x14d   : > { %v1126_v49 = vpop.permute.xlu0 %1125 }
 0x14e   : > { %1164 = vst.msk [vmem:[#allocation3 + $0x50] sm:$0xff] %vm1153_vm8, %v1126_v49  ;;  %v1128_v50 = vpop.permute.xlu1 %1127 }
 0x14f   : > { %1165 = vst.msk [vmem:[#allocation3 + $0x58] sm:$0xff] %vm1153_vm8, %v1128_v50 }
 0x151   : > { %v1255_v51 = vpop.permute.xlu0 %1254 }
 0x152   : > { %1293 = vst.msk [vmem:[#allocation3 + $0x50] sm:$0xff] %vm1282_vm9, %v1255_v51  ;;  %v1257_v52 = vpop.permute.xlu1 %1256 }
 0x153   : > { %1294 = vst.msk [vmem:[#allocation3 + $0x58] sm:$0xff] %vm1282_vm9, %v1257_v52 }
 0x155   : > { %v1384_v19 = vpop.permute.xlu0 %1383 }
 0x156   : > { %1422 = vst.msk [vmem:[#allocation3 + $0x50] sm:$0xff] %vm1411_vm10, %v1384_v19  ;;  %v484_v54 = vpop.permute.xlu1 %483 }
 0x157   : > { %520 = vst.msk [vmem:[#allocation3 + $0x60] sm:$0xff] %vm507_vm3, %v484_v54 }
 0x159   : > { %v1386_v55 = vpop.permute.xlu0 %1385 }
 0x15a   : > { %1423 = vst.msk [vmem:[#allocation3 + $0x58] sm:$0xff] %vm1411_vm10, %v1386_v55  ;;  %v486_v57 = vpop.permute.xlu1 %485 }
 0x15b   : > { %521 = vst.msk [vmem:[#allocation3 + $0x68] sm:$0xff] %vm507_vm3, %v486_v57 }
 0x15d   : > { %v613_v58 = vpop.permute.xlu0 %612  ;;  %v1438_v53 = vld [vmem:[#allocation3 + $0x50] sm:$0xff] }
 0x15e   : > { %649 = vst.msk [vmem:[#allocation3 + $0x60] sm:$0xff] %vm636_vm4, %v613_v58  ;;  %v615_v59 = vpop.permute.xlu1 %614  ;;  %1990 = vmatprep.mubr.msk.bf16.mxu1 %vm1471_vm11, %v1438_v53 }
 0x15f   : > { %650 = vst.msk [vmem:[#allocation3 + $0x68] sm:$0xff] %vm636_vm4, %v615_v59 }
 0x161   : > { %v742_v61 = vpop.permute.xlu0 %741  ;;  %v1439_v62 = vld [vmem:[#allocation3 + $0x58] sm:$0xff] }
 0x162   : > { %778 = vst.msk [vmem:[#allocation3 + $0x60] sm:$0xff] %vm765_vm5, %v742_v61  ;;  %v744_v0 = vpop.permute.xlu1 %743  ;;  %1991 = vmatmul.mubr.msk.bf16.gmra.mrb[4].mxu1 %vm1471_vm11, %v1439_v62 }
 0x163   : > { %779 = vst.msk [vmem:[#allocation3 + $0x68] sm:$0xff] %vm765_vm5, %v744_v0 }
 0x165   : > { %v871_v2 = vpop.permute.xlu0 %870 }
 0x166   : > { %907 = vst.msk [vmem:[#allocation3 + $0x60] sm:$0xff] %vm894_vm6, %v871_v2  ;;  %v873_v3 = vpop.permute.xlu1 %872 }
 0x167   : > { %908 = vst.msk [vmem:[#allocation3 + $0x68] sm:$0xff] %vm894_vm6, %v873_v3 }
 0x169   : > { %v1000_v5 = vpop.permute.xlu0 %999 }
 0x16a   : > { %1036 = vst.msk [vmem:[#allocation3 + $0x60] sm:$0xff] %vm1023_vm7, %v1000_v5  ;;  %v1002_v6 = vpop.permute.xlu1 %1001 }
 0x16b   : > { %1037 = vst.msk [vmem:[#allocation3 + $0x68] sm:$0xff] %vm1023_vm7, %v1002_v6 }
 0x16d   : > { %v1130_v56 = vpop.permute.xlu0 %1129 }
 0x16e   : > { %1166 = vst.msk [vmem:[#allocation3 + $0x60] sm:$0xff] %vm1153_vm8, %v1130_v56  ;;  %v1132_v7 = vpop.permute.xlu1 %1131 }
 0x16f   : > { %1167 = vst.msk [vmem:[#allocation3 + $0x68] sm:$0xff] %vm1153_vm8, %v1132_v7 }
 0x171   : > { %v1259_v8 = vpop.permute.xlu0 %1258 }
 0x172   : > { %1295 = vst.msk [vmem:[#allocation3 + $0x60] sm:$0xff] %vm1282_vm9, %v1259_v8  ;;  %v1261_v9 = vpop.permute.xlu1 %1260 }
 0x173   : > { %1296 = vst.msk [vmem:[#allocation3 + $0x68] sm:$0xff] %vm1282_vm9, %v1261_v9 }
 0x175   : > { %v1388_v10 = vpop.permute.xlu0 %1387 }
 0x176   : > { %1424 = vst.msk [vmem:[#allocation3 + $0x60] sm:$0xff] %vm1411_vm10, %v1388_v10  ;;  %v488_v11 = vpop.permute.xlu1 %487 }
 0x177   : > { %522 = vst.msk [vmem:[#allocation3 + $0x70] sm:$0xff] %vm507_vm3, %v488_v11 }
 0x179   : > { %v1390_v22 = vpop.permute.xlu0 %1389 }
 0x17a   : > { %1425 = vst.msk [vmem:[#allocation3 + $0x68] sm:$0xff] %vm1411_vm10, %v1390_v22  ;;  %v490_v12 = vpop.permute.xlu1 %489 }
 0x17b   : > { %523 = vst.msk [vmem:[#allocation3 + $0x78] sm:$0xff] %vm507_vm3, %v490_v12 }
 0x17d   : > { %v617_v1 = vpop.permute.xlu0 %616  ;;  %v1440_v13 = vld [vmem:[#allocation3 + $0x60] sm:$0xff] }
 0x17e   : > { %651 = vst.msk [vmem:[#allocation3 + $0x70] sm:$0xff] %vm636_vm4, %v617_v1  ;;  %v619_v14 = vpop.permute.xlu1 %618  ;;  %1994 = vmatprep.mubr.msk.bf16.mxu1 %vm1471_vm11, %v1440_v13 }
 0x17f   : > { %652 = vst.msk [vmem:[#allocation3 + $0x78] sm:$0xff] %vm636_vm4, %v619_v14 }
 0x181   : > { %v746_v15 = vpop.permute.xlu0 %745  ;;  %v1441_v60 = vld [vmem:[#allocation3 + $0x68] sm:$0xff] }
 0x182   : > { %780 = vst.msk [vmem:[#allocation3 + $0x70] sm:$0xff] %vm765_vm5, %v746_v15  ;;  %v748_v16 = vpop.permute.xlu1 %747  ;;  %1995 = vmatmul.mubr.msk.bf16.gmra.mrb[8].mxu1 %vm1471_vm11, %v1441_v60 }
 0x183   : > { %781 = vst.msk [vmem:[#allocation3 + $0x78] sm:$0xff] %vm765_vm5, %v748_v16 }
 0x185   : > { %v875_v17 = vpop.permute.xlu0 %874 }
 0x186   : > { %909 = vst.msk [vmem:[#allocation3 + $0x70] sm:$0xff] %vm894_vm6, %v875_v17  ;;  %v877_v18 = vpop.permute.xlu1 %876 }
 0x187   : > { %910 = vst.msk [vmem:[#allocation3 + $0x78] sm:$0xff] %vm894_vm6, %v877_v18 }
 0x189   : > { %v1004_v20 = vpop.permute.xlu0 %1003 }
 0x18a   : > { %1038 = vst.msk [vmem:[#allocation3 + $0x70] sm:$0xff] %vm1023_vm7, %v1004_v20  ;;  %v1006_v21 = vpop.permute.xlu1 %1005 }
 0x18b   : > { %1039 = vst.msk [vmem:[#allocation3 + $0x78] sm:$0xff] %vm1023_vm7, %v1006_v21 }
 0x18d   : > { %v1134_v29 = vpop.permute.xlu0 %1133 }
 0x18e   : > { %1168 = vst.msk [vmem:[#allocation3 + $0x70] sm:$0xff] %vm1153_vm8, %v1134_v29  ;;  %v1136_v23 = vpop.permute.xlu1 %1135 }
 0x18f   : > { %1169 = vst.msk [vmem:[#allocation3 + $0x78] sm:$0xff] %vm1153_vm8, %v1136_v23 }
 0x191   : > { %v1263_v24 = vpop.permute.xlu0 %1262 }
 0x192   : > { %1297 = vst.msk [vmem:[#allocation3 + $0x70] sm:$0xff] %vm1282_vm9, %v1263_v24  ;;  %v1265_v63 = vpop.permute.xlu1 %1264 }
 0x193   : > { %1298 = vst.msk [vmem:[#allocation3 + $0x78] sm:$0xff] %vm1282_vm9, %v1265_v63 }
 0x195   : > { %v1392_v26 = vpop.permute.xlu0 %1391  ;;  %v1972_v27 = vpop.f32.mrb[0].mxu0 }
 0x196   : > { %1426 = vst.msk [vmem:[#allocation3 + $0x70] sm:$0xff] %vm1411_vm10, %v1392_v26  ;;  %v1567_v28 = vadd.f32 %v1972_v27, %v2583_v25  ;;  %v1394_v30 = vpop.permute.xlu1 %1393  ;;  %v1558_v31 = vpop.f32.mrb[1].mxu0 }
 0x197   : > { %1427 = vst.msk [vmem:[#allocation3 + $0x78] sm:$0xff] %vm1411_vm10, %v1394_v30  ;;  %v1559_v32 = vadd.f32 %v2583_v25, %v1558_v31  ;;  %v1973_v33 = vpop.f32.mrb[2].mxu0 }
 0x198   : > { %1687 = vst [vmem:[%s2590_s13 + $0x10] sm:$0xff] %v1567_v28  ;;  %v1570_v34 = vadd.f32 %v1973_v33, %v2583_v25  ;;  %v1561_v35 = vpop.f32.mrb[3].mxu0  ;;  %v1757_v41 = vmul.f32 %v1567_v28, %v1567_v28 }
 0x199   : > { %1685 = vst [vmem:[%s2590_s13] sm:$0xff] %v1559_v32  ;;  %v1562_v36 = vadd.f32 %v2583_v25, %v1561_v35  ;;  %v1755_v37 = vmul.f32 %v1559_v32, %v1559_v32 }
 0x19a   : > { %1688 = vst [vmem:[%s2590_s13 + $0x18] sm:$0xff] %v1570_v34  ;;  %v1758_v44 = vmul.f32 %v1570_v34, %v1570_v34 }
 0x19b   : > { %1686 = vst [vmem:[%s2590_s13 + $0x8] sm:$0xff] %v1562_v36  ;;  %v1717_v38 = vadd.f32 %v1562_v36, %v1559_v32  ;;  %v1756_v39 = vmul.f32 %v1562_v36, %v1562_v36 }
 0x19d   : > { %v1718_v40 = vadd.f32 %v1717_v38, %v1567_v28  ;;  %v1787_v4 = vadd.f32 %v1756_v39, %v1755_v37  ;;  %v1442_v42 = vld [vmem:[#allocation3 + $0x70] sm:$0xff] }
 0x19e   : > { %1998 = vmatprep.mubr.msk.bf16.mxu1 %vm1471_vm11, %v1442_v42  ;;  %v1443_v43 = vld [vmem:[#allocation3 + $0x78] sm:$0xff] }
 0x19f   : > { %v1788_v45 = vadd.f32 %v1787_v4, %v1757_v41  ;;  %1999 = vmatmul.mubr.msk.bf16.gmra.mrb[12].mxu1 %vm1471_vm11, %v1443_v43  ;;  %v1719_v46 = vadd.f32 %v1718_v40, %v1570_v34 }
 0x1a1   : > { %v1789_v47 = vadd.f32 %v1788_v45, %v1758_v44 }
 0x1b5   : > { %v1976_v48 = vpop.f32.mrb[4].mxu0 }
 0x1b6   : > { %v1583_v49 = vadd.f32 %v1976_v48, %v2583_v25  ;;  %v1574_v50 = vpop.f32.mrb[5].mxu0 }
 0x1b7   : > { %v1575_v51 = vadd.f32 %v2583_v25, %v1574_v50  ;;  %v1977_v52 = vpop.f32.mrb[6].mxu0 }
 0x1b8   : > { %1691 = vst [vmem:[%s2590_s13 + $0x30] sm:$0xff] %v1583_v49  ;;  %v1586_v19 = vadd.f32 %v1977_v52, %v2583_v25  ;;  %v1577_v54 = vpop.f32.mrb[7].mxu0  ;;  %v1761_v62 = vmul.f32 %v1583_v49, %v1583_v49 }
 0x1b9   : > { %1689 = vst [vmem:[%s2590_s13 + $0x20] sm:$0xff] %v1575_v51  ;;  %v1720_v55 = vadd.f32 %v1719_v46, %v1575_v51  ;;  %v1759_v57 = vmul.f32 %v1575_v51, %v1575_v51  ;;  %v1578_v58 = vadd.f32 %v2583_v25, %v1577_v54 }
 0x1ba   : > { %1692 = vst [vmem:[%s2590_s13 + $0x38] sm:$0xff] %v1586_v19  ;;  %v1762_v3 = vmul.f32 %v1586_v19, %v1586_v19 }
 0x1bb   : > { %v1790_v53 = vadd.f32 %v1789_v47, %v1759_v57  ;;  %1690 = vst [vmem:[%s2590_s13 + $0x28] sm:$0xff] %v1578_v58  ;;  %v1721_v59 = vadd.f32 %v1720_v55, %v1578_v58  ;;  %v1760_v61 = vmul.f32 %v1578_v58, %v1578_v58 }
 0x1bd   : > { %v1722_v0 = vadd.f32 %v1721_v59, %v1583_v49  ;;  %v1791_v2 = vadd.f32 %v1790_v53, %v1760_v61 }
 0x1bf   : > { %v1792_v5 = vadd.f32 %v1791_v2, %v1761_v62  ;;  %v1723_v6 = vadd.f32 %v1722_v0, %v1586_v19 }
 0x1c1   : > { %v1793_v56 = vadd.f32 %v1792_v5, %v1762_v3 }
 0x1d5   : > { %v1980_v7 = vpop.f32.mrb[8].mxu0 }
 0x1d6   : > { %v1599_v8 = vadd.f32 %v1980_v7, %v2583_v25  ;;  %v1590_v9 = vpop.f32.mrb[9].mxu0 }
 0x1d7   : > { %v1591_v10 = vadd.f32 %v2583_v25, %v1590_v9  ;;  %v1981_v11 = vpop.f32.mrb[10].mxu0 }
 0x1d8   : > { %1695 = vst [vmem:[%s2590_s13 + $0x50] sm:$0xff] %v1599_v8  ;;  %v1602_v22 = vadd.f32 %v1981_v11, %v2583_v25  ;;  %v1593_v12 = vpop.f32.mrb[11].mxu0  ;;  %v1765_v17 = vmul.f32 %v1599_v8, %v1599_v8 }
 0x1d9   : > { %1693 = vst [vmem:[%s2590_s13 + $0x40] sm:$0xff] %v1591_v10  ;;  %v1724_v1 = vadd.f32 %v1723_v6, %v1591_v10  ;;  %v1763_v13 = vmul.f32 %v1591_v10, %v1591_v10  ;;  %v1594_v14 = vadd.f32 %v2583_v25, %v1593_v12 }
 0x1da   : > { %1696 = vst [vmem:[%s2590_s13 + $0x58] sm:$0xff] %v1602_v22  ;;  %v1766_v21 = vmul.f32 %v1602_v22, %v1602_v22 }
 0x1db   : > { %v1794_v15 = vadd.f32 %v1793_v56, %v1763_v13  ;;  %1694 = vst [vmem:[%s2590_s13 + $0x48] sm:$0xff] %v1594_v14  ;;  %v1725_v60 = vadd.f32 %v1724_v1, %v1594_v14  ;;  %v1764_v16 = vmul.f32 %v1594_v14, %v1594_v14 }
 0x1dd   : > { %v1726_v18 = vadd.f32 %v1725_v60, %v1599_v8  ;;  %v1795_v20 = vadd.f32 %v1794_v15, %v1764_v16 }
 0x1df   : > { %v1796_v29 = vadd.f32 %v1795_v20, %v1765_v17  ;;  %v1727_v23 = vadd.f32 %v1726_v18, %v1602_v22 }
 0x1e1   : > { %v1797_v24 = vadd.f32 %v1796_v29, %v1766_v21 }
 0x1f5   : > { %v1984_v63 = vpop.f32.mrb[12].mxu0 }
 0x1f6   : > { %v1615_v26 = vadd.f32 %v1984_v63, %v2583_v25  ;;  %v1606_v27 = vpop.f32.mrb[13].mxu0 }
 0x1f7   : > { %v1607_v28 = vadd.f32 %v2583_v25, %v1606_v27  ;;  %v1985_v30 = vpop.f32.mrb[14].mxu0 }
 0x1f8   : > { %1699 = vst [vmem:[%s2590_s13 + $0x70] sm:$0xff] %v1615_v26  ;;  %v1618_v31 = vadd.f32 %v1985_v30, %v2583_v25  ;;  %v1609_v32 = vpop.f32.mrb[15].mxu0  ;;  %v1769_v39 = vmul.f32 %v1615_v26, %v1615_v26 }
 0x1f9   : > { %1697 = vst [vmem:[%s2590_s13 + $0x60] sm:$0xff] %v1607_v28  ;;  %v1728_v33 = vadd.f32 %v1727_v23, %v1607_v28  ;;  %v1767_v34 = vmul.f32 %v1607_v28, %v1607_v28  ;;  %v1610_v35 = vadd.f32 %v2583_v25, %v1609_v32 }
 0x1fa   : > { %1700 = vst [vmem:[%s2590_s13 + $0x78] sm:$0xff] %v1618_v31  ;;  %v1770_v4 = vmul.f32 %v1618_v31, %v1618_v31 }
 0x1fb   : > { %v1798_v36 = vadd.f32 %v1797_v24, %v1767_v34  ;;  %1698 = vst [vmem:[%s2590_s13 + $0x68] sm:$0xff] %v1610_v35  ;;  %v1729_v37 = vadd.f32 %v1728_v33, %v1610_v35  ;;  %v1768_v38 = vmul.f32 %v1610_v35, %v1610_v35 }
 0x1fd   : > { %v1730_v41 = vadd.f32 %v1729_v37, %v1615_v26  ;;  %v1799_v40 = vadd.f32 %v1798_v36, %v1768_v38 }
 0x1ff   : > { %v1800_v42 = vadd.f32 %v1799_v40, %v1769_v39  ;;  %v1731_v43 = vadd.f32 %v1730_v41, %v1618_v31 }
 0x201   : > { %v1801_v44 = vadd.f32 %v1800_v42, %v1770_v4 }
 0x215   : > { %v1988_v45 = vpop.f32.mrb[0].mxu1 }
 0x216   : > { %v1631_v46 = vadd.f32 %v1988_v45, %v2583_v25  ;;  %v1622_v47 = vpop.f32.mrb[1].mxu1 }
 0x217   : > { %v1623_v48 = vadd.f32 %v2583_v25, %v1622_v47  ;;  %v1989_v49 = vpop.f32.mrb[2].mxu1 }
 0x218   : > { %1703 = vst [vmem:[%s2590_s13 + $0x90] sm:$0xff] %v1631_v46  ;;  %v1634_v50 = vadd.f32 %v1989_v49, %v2583_v25  ;;  %v1625_v51 = vpop.f32.mrb[3].mxu1  ;;  %v1773_v53 = vmul.f32 %v1631_v46, %v1631_v46 }
 0x219   : > { %1701 = vst [vmem:[%s2590_s13 + $0x80] sm:$0xff] %v1623_v48  ;;  %v1732_v52 = vadd.f32 %v1731_v43, %v1623_v48  ;;  %v1771_v19 = vmul.f32 %v1623_v48, %v1623_v48  ;;  %v1626_v54 = vadd.f32 %v2583_v25, %v1625_v51 }
 0x21a   : > { %1704 = vst [vmem:[%s2590_s13 + $0x98] sm:$0xff] %v1634_v50  ;;  %v1774_v62 = vmul.f32 %v1634_v50, %v1634_v50 }
 0x21b   : > { %v1802_v55 = vadd.f32 %v1801_v44, %v1771_v19  ;;  %1702 = vst [vmem:[%s2590_s13 + $0x88] sm:$0xff] %v1626_v54  ;;  %v1733_v57 = vadd.f32 %v1732_v52, %v1626_v54  ;;  %v1772_v58 = vmul.f32 %v1626_v54, %v1626_v54 }
 0x21d   : > { %v1734_v59 = vadd.f32 %v1733_v57, %v1631_v46  ;;  %v1803_v61 = vadd.f32 %v1802_v55, %v1772_v58 }
 0x21f   : > { %v1804_v0 = vadd.f32 %v1803_v61, %v1773_v53  ;;  %v1735_v2 = vadd.f32 %v1734_v59, %v1634_v50 }
 0x221   : > { %v1805_v3 = vadd.f32 %v1804_v0, %v1774_v62 }
 0x235   : > { %v1992_v5 = vpop.f32.mrb[4].mxu1 }
 0x236   : > { %v1647_v6 = vadd.f32 %v1992_v5, %v2583_v25  ;;  %v1638_v56 = vpop.f32.mrb[5].mxu1 }
 0x237   : > { %v1639_v7 = vadd.f32 %v2583_v25, %v1638_v56  ;;  %v1993_v8 = vpop.f32.mrb[6].mxu1 }
 0x238   : > { %1707 = vst [vmem:[%s2590_s13 + $0xb0] sm:$0xff] %v1647_v6  ;;  %v1650_v9 = vadd.f32 %v1993_v8, %v2583_v25  ;;  %v1641_v10 = vpop.f32.mrb[7].mxu1  ;;  %v1777_v15 = vmul.f32 %v1647_v6, %v1647_v6 }
 0x239   : > { %1705 = vst [vmem:[%s2590_s13 + $0xa0] sm:$0xff] %v1639_v7  ;;  %v1736_v11 = vadd.f32 %v1735_v2, %v1639_v7  ;;  %v1775_v22 = vmul.f32 %v1639_v7, %v1639_v7  ;;  %v1642_v12 = vadd.f32 %v2583_v25, %v1641_v10 }
 0x23a   : > { %1708 = vst [vmem:[%s2590_s13 + $0xb8] sm:$0xff] %v1650_v9  ;;  %v1778_v17 = vmul.f32 %v1650_v9, %v1650_v9 }
 0x23b   : > { %v1806_v1 = vadd.f32 %v1805_v3, %v1775_v22  ;;  %1706 = vst [vmem:[%s2590_s13 + $0xa8] sm:$0xff] %v1642_v12  ;;  %v1737_v13 = vadd.f32 %v1736_v11, %v1642_v12  ;;  %v1776_v14 = vmul.f32 %v1642_v12, %v1642_v12 }
 0x23d   : > { %v1738_v60 = vadd.f32 %v1737_v13, %v1647_v6  ;;  %v1807_v16 = vadd.f32 %v1806_v1, %v1776_v14 }
 0x23f   : > { %v1808_v18 = vadd.f32 %v1807_v16, %v1777_v15  ;;  %v1739_v20 = vadd.f32 %v1738_v60, %v1650_v9 }
 0x241   : > { %v1809_v21 = vadd.f32 %v1808_v18, %v1778_v17 }
 0x255   : > { %v1996_v29 = vpop.f32.mrb[8].mxu1 }
 0x256   : > { %v1663_v23 = vadd.f32 %v1996_v29, %v2583_v25  ;;  %v1654_v24 = vpop.f32.mrb[9].mxu1 }
 0x257   : > { %v1655_v63 = vadd.f32 %v2583_v25, %v1654_v24  ;;  %v1997_v26 = vpop.f32.mrb[10].mxu1 }
 0x258   : > { %1711 = vst [vmem:[%s2590_s13 + $0xd0] sm:$0xff] %v1663_v23  ;;  %v1666_v27 = vadd.f32 %v1997_v26, %v2583_v25  ;;  %v1657_v28 = vpop.f32.mrb[11].mxu1  ;;  %v1781_v36 = vmul.f32 %v1663_v23, %v1663_v23 }
 0x259   : > { %1709 = vst [vmem:[%s2590_s13 + $0xc0] sm:$0xff] %v1655_v63  ;;  %v1740_v30 = vadd.f32 %v1739_v20, %v1655_v63  ;;  %v1779_v31 = vmul.f32 %v1655_v63, %v1655_v63  ;;  %v1658_v32 = vadd.f32 %v2583_v25, %v1657_v28 }
 0x25a   : > { %1712 = vst [vmem:[%s2590_s13 + $0xd8] sm:$0xff] %v1666_v27  ;;  %v1782_v39 = vmul.f32 %v1666_v27, %v1666_v27 }
 0x25b   : > { %v1810_v33 = vadd.f32 %v1809_v21, %v1779_v31  ;;  %1710 = vst [vmem:[%s2590_s13 + $0xc8] sm:$0xff] %v1658_v32  ;;  %v1741_v34 = vadd.f32 %v1740_v30, %v1658_v32  ;;  %v1780_v35 = vmul.f32 %v1658_v32, %v1658_v32 }
 0x25d   : > { %v1742_v37 = vadd.f32 %v1741_v34, %v1663_v23  ;;  %v1811_v38 = vadd.f32 %v1810_v33, %v1780_v35 }
 0x25f   : > { %v1812_v41 = vadd.f32 %v1811_v38, %v1781_v36  ;;  %v1743_v40 = vadd.f32 %v1742_v37, %v1666_v27 }
 0x261   : > { %v1813_v4 = vadd.f32 %v1812_v41, %v1782_v39 }
 0x272   : > { %v2000_v42 = vpop.f32.mrb[12].mxu1 }
 0x273   : > { %v1679_v43 = vadd.f32 %v2000_v42, %v2583_v25  ;;  %v1670_v44 = vpop.f32.mrb[13].mxu1 }
 0x274   : > { %v1671_v45 = vadd.f32 %v2583_v25, %v1670_v44  ;;  %v2001_v46 = vpop.f32.mrb[14].mxu1 }
 0x275   : > { %1715 = vst [vmem:[%s2590_s13 + $0xf0] sm:$0xff] %v1679_v43  ;;  %v1682_v47 = vadd.f32 %v2001_v46, %v2583_v25  ;;  %v1673_v48 = vpop.f32.mrb[15].mxu1  ;;  %v1785_v55 = vmul.f32 %v1679_v43, %v1679_v43 }
 0x276   : > { %1713 = vst [vmem:[%s2590_s13 + $0xe0] sm:$0xff] %v1671_v45  ;;  %v1744_v49 = vadd.f32 %v1743_v40, %v1671_v45  ;;  %v1783_v50 = vmul.f32 %v1671_v45, %v1671_v45  ;;  %v1674_v51 = vadd.f32 %v2583_v25, %v1673_v48 }
 0x277   : > { %1716 = vst [vmem:[%s2590_s13 + $0xf8] sm:$0xff] %v1682_v47  ;;  %v1786_v53 = vmul.f32 %v1682_v47, %v1682_v47 }
 0x278   : > { %v1814_v52 = vadd.f32 %v1813_v4, %v1783_v50  ;;  %1714 = vst [vmem:[%s2590_s13 + $0xe8] sm:$0xff] %v1674_v51  ;;  %v1745_v19 = vadd.f32 %v1744_v49, %v1674_v51  ;;  %v1784_v54 = vmul.f32 %v1674_v51, %v1674_v51 }
 0x27a   : > { %v1746_v57 = vadd.f32 %v1745_v19, %v1679_v43  ;;  %v1815_v58 = vadd.f32 %v1814_v52, %v1784_v54 }
 0x27c   : > { %v1747_v59 = vadd.f32 %v1746_v57, %v1682_v47  ;;  %v1816_v61 = vadd.f32 %v1815_v58, %v1785_v55 }
 0x27e   : > { %v1748_v62 = vrot.slane %v1747_v59, 4  ;;  %v1817_v0 = vadd.f32 %v1816_v61, %v1786_v53 }
 0x280   : > { %v1749_v2 = vadd.f32 %v1748_v62, %v1747_v59  ;;  %v1818_v3 = vrot.slane %v1817_v0, 4 }
 0x282   : > { %v1750_v5 = vrot.slane %v1749_v2, 2  ;;  %v1819_v6 = vadd.f32 %v1818_v3, %v1817_v0 }
 0x284   : > { %v1751_v25 = vadd.f32 %v1750_v5, %v1749_v2  ;;  %v1820_v56 = vrot.slane %v1819_v6, 2 }
 0x286   : > { %v1752_v7 = vrot.slane %v1751_v25, 1  ;;  %v1821_v8 = vadd.f32 %v1820_v56, %v1819_v6 }
 0x288   : > { %v1753_v9 = vadd.f32 %v1752_v7, %v1751_v25  ;;  %v1822_v10 = vrot.slane %v1821_v8, 1 }
 0x28a   : > { %1754 = vst [vmem:[%s208_s19] sm:$0x1] %v1753_v9  ;;  %v1823_v11 = vadd.f32 %v1822_v10, %v1821_v8 }
 0x28c   : > { %1824 = vst [vmem:[%s208_s19 + $0x1] sm:$0x1] %v1823_v11 }
 0x28d PF: > { %s15_s15 = sadd.s32 1, %s2036_s15  }
 0x28e   : > { %p12_p4 = scmp.ge.s32.totalorder %s15_s15, 4  }
 0x290   :  { %14 = sbr.rel (!%p12_p4) target bundleno = 1 (0x1), region = 76 }

// kernel: conv_block_forward.4
= control target key start
LH: loop header
LB: loop body
LE: loop exit
PB: predicated region body
PF: predicated region fallthrough
CT: control target
= control target key end

     0   :  { %s3842_s30 = smov 0   ;;  %s5032_s0 = inlined_call_operand.vmem [shape: f32[2,256,128], index: 0, kind: input, shape index: {}]   ;;  %s5033_s1 = inlined_call_operand.vmem [shape: f32[1,128], index: 1, kind: input, shape index: {}]   ;;  %s5034_s2 = inlined_call_operand.vmem [shape: f32[1,128], index: 2, kind: input, shape index: {}]   ;;  %s5035_s3 = inlined_call_operand.vmem [shape: f32[2,1,32], index: 3, kind: input, shape index: {}]   ;;  %s5036_s4 = inlined_call_operand.vmem [shape: f32[32,128], index: 4, kind: input, shape index: {}]   ;;  %s5037_s5 = inlined_call_operand.vmem [shape: f32[1,128], index: 5, kind: input, shape index: {}]   ;;  %s5038_s6 = inlined_call_operand.vmem [shape: bf16[1152,128], index: 6, kind: input, shape index: {}]   ;;  %s5039_s7 = inlined_call_operand.vmem [shape: f32[1,128], index: 7, kind: input, shape index: {}]   ;;  %s5040_s8 = inlined_call_operand.vmem [shape: f32[2,256,128], index: 8, kind: output, shape index: {0}]   ;;  %s5041_s9 = inlined_call_operand.vmem [shape: f32[2,2,128], index: 9, kind: output, shape index: {1}]  }
   0x1 LB: > { %s3049_s10 = sadd.s32 4294967295, %s3787_s30   ;;  %p3053_p0 = scmp.ge.s32.totalorder %s3787_s30, 1  ;;  %s3787_s30 = sphi %s3842_s30, %s20_s30  }
   0x2   : > { %p298_p1 = scmp.lt.s32.totalorder %s3787_s30, 3 }
   0x4   : > { %p299_p2 = pnand %p3053_p0, %p298_p1 }
   0x5   : > { %v3853_v0 = vld [vmem:[%s5036_s4] sm:$0xff] (!%p299_p2)  ;;  %v3858_v1 = vld [vmem:[%s5036_s4 + $0x8] sm:$0xff] (!%p299_p2)  ;;  %v3863_v2 = vld [vmem:[%s5036_s4 + $0x10] sm:$0xff] (!%p299_p2)  ;;  %v3789_v3 = vmov (!%p299_p2), 0.0|0.0   ;;  %vm3790_vm0 = vmmov (!%p299_p2), 0   ;;  %v3791_v6 = vmov (!%p299_p2), 0.0   ;;  %v582_v54 = vlaneseq (!%p299_p2) }
   0x6   : > { %302 = sbr.rel (%p299_p2) target bundleno = 802 (0x322), region = 52  ;;  %3675 = vmatprep.subr.bf16.mxu0 (!%p299_p2), %v3789_v3  ;;  %v3676_v4 = vpack.c.bf16 (!%p299_p2), %v3858_v1, %v3853_v0  ;;  %v3871_v5 = vld [vmem:[%s5036_s4 + $0x18] sm:$0xff] (!%p299_p2)  ;;  %3624 = vmatprep.mubr.msk.f32.mxu0 (!%p299_p2), %vm3790_vm0, %v3791_v6  ;;  %618 = vst [vmem:[#allocation2] sm:$0xff] (!%p299_p2), %v3791_v6  ;;  %619 = vst [vmem:[#allocation2 + $0x8] sm:$0xff] (!%p299_p2), %v3791_v6  ;;  %p341_p3 = scmp.lt.s32.totalorder (!%p299_p2), %s3049_s10, 1  ;;  %v3708_v7 = vld [vmem:[%s5038_s6 + $0x40] sm:$0xff] (!%p299_p2)  }
   0x7   : > { %620 = vst [vmem:[#allocation2 + $0x10] sm:$0x3] (!%p299_p2), %v3791_v6  ;;  %621 = vst [vmem:[#allocation2 + $0x18] sm:$0xff] (!%p299_p2), %v3791_v6  ;;  %v3679_v8 = vpack.c.bf16 (!%p299_p2), %v3871_v5, %v3863_v2  ;;  %3144 = vmatprep.subr.bf16.mxu1 (!%p299_p2), %v3708_v7  ;;  %v3709_v9 = vld [vmem:[%s5038_s6] sm:$0xff] (!%p299_p2)   ;;  %v3710_v10 = vld [vmem:[%s5038_s6 + $0x48] sm:$0xff] (!%p299_p2)   ;;  %vm507_vm1 = vcmask (!%p299_p2), 261120  }
   0x8   : > { %622 = vst [vmem:[#allocation2 + $0x20] sm:$0xff] (!%p299_p2), %v3791_v6  ;;  %623 = vst [vmem:[#allocation2 + $0x28] sm:$0x3] (!%p299_p2), %v3791_v6  ;;  %3677 = vmatpush3.bf16.msra.mxu0 (!%p299_p2), %v3676_v4  ;;  %3145 = vmatpush3.bf16.msra.mxu1 (!%p299_p2), %v3709_v9  ;;  %v3711_v11 = vld [vmem:[%s5038_s6 + $0x8] sm:$0xff] (!%p299_p2)   ;;  %v3712_v13 = vld [vmem:[%s5038_s6 + $0xc0] sm:$0xff] (!%p299_p2)   ;;  %v4030_v60 = vshrl.u32 (!%p299_p2), %v582_v54, 7 }
   0x9   : > { %624 = vst [vmem:[#allocation2 + $0x30] sm:$0xff] (!%p299_p2), %v3791_v6  ;;  %625 = vst [vmem:[#allocation2 + $0x38] sm:$0xff] (!%p299_p2), %v3791_v6  ;;  %3678 = vmatprep.subr.bf16.mxu0 (!%p299_p2), %v3789_v3  ;;  %3146 = vmatprep.subr.bf16.mxu1 (!%p299_p2), %v3710_v10  ;;  %v3713_v14 = vld [vmem:[%s5038_s6 + $0x50] sm:$0xff] (!%p299_p2)   ;;  %v3714_v15 = vld [vmem:[%s5038_s6 + $0x80] sm:$0xff] (!%p299_p2)  }
   0xa   : > { %626 = vst [vmem:[#allocation2 + $0x40] sm:$0x3] (!%p299_p2), %v3791_v6  ;;  %627 = vst [vmem:[#allocation2 + $0x48] sm:$0xff] (!%p299_p2), %v3791_v6  ;;  %v3715_v16 = vld [vmem:[%s5038_s6 + $0x10] sm:$0xff] (!%p299_p2)   ;;  %v3716_v17 = vld [vmem:[%s5038_s6 + $0xc8] sm:$0xff] (!%p299_p2)  }
   0xb   : > { %628 = vst [vmem:[#allocation2 + $0x50] sm:$0xff] (!%p299_p2), %v3791_v6  ;;  %629 = vst [vmem:[#allocation2 + $0x58] sm:$0x3] (!%p299_p2), %v3791_v6  ;;  %v3717_v18 = vld [vmem:[%s5038_s6 + $0x58] sm:$0xff] (!%p299_p2)   ;;  %v3718_v19 = vld [vmem:[%s5038_s6 + $0x88] sm:$0xff] (!%p299_p2)  }
   0xc   : > { %630 = vst [vmem:[#allocation2 + $0x60] sm:$0xff] (!%p299_p2), %v3791_v6  ;;  %631 = vst [vmem:[#allocation2 + $0x68] sm:$0xff] (!%p299_p2), %v3791_v6  ;;  %3680 = vmatpush3.bf16.msra.mxu0 (!%p299_p2), %v3679_v8  ;;  %3147 = vmatpush3.bf16.msra.mxu1 (!%p299_p2), %v3711_v11  ;;  %v3719_v20 = vld [vmem:[%s5038_s6 + $0x18] sm:$0xff] (!%p299_p2)   ;;  %v3720_v21 = vld [vmem:[%s5038_s6 + $0xd0] sm:$0xff] (!%p299_p2)  }
   0xd   : > { %632 = vst [vmem:[#allocation2 + $0x70] sm:$0x3] %v3791_v6  ;;  %633 = vst [vmem:[#allocation2 + $0x78] sm:$0xff] %v3791_v6  ;;  %s5053_s10 = smov (!%p341_p3, %s3049_s10), 1  ;;  %3256 = vmatprep.subr.bf16.mxu0 %v3712_v13  ;;  %3148 = vmatprep.subr.bf16.mxu1 %v3713_v14  ;;  %v3721_v22 = vld [vmem:[%s5038_s6 + $0x60] sm:$0xff]   ;;  %v3722_v23 = vld [vmem:[%s5038_s6 + $0x90] sm:$0xff]  }
   0xe   : > { %634 = vst [vmem:[#allocation2 + $0x80] sm:$0xff] %v3791_v6  ;;  %635 = vst [vmem:[#allocation2 + $0x88] sm:$0x3] %v3791_v6  ;;  %s348_s27 = scalar_lea.vmem %s5035_s3, %s5053_s10  ;;  %v3723_v24 = vld [vmem:[%s5038_s6 + $0x20] sm:$0xff]   ;;  %v3724_v25 = vld [vmem:[%s5038_s6 + $0xd8] sm:$0xff]   ;;  %s3137_s28 = sshll.u32 %s5053_s10, 8 }
   0xf   : > { %636 = vst [vmem:[#allocation2 + $0x90] sm:$0xff] %v3791_v6  ;;  %637 = vst [vmem:[#allocation2 + $0x98] sm:$0xff] %v3791_v6  ;;  %v501_v12 = vld [vmem:[%s348_s27] sm:$0x1]  ;;  %v3725_v26 = vld [vmem:[%s5038_s6 + $0x68] sm:$0xff]   ;;  %s4016_s12 = scalar_lea.vmem %s5032_s0, %s3137_s28  ;;  %v584_v14 = vsub.s32 0, %v4030_v60  ;;  %s4847_s13 = scalar_lea.vmem %s5040_s8, %s3137_s28 }
  0x10   : > { %638 = vst [vmem:[#allocation2 + $0xa0] sm:$0x3] %v3791_v6  ;;  %639 = vst [vmem:[#allocation2 + $0xa8] sm:$0xff] %v3791_v6  ;;  %3625 = vmatmul.mubr.msk.f32.vlgmr.msra.gmra.mrb[0].mxu0 %vm507_vm1, %v501_v12  ;;  %3149 = vmatpush3.bf16.msra.mxu1 %v3715_v16  ;;  %v3727_v27 = vld [vmem:[%s5038_s6 + $0x28] sm:$0xff]   ;;  %v3726_v28 = vld [vmem:[%s5038_s6 + $0x98] sm:$0xff]   ;;  %s3058_s28 = sshll.u32 %s5053_s10, 1 }
  0x11   : > { %640 = vst [vmem:[#allocation2 + $0xb0] sm:$0xff] %v3791_v6  ;;  %641 = vst [vmem:[#allocation2 + $0xb8] sm:$0x3] %v3791_v6  ;;  %3257 = vmatpush3.bf16.msra.mxu0 %v3714_v15  ;;  %3150 = vmatprep.subr.bf16.mxu1 %v3717_v18  ;;  %v3729_v29 = vld [vmem:[%s5038_s6 + $0x70] sm:$0xff]   ;;  %v3728_v31 = vld [vmem:[%s5038_s6 + $0xe0] sm:$0xff]   ;;  %s357_s16 = scalar_lea.vmem %s5041_s9, %s3058_s28 }
  0x12   : > { %642 = vst [vmem:[#allocation2 + $0xc0] sm:$0xff] %v3791_v6  ;;  %643 = vst [vmem:[#allocation2 + $0xc8] sm:$0xff] %v3791_v6  ;;  %3258 = vmatprep.subr.bf16.mxu0 %v3716_v17  ;;  %v3731_v30 = vld [vmem:[%s5038_s6 + $0x30] sm:$0xff]   ;;  %v3730_v32 = vld [vmem:[%s5038_s6 + $0xa0] sm:$0xff]  }
  0x13   : > { %644 = vst [vmem:[#allocation2 + $0xd0] sm:$0x3] %v3791_v6  ;;  %645 = vst [vmem:[#allocation2 + $0xd8] sm:$0xff] %v3791_v6  ;;  %v3733_v33 = vld [vmem:[%s5038_s6 + $0x78] sm:$0xff]   ;;  %v3732_v34 = vld [vmem:[%s5038_s6 + $0xe8] sm:$0xff]  }
  0x14   : > { %646 = vst [vmem:[#allocation2 + $0xe0] sm:$0xff] %v3791_v6  ;;  %647 = vst [vmem:[#allocation2 + $0xe8] sm:$0x3] %v3791_v6  ;;  %3151 = vmatpush3.bf16.msra.mxu1 %v3719_v20  ;;  %v3734_v35 = vld [vmem:[%s5038_s6 + $0xa8] sm:$0xff]   ;;  %v3735_v36 = vld [vmem:[%s5038_s6 + $0x38] sm:$0xff]  }
  0x15   : > { %648 = vst [vmem:[#allocation2 + $0xf0] sm:$0xff] %v3791_v6  ;;  %649 = vst [vmem:[#allocation2 + $0xf8] sm:$0xff] %v3791_v6  ;;  %3259 = vmatpush3.bf16.msra.mxu0 %v3718_v19  ;;  %3152 = vmatprep.subr.bf16.mxu1 %v3721_v22  ;;  %v769_v37 = vld [vmem:[#allocation2 + $0x1] sm:$0xff]  ;;  %v770_v38 = vld [vmem:[#allocation2 + $0x9] sm:$0xff] }
  0x16   : > { %650 = vst [vmem:[#allocation2 + $0x100] sm:$0x3] %v3791_v6  ;;  %651 = vst [vmem:[#allocation2 + $0x108] sm:$0xff] %v3791_v6  ;;  %3260 = vmatprep.subr.bf16.mxu0 %v3720_v21  ;;  %v3736_v39 = vld [vmem:[%s5038_s6 + $0xf0] sm:$0xff]   ;;  %v801_v40 = vpack.c.bf16 %v770_v38, %v769_v37  ;;  %v3738_v42 = vld [vmem:[%s5038_s6 + $0xf8] sm:$0xff]  }
  0x17   : > { %652 = vst [vmem:[#allocation2 + $0x110] sm:$0xff] %v3791_v6  ;;  %653 = vst [vmem:[#allocation2 + $0x118] sm:$0x3] %v3791_v6  ;;  %v3737_v41 = vld [vmem:[%s5038_s6 + $0xb0] sm:$0xff]   ;;  %v3739_v43 = vld [vmem:[%s5038_s6 + $0xb8] sm:$0xff]  }
  0x18   : > { %654 = vst [vmem:[#allocation2 + $0x120] sm:$0xff] %v3791_v6  ;;  %655 = vst [vmem:[#allocation2 + $0x128] sm:$0xff] %v3791_v6  ;;  %3153 = vmatpush3.bf16.msra.mxu1 %v3723_v24  ;;  %2041 = vmatprep.mubr.bf16.mxu1 %v801_v40  ;;  %v3740_v44 = vld [vmem:[%s5038_s6 + $0x1c0] sm:$0xff]   ;;  %v3748_v47 = vld [vmem:[%s5038_s6 + $0x148] sm:$0xff]  }
  0x19   : > { %656 = vst [vmem:[#allocation2 + $0x130] sm:$0x3] %v3791_v6  ;;  %657 = vst [vmem:[#allocation2 + $0x138] sm:$0xff] %v3791_v6  ;;  %3261 = vmatpush3.bf16.msra.mxu0 %v3722_v23  ;;  %3154 = vmatprep.subr.bf16.mxu1 %v3725_v26  ;;  %v3744_v45 = vld [vmem:[%s5038_s6 + $0x140] sm:$0xff]   ;;  %v3749_v48 = vld [vmem:[%s5038_s6 + $0x108] sm:$0xff]  }
  0x1a   : > { %658 = vst [vmem:[#allocation2 + $0x140] sm:$0xff] %v3791_v6  ;;  %659 = vst [vmem:[#allocation2 + $0x148] sm:$0x3] %v3791_v6  ;;  %3262 = vmatprep.subr.bf16.mxu0 %v3724_v25  ;;  %v3745_v46 = vld [vmem:[%s5038_s6 + $0x100] sm:$0xff]   ;;  %v3752_v49 = vld [vmem:[%s5038_s6 + $0x150] sm:$0xff]  }
  0x1b   : > { %660 = vst [vmem:[#allocation2 + $0x150] sm:$0xff] %v3791_v6  ;;  %661 = vst [vmem:[#allocation2 + $0x158] sm:$0xff] %v3791_v6  ;;  %v3753_v50 = vld [vmem:[%s5038_s6 + $0x110] sm:$0xff]   ;;  %v3756_v51 = vld [vmem:[%s5038_s6 + $0x158] sm:$0xff]  }
  0x1c   : > { %662 = vst [vmem:[#allocation2 + $0x160] sm:$0x3] %v3791_v6  ;;  %663 = vst [vmem:[#allocation2 + $0x168] sm:$0xff] %v3791_v6  ;;  %3155 = vmatpush3.bf16.msra.mxu1 %v3727_v27  ;;  %v3757_v52 = vld [vmem:[%s5038_s6 + $0x118] sm:$0xff]   ;;  %v3760_v53 = vld [vmem:[%s5038_s6 + $0x160] sm:$0xff]  }
  0x1d   : > { %664 = vst [vmem:[#allocation2 + $0x170] sm:$0xff] %v3791_v6  ;;  %665 = vst [vmem:[#allocation2 + $0x178] sm:$0x3] %v3791_v6  ;;  %3263 = vmatpush3.bf16.msra.mxu0 %v3726_v28  ;;  %3156 = vmatprep.subr.bf16.mxu1 %v3729_v29  ;;  %v359_v55 = vld [vmem:[%s4016_s12] sm:$0xff]  ;;  %v360_v56 = vld [vmem:[%s4016_s12 + $0x8] sm:$0xff] }
  0x1e   : > { %666 = vst [vmem:[#allocation2 + $0x180] sm:$0xff] %v3791_v6  ;;  %667 = vst [vmem:[#allocation2 + $0x188] sm:$0xff] %v3791_v6  ;;  %3264 = vmatprep.subr.bf16.mxu0 %v3728_v31  ;;  %v4026_v57 = vld [vmem:[%s5033_s1] ss:$0 sm:$0xff]  ;;  %v361_v58 = vld [vmem:[%s4016_s12 + $0x10] sm:$0xff] }
  0x1f   : > { %668 = vst [vmem:[#allocation2 + $0x190] sm:$0x3] %v3791_v6  ;;  %669 = vst [vmem:[#allocation2 + $0x198] sm:$0xff] %v3791_v6  ;;  %v362_v59 = vld [vmem:[%s4016_s12 + $0x18] sm:$0xff]  ;;  %v398_v61 = vmul.f32 %v4026_v57, %v359_v55  ;;  %v399_v62 = vmul.f32 %v4026_v57, %v360_v56  ;;  %v363_v63 = vld [vmem:[%s4016_s12 + $0x20] sm:$0xff]  ;;  %v400_v2 = vmul.f32 %v4026_v57, %v361_v58 }
  0x20   : > { %670 = vst [vmem:[#allocation2 + $0x1a0] sm:$0xff] %v3791_v6  ;;  %671 = vst [vmem:[#allocation2 + $0x1a8] sm:$0x3] %v3791_v6  ;;  %3157 = vmatpush3.bf16.msra.mxu1 %v3731_v30  ;;  %v364_v0 = vld [vmem:[%s4016_s12 + $0x28] sm:$0xff]  ;;  %v4039_v1 = vld [vmem:[%s5034_s2] ss:$0 sm:$0xff]  ;;  %v401_v5 = vmul.f32 %v4026_v57, %v362_v59  ;;  %v402_v9 = vmul.f32 %v4026_v57, %v363_v63 }
  0x21   : > { %3265 = vmatpush3.bf16.msra.mxu0 %v3730_v32  ;;  %3158 = vmatprep.subr.bf16.mxu1 %v3733_v33  ;;  %v3761_v4 = vld [vmem:[%s5038_s6 + $0x120] sm:$0xff]   ;;  %v366_v6 = vld [vmem:[%s4016_s12 + $0x38] sm:$0xff]  ;;  %v368_v8 = vld [vmem:[%s4016_s12 + $0x48] sm:$0xff]  ;;  %v403_v10 = vmul.f32 %v4026_v57, %v364_v0  ;;  %v4057_v15 = vadd.f32 %v4039_v1, %v398_v61  ;;  %v4060_v16 = vadd.f32 %v4039_v1, %v399_v62 }
  0x22   : > { %3266 = vmatprep.subr.bf16.mxu0 %v3732_v34  ;;  %v367_v7 = vld [vmem:[%s4016_s12 + $0x40] sm:$0xff]  ;;  %v369_v11 = vld [vmem:[%s4016_s12 + $0x50] sm:$0xff]  ;;  %v370_v12 = vld [vmem:[%s4016_s12 + $0x58] sm:$0xff]  ;;  %v4066_v20 = vadd.f32 %v4039_v1, %v400_v2  ;;  %v405_v21 = vmul.f32 %v4026_v57, %v366_v6  ;;  %v407_v23 = vmul.f32 %v4026_v57, %v368_v8  ;;  %v4073_v25 = vadd.f32 %v4039_v1, %v401_v5 }
  0x23   : > { %v371_v13 = vld [vmem:[%s4016_s12 + $0x60] sm:$0xff]  ;;  %v372_v18 = vld [vmem:[%s4016_s12 + $0x68] sm:$0xff]  ;;  %v373_v19 = vld [vmem:[%s4016_s12 + $0x70] sm:$0xff]  ;;  %v406_v22 = vmul.f32 %v4026_v57, %v367_v7  ;;  %v408_v26 = vmul.f32 %v4026_v57, %v369_v11  ;;  %v409_v27 = vmul.f32 %v4026_v57, %v370_v12  ;;  %v4079_v29 = vadd.f32 %v4039_v1, %v402_v9 }
  0x24   : > { %3159 = vmatpush3.bf16.msra.mxu1 %v3735_v36  ;;  %v374_v24 = vld [vmem:[%s4016_s12 + $0x78] sm:$0xff]  ;;  %v410_v28 = vmul.f32 %v4026_v57, %v371_v13  ;;  %v4082_v30 = vadd.f32 %v4039_v1, %v403_v10  ;;  %v411_v31 = vmul.f32 %v4026_v57, %v372_v18  ;;  %v412_v32 = vmul.f32 %v4026_v57, %v373_v19  ;;  %v379_v59 = vld [vmem:[%s4016_s12 + $0xa0] sm:$0xff]  ;;  %v380_v61 = vld [vmem:[%s4016_s12 + $0xa8] sm:$0xff] }
  0x25   : > { %3267 = vmatpush3.bf16.msra.mxu0 %v3734_v35  ;;  %3368 = vmatprep.subr.bf16.mxu1 %v3744_v45  ;;  %v469_v33 = vmax.f32 %v4057_v15, 0.0  ;;  %v470_v34 = vmax.f32 %v4060_v16, 0.0  ;;  %v413_v36 = vmul.f32 %v4026_v57, %v374_v24  ;;  %v471_v37 = vmax.f32 %v4066_v20, 0.0  ;;  %v378_v58 = vld [vmem:[%s4016_s12 + $0x98] sm:$0xff]  ;;  %v381_v2 = vld [vmem:[%s4016_s12 + $0xb0] sm:$0xff]  ;;  %v4141_v5 = vld [vmem:[#allocation2 + $0x2] sm:$0xff] }
  0x26   : > { %3268 = vmatprep.subr.bf16.mxu0 %v3736_v39  ;;  %v4094_v38 = vadd.f32 %v4039_v1, %v405_v21  ;;  %v4097_v39 = vadd.f32 %v4039_v1, %v406_v22  ;;  %v4100_v40 = vadd.f32 %v4039_v1, %v407_v23  ;;  %v4109_v45 = vadd.f32 %v4039_v1, %v409_v27  ;;  %v4143_v6 = vld [vmem:[#allocation2 + $0xa] sm:$0xff]  ;;  %v386_v21 = vld [vmem:[%s4016_s12 + $0xd8] sm:$0xff]  ;;  %v387_v22 = vld [vmem:[%s4016_s12 + $0xe0] sm:$0xff] }
  0x27   : > { %2042 = vmatmul.mubr.bf16.vlgmr.msra.gmra.mrb[0].mxu1 %v3789_v3  ;;  %v365_v3 = vld [vmem:[%s4016_s12 + $0x30] sm:$0xff]  ;;  %v4128_v54 = vadd.f32 %v4039_v1, %v413_v36  ;;  %v384_v11 = vld [vmem:[%s4016_s12 + $0xc8] sm:$0xff]  ;;  %v418_v18 = vmul.f32 %v4026_v57, %v379_v59  ;;  %v419_v27 = vmul.f32 %v4026_v57, %v380_v61  ;;  %v425_v59 = vmul.f32 %v4026_v57, %v386_v21  ;;  %v506_v61 = vld [vmem:[%s5037_s5] sm:$0x1] }
  0x28   : > { %3369 = vmatpush3.bf16.msra.mxu1 %v3745_v46  ;;  %v404_v17 = vmul.f32 %v4026_v57, %v365_v3  ;;  %v4112_v46 = vadd.f32 %v4039_v1, %v410_v28  ;;  %v476_v62 = vmax.f32 %v4094_v38, 0.0  ;;  %v477_v63 = vmax.f32 %v4097_v39, 0.0  ;;  %v382_v3 = vld [vmem:[%s4016_s12 + $0xb8] sm:$0xff]  ;;  %v385_v19 = vld [vmem:[%s4016_s12 + $0xd0] sm:$0xff]  ;;  %v388_v28 = vld [vmem:[%s4016_s12 + $0xe8] sm:$0xff] }
  0x29   : > { %3269 = vmatpush3.bf16.msra.mxu0 %v3737_v41  ;;  %3370 = vmatprep.subr.bf16.mxu1 %v3748_v47  ;;  %v375_v41 = vld [vmem:[%s4016_s12 + $0x80] sm:$0xff]  ;;  %v3764_v47 = vld [vmem:[%s5038_s6 + $0x168] sm:$0xff]   ;;  %v478_v0 = vmax.f32 %v4100_v40, 0.0  ;;  %v480_v8 = vmax.f32 %v4109_v45, 0.0  ;;  %v4195_v21 = vadd.f32 %v4039_v1, %v418_v18 }
  0x2a   : > { %3270 = vmatprep.subr.bf16.mxu0 %v3738_v42  ;;  %v4089_v35 = vadd.f32 %v4039_v1, %v404_v17  ;;  %v376_v42 = vld [vmem:[%s4016_s12 + $0x88] sm:$0xff]  ;;  %v414_v55 = vmul.f32 %v4026_v57, %v375_v41  ;;  %v481_v9 = vmax.f32 %v4112_v46, 0.0  ;;  %v417_v17 = vmul.f32 %v4026_v57, %v378_v58 }
  0x2b   : > { %v415_v56 = vmul.f32 %v4026_v57, %v376_v42  ;;  %v420_v41 = vmul.f32 %v4026_v57, %v381_v2  ;;  %v421_v42 = vmul.f32 %v4026_v57, %v382_v3  ;;  %v424_v58 = vmul.f32 %v4026_v57, %v385_v19 }
  0x2c   : > { %3371 = vmatpush3.bf16.msra.mxu1 %v3749_v48  ;;  %v473_v48 = vmax.f32 %v4079_v29, 0.0  ;;  %v4159_v24 = vadd.f32 %v4039_v1, %v414_v55  ;;  %v426_v2 = vmul.f32 %v4026_v57, %v387_v22  ;;  %v427_v3 = vmul.f32 %v4026_v57, %v388_v28  ;;  %v3771_v29 = vld [vmem:[%s5038_s6 + $0x138] sm:$0xff]  }
  0x2d   : > { %3271 = vmatpush3.bf16.msra.mxu0 %v3739_v43  ;;  %3372 = vmatprep.subr.bf16.mxu1 %v3752_v49  ;;  %v472_v43 = vmax.f32 %v4073_v25, 0.0  ;;  %v474_v49 = vmax.f32 %v4082_v30, 0.0  ;;  %v4192_v19 = vadd.f32 %v4039_v1, %v417_v17  ;;  %v4201_v22 = vadd.f32 %v4039_v1, %v420_v41 }
  0x2e   : > { %3480 = vmatprep.subr.bf16.mxu0 %v3740_v44  ;;  %v4106_v44 = vadd.f32 %v4039_v1, %v408_v26  ;;  %v4162_v26 = vadd.f32 %v4039_v1, %v415_v56  ;;  %v423_v56 = vmul.f32 %v4026_v57, %v384_v11  ;;  %v485_v36 = vmax.f32 %v4159_v24, 0.0  ;;  %v3770_v11 = vld [vmem:[%s5038_s6 + $0x178] sm:$0xff]  }
  0x2f   : > { %v4204_v28 = vadd.f32 %v4039_v1, %v421_v42  ;;  %v4213_v18 = vadd.f32 %v4039_v1, %v424_v58  ;;  %v4219_v41 = vadd.f32 %v4039_v1, %v426_v2  ;;  %v4222_v42 = vadd.f32 %v4039_v1, %v427_v3  ;;  %v3769_v3 = vld [vmem:[%s5038_s6 + $0x130] sm:$0xff]  }
  0x30   : > { %3373 = vmatpush3.bf16.msra.mxu1 %v3753_v50  ;;  %v4120_v50 = vadd.f32 %v4039_v1, %v411_v31  ;;  %v479_v7 = vmax.f32 %v4106_v44, 0.0  ;;  %v389_v31 = vld [vmem:[%s4016_s12 + $0xf0] sm:$0xff]  ;;  %v4210_v17 = vadd.f32 %v4039_v1, %v423_v56  ;;  %v488_v58 = vmax.f32 %v4192_v19, 0.0 }
  0x31   : > { %3374 = vmatprep.subr.bf16.mxu1 %v3756_v51  ;;  %v4123_v51 = vadd.f32 %v4039_v1, %v412_v32  ;;  %v390_v32 = vld [vmem:[%s4016_s12 + $0xf8] sm:$0xff]  ;;  %v497_v2 = vmax.f32 %v4219_v41, 0.0  ;;  %v498_v60 = vmax.f32 %v4222_v42, 0.0  ;;  %v3742_v41 = vld [vmem:[%s5038_s6 + $0x1c8] sm:$0xff]  }
  0x32   : > { %v482_v12 = vmax.f32 %v4120_v50, 0.0  ;;  %v5043_v50 = vmax.f32 %v4162_v26, 0.0  ;;  %v5045_v26 = vmax.f32 %v4201_v22, 0.0 }
  0x33   : > { %v483_v13 = vmax.f32 %v4123_v51, 0.0 }
  0x34   : > { %3375 = vmatpush3.bf16.msra.mxu1 %v3757_v52  ;;  %v377_v52 = vld [vmem:[%s4016_s12 + $0x90] sm:$0xff] }
  0x35   : > { %3376 = vmatprep.subr.bf16.mxu1 %v3760_v53  ;;  %v475_v53 = vmax.f32 %v4089_v35, 0.0  ;;  %v416_v10 = vmul.f32 %v4026_v57, %v377_v52  ;;  %v3765_v52 = vld [vmem:[%s5038_s6 + $0x128] sm:$0xff]  }
  0x37   : > { %v4177_v55 = vadd.f32 %v4039_v1, %v416_v10  ;;  %v429_v10 = vmul.f32 %v4026_v57, %v390_v32 }
  0x38   : > { %3377 = vmatpush3.bf16.msra.mxu1 %v3761_v4  ;;  %v383_v4 = vld [vmem:[%s4016_s12 + $0xc0] sm:$0xff] }
  0x39   : > { %3378 = vmatprep.subr.bf16.mxu1 %v3764_v47  ;;  %v422_v47 = vmul.f32 %v4026_v57, %v383_v4  ;;  %v428_v4 = vmul.f32 %v4026_v57, %v389_v31 }
  0x3b   : > { %v4207_v57 = vadd.f32 %v4039_v1, %v422_v47  ;;  %v4225_v47 = vadd.f32 %v4039_v1, %v428_v4 }
  0x3c   : > { %3379 = vmatpush3.bf16.msra.mxu1 %v3765_v52  ;;  %v4198_v52 = vadd.f32 %v4039_v1, %v419_v27  ;;  %v4216_v27 = vadd.f32 %v4039_v1, %v425_v59  ;;  %v489_v59 = vmax.f32 %v4195_v21, 0.0 }
  0x3d   : > { %v5047_v21 = vmax.f32 %v4207_v57, 0.0 }
  0x3e   : > { %v5050_v57 = vmax.f32 %v4216_v27, 0.0 }
  0xe3   : > { %v577_v23 = vpop.f32.mrb[0].mxu0 }
  0xe4   : > { %v578_v31 = vadd.f32 %v577_v23, %v506_v61  ;;  %v3626_v32 = vpop.f32.mrb[1].mxu0  ;;  %v4228_v23 = vadd.f32 %v4039_v1, %v429_v10  ;;  %v487_v61 = vmax.f32 %v4177_v55, 0.0  ;;  %v3767_v1 = vld [vmem:[%s5038_s6 + $0x170] sm:$0xff]  }
  0xe5   : > { %3380 = vmatprep.subr.bf16.mxu1 %v3767_v1 }
  0xe6   : > { %v581_v56 = vmax.f32 %v578_v31, 0.0  ;;  %3381 = vmatpush3.bf16.msra.mxu1 %v3769_v3 }
  0xe7   : > { %3382 = vmatprep.subr.bf16.mxu1 %v3770_v11  ;;  %v5046_v11 = vmax.f32 %v4204_v28, 0.0  ;;  %v5049_v28 = vmax.f32 %v4213_v18, 0.0 }
  0xe8   : > { %v4242_v4 = vrot.slane %v581_v56, %v584_v14  ;;  %v499_v14 = vmax.f32 %v4225_v47, 0.0  ;;  %v500_v56 = vmax.f32 %v4228_v23, 0.0  ;;  %v3743_v47 = vld [vmem:[%s5038_s6 + $0x188] sm:$0xff]  }
  0xea   : > { %v586_v32 = vadd.f32 %v4242_v4, %v469_v33  ;;  %v587_v31 = vadd.f32 %v4242_v4, %v470_v34  ;;  %v4266_v10 = vadd.f32 %v4242_v4, %v471_v37  ;;  %v4271_v1 = vadd.f32 %v4242_v4, %v472_v43  ;;  %3383 = vmatpush3.bf16.msra.mxu1 %v3771_v29  ;;  %v3741_v29 = vld [vmem:[%s5038_s6 + $0x180] sm:$0xff]  }
  0xeb   : > { %v4276_v15 = vadd.f32 %v4242_v4, %v473_v48  ;;  %v4281_v16 = vadd.f32 %v4242_v4, %v474_v49  ;;  %v592_v20 = vadd.f32 %v4242_v4, %v475_v53  ;;  %v593_v25 = vadd.f32 %v4242_v4, %v476_v62 }
  0xec   : > { %673 = vst [vmem:[#allocation2 + $0x19] sm:$0xff] %v586_v32  ;;  %674 = vst [vmem:[#allocation2 + $0x21] sm:$0xff] %v587_v31  ;;  %v802_v33 = vpack.c.bf16 %v587_v31, %v586_v32  ;;  %v803_v30 = vpack.c.bf16 %v4271_v1, %v4266_v10  ;;  %v594_v34 = vadd.f32 %v4242_v4, %v477_v63  ;;  %v5042_v53 = vmax.f32 %v4128_v54, 0.0 }
  0xed   : > { %675 = vst [vmem:[#allocation2 + $0x31] sm:$0xff] %v4266_v10  ;;  %676 = vst [vmem:[#allocation2 + $0x39] sm:$0xff] %v4271_v1  ;;  %v595_v35 = vadd.f32 %v4242_v4, %v478_v0  ;;  %v804_v37 = vpack.c.bf16 %v4281_v16, %v4276_v15  ;;  %v4306_v38 = vpack.c.bf16 %v593_v25, %v592_v20 }
  0xee   : > { %677 = vst [vmem:[#allocation2 + $0x49] sm:$0xff] %v4276_v15  ;;  %678 = vst [vmem:[#allocation2 + $0x51] sm:$0xff] %v4281_v16  ;;  %v596_v39 = vadd.f32 %v4242_v4, %v479_v7  ;;  %v597_v40 = vadd.f32 %v4242_v4, %v480_v8  ;;  %2049 = vmatprep.mubr.bf16.mxu1 %v802_v33  ;;  %v598_v48 = vadd.f32 %v4242_v4, %v481_v9  ;;  %v4350_v8 = vld [vmem:[%s5038_s6 + $0x200] sm:$0xff]  }
  0xef   : > { %679 = vst [vmem:[#allocation2 + $0x61] sm:$0xff] %v592_v20  ;;  %680 = vst [vmem:[#allocation2 + $0x69] sm:$0xff] %v593_v25  ;;  %v4314_v43 = vpack.c.bf16 %v595_v35, %v594_v34  ;;  %v599_v49 = vadd.f32 %v4242_v4, %v482_v12  ;;  %v600_v44 = vadd.f32 %v4242_v4, %v483_v13  ;;  %v5044_v13 = vmax.f32 %v4198_v52, 0.0  ;;  %v3755_v15 = vld [vmem:[%s5038_s6 + $0x1a0] sm:$0xff]  }
  0xf0   : > { %681 = vst [vmem:[#allocation2 + $0x79] sm:$0xff] %v594_v34  ;;  %682 = vst [vmem:[#allocation2 + $0x81] sm:$0xff] %v595_v35  ;;  %v4325_v45 = vpack.c.bf16 %v597_v40, %v596_v39  ;;  %v601_v62 = vadd.f32 %v4242_v4, %v5042_v53  ;;  %v602_v46 = vadd.f32 %v4242_v4, %v485_v36  ;;  %v5048_v52 = vmax.f32 %v4210_v17, 0.0 }
  0xf1   : > { %683 = vst [vmem:[#allocation2 + $0x91] sm:$0xff] %v596_v39  ;;  %684 = vst [vmem:[#allocation2 + $0x99] sm:$0xff] %v597_v40  ;;  %v603_v63 = vadd.f32 %v4242_v4, %v5043_v50  ;;  %v4336_v51 = vpack.c.bf16 %v599_v49, %v598_v48  ;;  %v604_v54 = vadd.f32 %v4242_v4, %v487_v61  ;;  %3681 = vmatprep.subr.bf16.mxu1 %v4350_v8 }
  0xf2   : > { %685 = vst [vmem:[#allocation2 + $0xa9] sm:$0xff] %v598_v48  ;;  %686 = vst [vmem:[#allocation2 + $0xb1] sm:$0xff] %v599_v49  ;;  %v605_v0 = vadd.f32 %v4242_v4, %v488_v58  ;;  %v606_v7 = vadd.f32 %v4242_v4, %v489_v59  ;;  %v4352_v9 = vpack.c.bf16 %v601_v62, %v600_v44  ;;  %v3751_v49 = vld [vmem:[%s5038_s6 + $0x198] sm:$0xff]  }
  0xf3   : > { %687 = vst [vmem:[#allocation2 + $0xc1] sm:$0xff] %v600_v44  ;;  %688 = vst [vmem:[#allocation2 + $0xc9] sm:$0xff] %v601_v62  ;;  %v4354_v12 = vpack.c.bf16 %v603_v63, %v602_v46  ;;  %v607_v24 = vadd.f32 %v4242_v4, %v5044_v13  ;;  %v608_v36 = vadd.f32 %v4242_v4, %v5045_v26  ;;  %v897_v22 = vld [vmem:[#allocation2 + $0x18] sm:$0xff]  ;;  %v898_v59 = vld [vmem:[#allocation2 + $0x20] sm:$0xff] }
  0xf4   : > { %689 = vst [vmem:[#allocation2 + $0xd9] sm:$0xff] %v602_v46  ;;  %690 = vst [vmem:[#allocation2 + $0xe1] sm:$0xff] %v603_v63  ;;  %v4362_v55 = vpack.c.bf16 %v605_v0, %v604_v54  ;;  %v609_v19 = vadd.f32 %v4242_v4, %v5046_v11  ;;  %v610_v61 = vadd.f32 %v4242_v4, %v5047_v21  ;;  %v899_v32 = vld [vmem:[#allocation2 + $0x30] sm:$0xff]  ;;  %v900_v33 = vld [vmem:[#allocation2 + $0x38] sm:$0xff] }
  0xf5   : > { %691 = vst [vmem:[#allocation2 + $0xf1] sm:$0xff] %v604_v54  ;;  %692 = vst [vmem:[#allocation2 + $0xf9] sm:$0xff] %v605_v0  ;;  %v611_v58 = vadd.f32 %v4242_v4, %v5048_v52  ;;  %v4374_v3 = vpack.c.bf16 %v607_v24, %v606_v7  ;;  %v612_v31 = vadd.f32 %v4242_v4, %v5049_v28  ;;  %v836_v23 = vld [vmem:[#allocation2 + $0x22] sm:$0xff]  ;;  %v902_v10 = vld [vmem:[#allocation2 + $0x50] sm:$0xff] }
  0xf6   : > { %693 = vst [vmem:[#allocation2 + $0x109] sm:$0xff] %v606_v7  ;;  %694 = vst [vmem:[#allocation2 + $0x111] sm:$0xff] %v607_v24  ;;  %v613_v20 = vadd.f32 %v4242_v4, %v5050_v57  ;;  %v614_v17 = vadd.f32 %v4242_v4, %v497_v2  ;;  %v929_v25 = vpack.c.bf16 %v898_v59, %v897_v22  ;;  %v3754_v44 = vld [vmem:[%s5038_s6 + $0x1e0] sm:$0xff]   ;;  %v837_v53 = vld [vmem:[#allocation2 + $0x32] sm:$0xff] }
  0xf7   : > { %695 = vst [vmem:[#allocation2 + $0x121] sm:$0xff] %v608_v36  ;;  %696 = vst [vmem:[#allocation2 + $0x129] sm:$0xff] %v609_v19  ;;  %v4388_v34 = vpack.c.bf16 %v609_v19, %v608_v36  ;;  %v4390_v18 = vpack.c.bf16 %v611_v58, %v610_v61  ;;  %v615_v27 = vadd.f32 %v4242_v4, %v498_v60  ;;  %v838_v62 = vld [vmem:[#allocation2 + $0x3a] sm:$0xff]  ;;  %v904_v50 = vld [vmem:[#allocation2 + $0x68] sm:$0xff] }
  0xf8   : > { %697 = vst [vmem:[#allocation2 + $0x139] sm:$0xff] %v610_v61  ;;  %698 = vst [vmem:[#allocation2 + $0x141] sm:$0xff] %v611_v58  ;;  %v4398_v2 = vpack.c.bf16 %v613_v20, %v612_v31  ;;  %v616_v35 = vadd.f32 %v4242_v4, %v499_v14  ;;  %2202 = vmatprep.mubr.bf16.mxu0 %v929_v25  ;;  %2050 = vmatmul.mubr.bf16.gmra.mrb[4].mxu1 %v929_v25  ;;  %v903_v46 = vld [vmem:[#allocation2 + $0x60] sm:$0xff]  ;;  %v3759_v54 = vld [vmem:[%s5038_s6 + $0x1a8] sm:$0xff]  }
  0xf9   : > { %699 = vst [vmem:[#allocation2 + $0x151] sm:$0xff] %v612_v31  ;;  %700 = vst [vmem:[#allocation2 + $0x159] sm:$0xff] %v613_v20  ;;  %v930_v39 = vpack.c.bf16 %v900_v33, %v899_v32  ;;  %v4403_v42 = vpack.c.bf16 %v615_v27, %v614_v17  ;;  %v617_v60 = vadd.f32 %v4242_v4, %v500_v56  ;;  %2057 = vmatprep.mubr.bf16.mxu1 %v803_v30  ;;  %v901_v4 = vld [vmem:[#allocation2 + $0x48] sm:$0xff]  ;;  %v3747_v56 = vld [vmem:[%s5038_s6 + $0x190] sm:$0xff]  }
  0xfa   : > { %701 = vst [vmem:[#allocation2 + $0x169] sm:$0xff] %v614_v17  ;;  %702 = vst [vmem:[#allocation2 + $0x171] sm:$0xff] %v615_v27  ;;  %v5051_v40 = vpack.c.bf16 %v4143_v6, %v4141_v5  ;;  %v3746_v5 = vld [vmem:[%s5038_s6 + $0x1d0] sm:$0xff]   ;;  %v835_v6 = vld [vmem:[#allocation2 + $0x1a] sm:$0xff]  ;;  %v931_v48 = vpack.c.bf16 %v902_v10, %v901_v4  ;;  %v4443_v16 = vpack.c.bf16 %v838_v62, %v837_v53 }
  0xfb   : > { %703 = vst [vmem:[#allocation2 + $0x181] sm:$0xff] %v616_v35  ;;  %704 = vst [vmem:[#allocation2 + $0x189] sm:$0xff] %v617_v60  ;;  %v4417_v14 = vpack.c.bf16 %v617_v60, %v616_v35  ;;  %v4425_v1 = vpack.c.bf16 %v836_v23, %v835_v6  ;;  %v3750_v30 = vld [vmem:[%s5038_s6 + $0x1d8] sm:$0xff]   ;;  %v932_v63 = vpack.c.bf16 %v904_v50, %v903_v46  ;;  %v3762_v0 = vld [vmem:[%s5038_s6 + $0x1f0] sm:$0xff]  }
  0xfc   : > { %2203 = vmatmul.mubr.bf16.vlgmr.msra.gmra.mrb[4].mxu0 %v5051_v40  ;;  %v839_v7 = vld [vmem:[#allocation2 + $0x4a] sm:$0xff]  ;;  %v840_v13 = vld [vmem:[#allocation2 + $0x52] sm:$0xff]  ;;  %v906_v26 = vld [vmem:[#allocation2 + $0x80] sm:$0xff] }
  0xfd   : > { %3481 = vmatpush3.bf16.msra.mxu0 %v3741_v29  ;;  %2210 = vmatprep.mubr.bf16.mxu0 %v930_v39  ;;  %v905_v24 = vld [vmem:[#allocation2 + $0x78] sm:$0xff]  ;;  %v3763_v36 = vld [vmem:[%s5038_s6 + $0x1b0] sm:$0xff]   ;;  %v4459_v11 = vpack.c.bf16 %v840_v13, %v839_v7  ;;  %v841_v52 = vld [vmem:[#allocation2 + $0x62] sm:$0xff] }
  0xfe   : > { %3482 = vmatprep.subr.bf16.mxu0 %v3742_v41  ;;  %v3766_v19 = vld [vmem:[%s5038_s6 + $0x1f8] sm:$0xff]   ;;  %v4464_v21 = vpack.c.bf16 %v906_v26, %v905_v24  ;;  %v842_v58 = vld [vmem:[#allocation2 + $0x6a] sm:$0xff]  ;;  %v844_v57 = vld [vmem:[#allocation2 + $0x82] sm:$0xff] }
  0xff   : > { %v3768_v61 = vld [vmem:[%s5038_s6 + $0x1b8] sm:$0xff]   ;;  %v907_v22 = vld [vmem:[#allocation2 + $0x90] sm:$0xff]  ;;  %v4472_v32 = vpack.c.bf16 %v842_v58, %v841_v52  ;;  %v909_v20 = vld [vmem:[#allocation2 + $0xa8] sm:$0xff] }
 0x100   : > { %2058 = vmatmul.mubr.bf16.gmra.mrb[8].mxu1 %v930_v39  ;;  %v908_v59 = vld [vmem:[#allocation2 + $0x98] sm:$0xff]  ;;  %v910_v17 = vld [vmem:[#allocation2 + $0xb0] sm:$0xff]  ;;  %v911_v41 = vld [vmem:[#allocation2 + $0xc0] sm:$0xff] }
 0x101   : > { %3483 = vmatpush3.bf16.msra.mxu0 %v3743_v47  ;;  %2065 = vmatprep.mubr.bf16.mxu1 %v804_v37  ;;  %v3758_v37 = vld [vmem:[%s5038_s6 + $0x1e8] sm:$0xff]   ;;  %v4476_v28 = vpack.c.bf16 %v908_v59, %v907_v22  ;;  %v843_v31 = vld [vmem:[#allocation2 + $0x7a] sm:$0xff]  ;;  %v4484_v29 = vpack.c.bf16 %v910_v17, %v909_v20  ;;  %v845_v33 = vld [vmem:[#allocation2 + $0x92] sm:$0xff] }
 0x102   : > { %3484 = vmatprep.subr.bf16.mxu0 %v3746_v5  ;;  %v4481_v25 = vpack.c.bf16 %v844_v57, %v843_v31  ;;  %v846_v27 = vld [vmem:[#allocation2 + $0x9a] sm:$0xff]  ;;  %v912_v35 = vld [vmem:[#allocation2 + $0xc8] sm:$0xff]  ;;  %v848_v47 = vld [vmem:[#allocation2 + $0xb2] sm:$0xff] }
 0x103   : > { %v4489_v39 = vpack.c.bf16 %v846_v27, %v845_v33  ;;  %v4492_v60 = vpack.c.bf16 %v912_v35, %v911_v41  ;;  %v847_v40 = vld [vmem:[#allocation2 + $0xaa] sm:$0xff]  ;;  %v913_v5 = vld [vmem:[#allocation2 + $0xd8] sm:$0xff]  ;;  %v914_v6 = vld [vmem:[#allocation2 + $0xe0] sm:$0xff] }
 0x104   : > { %2211 = vmatmul.mubr.bf16.gmra.mrb[8].mxu0 %v4425_v1  ;;  %v4497_v23 = vpack.c.bf16 %v848_v47, %v847_v40  ;;  %v4500_v4 = vpack.c.bf16 %v914_v6, %v913_v5  ;;  %v849_v10 = vld [vmem:[#allocation2 + $0xc2] sm:$0xff]  ;;  %v851_v53 = vld [vmem:[#allocation2 + $0xda] sm:$0xff]  ;;  %v918_v50 = vld [vmem:[#allocation2 + $0x110] sm:$0xff] }
 0x105   : > { %2218 = vmatprep.mubr.bf16.mxu0 %v931_v48  ;;  %3485 = vmatpush3.bf16.msra.mxu0 %v3747_v56  ;;  %v850_v56 = vld [vmem:[#allocation2 + $0xca] sm:$0xff]  ;;  %v852_v62 = vld [vmem:[#allocation2 + $0xe2] sm:$0xff]  ;;  %v854_v7 = vld [vmem:[#allocation2 + $0xfa] sm:$0xff] }
 0x106   : > { %3486 = vmatprep.subr.bf16.mxu0 %v3750_v30  ;;  %v915_v30 = vld [vmem:[#allocation2 + $0xf0] sm:$0xff]  ;;  %v917_v46 = vld [vmem:[#allocation2 + $0x108] sm:$0xff]  ;;  %v919_v24 = vld [vmem:[#allocation2 + $0x120] sm:$0xff] }
 0x107   : > { %v920_v26 = vld [vmem:[#allocation2 + $0x128] sm:$0xff]  ;;  %v856_v59 = vld [vmem:[#allocation2 + $0x112] sm:$0xff]  ;;  %v922_v57 = vld [vmem:[#allocation2 + $0x140] sm:$0xff] }
 0x108   : > { %2066 = vmatmul.mubr.bf16.gmra.mrb[12].mxu1 %v931_v48  ;;  %v916_v48 = vld [vmem:[#allocation2 + $0xf8] sm:$0xff]  ;;  %v855_v22 = vld [vmem:[#allocation2 + $0x10a] sm:$0xff]  ;;  %v857_v33 = vld [vmem:[#allocation2 + $0x122] sm:$0xff] }
 0x109   : > { %3487 = vmatpush3.bf16.msra.mxu0 %v3751_v49  ;;  %2073 = vmatprep.mubr.bf16.mxu1 %v4306_v38  ;;  %v4505_v49 = vpack.c.bf16 %v850_v56, %v849_v10  ;;  %v921_v31 = vld [vmem:[#allocation2 + $0x138] sm:$0xff]  ;;  %v4533_v20 = vpack.c.bf16 %v856_v59, %v855_v22  ;;  %v858_v27 = vld [vmem:[#allocation2 + $0x12a] sm:$0xff]  ;;  %v860_v6 = vld [vmem:[#allocation2 + $0x142] sm:$0xff] }
 0x10a   : > { %3488 = vmatprep.subr.bf16.mxu0 %v3754_v44  ;;  %v4508_v44 = vpack.c.bf16 %v916_v48, %v915_v30  ;;  %v4536_v17 = vpack.c.bf16 %v922_v57, %v921_v31  ;;  %v923_v41 = vld [vmem:[#allocation2 + $0x150] sm:$0xff]  ;;  %v924_v35 = vld [vmem:[#allocation2 + $0x158] sm:$0xff]  ;;  %v4541_v40 = vpack.c.bf16 %v858_v27, %v857_v33  ;;  %v925_v10 = vld [vmem:[#allocation2 + $0x168] sm:$0xff] }
 0x10b   : > { %v4544_v47 = vpack.c.bf16 %v924_v35, %v923_v41  ;;  %v859_v5 = vld [vmem:[#allocation2 + $0x13a] sm:$0xff]  ;;  %v926_v56 = vld [vmem:[#allocation2 + $0x170] sm:$0xff]  ;;  %v3773_v31 = vld [vmem:[%s5038_s6 + $0x208] sm:$0xff]  }
 0x10c   : > { %2219 = vmatmul.mubr.bf16.gmra.mrb[12].mxu0 %v4443_v16  ;;  %v4549_v30 = vpack.c.bf16 %v860_v6, %v859_v5  ;;  %v4552_v48 = vpack.c.bf16 %v926_v56, %v925_v10  ;;  %v1090_v33 = vld [vmem:[#allocation2 + $0x30] sm:$0xff]  ;;  %v1091_v27 = vld [vmem:[#allocation2 + $0x38] sm:$0xff]  ;;  %v1092_v10 = vld [vmem:[#allocation2 + $0x48] sm:$0xff] }
 0x10d   : > { %2226 = vmatprep.mubr.bf16.mxu0 %v932_v63  ;;  %3489 = vmatpush3.bf16.msra.mxu0 %v3755_v15  ;;  %v4513_v15 = vpack.c.bf16 %v852_v62, %v851_v53  ;;  %v861_v53 = vld [vmem:[#allocation2 + $0x152] sm:$0xff]  ;;  %v862_v62 = vld [vmem:[#allocation2 + $0x15a] sm:$0xff]  ;;  %v1156_v41 = vld [vmem:[#allocation2 + $0x49] sm:$0xff]  ;;  %v1122_v5 = vpack.c.bf16 %v1091_v27, %v1090_v33 }
 0x10e   : > { %3490 = vmatprep.subr.bf16.mxu0 %v3758_v37  ;;  %v4516_v37 = vpack.c.bf16 %v918_v50, %v917_v46  ;;  %v927_v46 = vld [vmem:[#allocation2 + $0x180] sm:$0xff]  ;;  %v928_v50 = vld [vmem:[#allocation2 + $0x188] sm:$0xff]  ;;  %v1157_v35 = vld [vmem:[#allocation2 + $0x51] sm:$0xff] }
 0x10f   : > { %v1187_v6 = vpack.c.bf16 %v1157_v35, %v1156_v41  ;;  %v1093_v56 = vld [vmem:[#allocation2 + $0x50] sm:$0xff] }
 0x110   : > { %2074 = vmatmul.mubr.bf16.gmra.mrb[16].mxu1 %v932_v63  ;;  %v3160_v63 = vpop.f32.mrb[0].mxu1  ;;  %v1056_v33 = vld [vmem:[#allocation2 + $0x18a] sm:$0xff] }
 0x111   : > { %3491 = vmatpush3.bf16.msra.mxu0 %v3759_v54  ;;  %2081 = vmatprep.mubr.bf16.mxu1 %v4314_v43  ;;  %v3161_v54 = vpop.f32.mrb[1].mxu1 }
 0x112   : > { %3492 = vmatprep.subr.bf16.mxu0 %v3762_v0  ;;  %v853_v0 = vld [vmem:[#allocation2 + $0xf2] sm:$0xff]  ;;  %v4521_v13 = vadd.f32 %v3161_v54, %v3160_v63  ;;  %v4557_v63 = vpack.c.bf16 %v862_v62, %v861_v53  ;;  %v4560_v54 = vpack.c.bf16 %v928_v50, %v927_v46  ;;  %v3776_v53 = vld [vmem:[%s5038_s6 + $0x220] sm:$0xff]   ;;  %v1123_v62 = vpack.c.bf16 %v1093_v56, %v1092_v10  ;;  %v968_v46 = vld [vmem:[#allocation2 + $0x69] sm:$0xff] }
 0x113   : > { %v1094_v50 = vld [vmem:[#allocation2 + $0x60] sm:$0xff] }
 0x114   : > { %2227 = vmatmul.mubr.bf16.gmra.mrb[16].mxu0 %v4459_v11 }
 0x115   : > { %2234 = vmatprep.mubr.bf16.mxu0 %v4464_v21  ;;  %3493 = vmatpush3.bf16.msra.mxu0 %v3763_v36  ;;  %v4523_v36 = vpack.c.bf16 %v854_v7, %v853_v0  ;;  %v961_v0 = vld [vmem:[#allocation2 + $0x19] sm:$0xff]  ;;  %v962_v7 = vld [vmem:[#allocation2 + $0x21] sm:$0xff] }
 0x116   : > { %3494 = vmatprep.subr.bf16.mxu0 %v3766_v19  ;;  %v4526_v19 = vpack.c.bf16 %v920_v26, %v919_v24  ;;  %v863_v24 = vld [vmem:[#allocation2 + $0x16a] sm:$0xff]  ;;  %v864_v26 = vld [vmem:[#allocation2 + $0x172] sm:$0xff]  ;;  %v993_v22 = vpack.c.bf16 %v962_v7, %v961_v0 }
 0x117   : > { %v4565_v59 = vpack.c.bf16 %v864_v26, %v863_v24  ;;  %v1095_v0 = vld [vmem:[#allocation2 + $0x68] sm:$0xff]  ;;  %v3778_v7 = vld [vmem:[%s5038_s6 + $0x230] sm:$0xff]  }
 0x118   : > { %2082 = vmatmul.mubr.bf16.gmra.mrb[20].mxu1 %v4464_v21  ;;  %v1124_v26 = vpack.c.bf16 %v1095_v0, %v1094_v50  ;;  %v1184_v50 = vld [vmem:[#allocation2 + $0x199] sm:$0xff]  ;;  %v1185_v0 = vld [vmem:[#allocation2 + $0x1a1] sm:$0xff] }
 0x119   : > { %3495 = vmatpush3.bf16.msra.mxu0 %v3768_v61  ;;  %2089 = vmatprep.mubr.bf16.mxu1 %v4325_v45  ;;  %v3163_v61 = vpop.f32.mrb[2].mxu1 }
 0x11a   : > { %3627 = vmatprep.subr.bf16.mxu0 %v4350_v8  ;;  %v3164_v52 = vpop.f32.mrb[3].mxu1 }
 0x11b   : > { %v4531_v58 = vadd.f32 %v3164_v52, %v3163_v61  ;;  %v1154_v61 = vld [vmem:[#allocation2 + $0x31] sm:$0xff]  ;;  %v1155_v52 = vld [vmem:[#allocation2 + $0x39] sm:$0xff] }
 0x11c   : > { %2235 = vmatmul.mubr.bf16.gmra.mrb[20].mxu0 %v4472_v32  ;;  %v1186_v57 = vpack.c.bf16 %v1155_v52, %v1154_v61 }
 0x11d   : > { %2242 = vmatprep.mubr.bf16.mxu0 %v4476_v28 }
 0x120   : > { %2090 = vmatmul.mubr.bf16.gmra.mrb[24].mxu1 %v4476_v28 }
 0x121   : > { %2097 = vmatprep.mubr.bf16.mxu1 %v4336_v51 }
 0x124   : > { %2243 = vmatmul.mubr.bf16.gmra.mrb[24].mxu0 %v4481_v25 }
 0x125   : > { %2250 = vmatprep.mubr.bf16.mxu0 %v4484_v29 }
 0x128   : > { %2098 = vmatmul.mubr.bf16.gmra.mrb[28].mxu1 %v4484_v29 }
 0x129   : > { %2105 = vmatprep.mubr.bf16.mxu1 %v4352_v9 }
 0x12c   : > { %2251 = vmatmul.mubr.bf16.gmra.mrb[28].mxu0 %v4489_v39 }
 0x12d   : > { %2258 = vmatprep.mubr.bf16.mxu0 %v4492_v60 }
 0x130   : > { %2106 = vmatmul.mubr.bf16.gmra.mrb[32].mxu1 %v4492_v60 }
 0x131   : > { %2113 = vmatprep.mubr.bf16.mxu1 %v4354_v12 }
 0x134   : > { %2259 = vmatmul.mubr.bf16.gmra.mrb[32].mxu0 %v4497_v23 }
 0x135   : > { %2266 = vmatprep.mubr.bf16.mxu0 %v4500_v4 }
 0x138   : > { %2114 = vmatmul.mubr.bf16.gmra.mrb[36].mxu1 %v4500_v4 }
 0x139   : > { %2121 = vmatprep.mubr.bf16.mxu1 %v4362_v55 }
 0x13c   : > { %2267 = vmatmul.mubr.bf16.gmra.mrb[36].mxu0 %v4505_v49 }
 0x13d   : > { %2274 = vmatprep.mubr.bf16.mxu0 %v4508_v44 }
 0x140   : > { %2122 = vmatmul.mubr.bf16.gmra.mrb[40].mxu1 %v4508_v44 }
 0x141   : > { %2129 = vmatprep.mubr.bf16.mxu1 %v4374_v3 }
 0x144   : > { %2275 = vmatmul.mubr.bf16.gmra.mrb[40].mxu0 %v4513_v15 }
 0x145   : > { %2282 = vmatprep.mubr.bf16.mxu0 %v4516_v37 }
 0x148   : > { %2130 = vmatmul.mubr.bf16.gmra.mrb[44].mxu1 %v4516_v37 }
 0x149   : > { %2137 = vmatprep.mubr.bf16.mxu1 %v4388_v34 }
 0x14c   : > { %2283 = vmatmul.mubr.bf16.gmra.mrb[44].mxu0 %v4523_v36 }
 0x14d   : > { %2290 = vmatprep.mubr.bf16.mxu0 %v4526_v19 }
 0x150   : > { %2138 = vmatmul.mubr.bf16.gmra.mrb[48].mxu1 %v4526_v19 }
 0x151   : > { %2145 = vmatprep.mubr.bf16.mxu1 %v4390_v18 }
 0x154   : > { %2291 = vmatmul.mubr.bf16.gmra.mrb[48].mxu0 %v4533_v20 }
 0x155   : > { %2298 = vmatprep.mubr.bf16.mxu0 %v4536_v17 }
 0x158   : > { %2146 = vmatmul.mubr.bf16.gmra.mrb[52].mxu1 %v4536_v17 }
 0x159   : > { %2153 = vmatprep.mubr.bf16.mxu1 %v4398_v2 }
 0x15c   : > { %2299 = vmatmul.mubr.bf16.gmra.mrb[52].mxu0 %v4541_v40 }
 0x15d   : > { %2306 = vmatprep.mubr.bf16.mxu0 %v4544_v47 }
 0x160   : > { %2154 = vmatmul.mubr.bf16.gmra.mrb[56].mxu1 %v4544_v47 }
 0x161   : > { %2161 = vmatprep.mubr.bf16.mxu1 %v4403_v42 }
 0x164   : > { %2307 = vmatmul.mubr.bf16.gmra.mrb[56].mxu0 %v4549_v30 }
 0x165   : > { %2314 = vmatprep.mubr.bf16.mxu0 %v4552_v48 }
 0x168   : > { %2162 = vmatmul.mubr.bf16.gmra.mrb[60].mxu1 %v4552_v48 }
 0x169   : > { %2363 = vmatprep.mubr.bf16.mxu1 %v4425_v1  ;;  %v3774_v1 = vld [vmem:[%s5038_s6 + $0x210] sm:$0xff]  }
 0x16c   : > { %2315 = vmatmul.mubr.bf16.gmra.mrb[60].mxu0 %v4557_v63 }
 0x16d   : > { %2322 = vmatprep.mubr.bf16.mxu0 %v4560_v54 }
 0x170   : > { %2364 = vmatmul.mubr.bf16.vlgmr.msra.gmra.mrb[64].mxu1 %v993_v22 }
 0x171   : > { %2371 = vmatprep.mubr.bf16.mxu1 %v4443_v16  ;;  %3689 = vmatpush3.bf16.msra.mxu1 %v4350_v8  ;;  %v3775_v16 = vld [vmem:[%s5038_s6 + $0x218] sm:$0xff]  }
 0x172   : > { %3682 = vmatprep.subr.bf16.mxu1 %v3773_v31 }
 0x174   : > { %2323 = vmatmul.mubr.bf16.gmra.mrb[64].mxu0 %v4565_v59 }
 0x175   : > { %2524 = vmatprep.mubr.bf16.mxu0 %v1186_v57  ;;  %3690 = vmatpush3.bf16.msra.mxu1 %v3773_v31 }
 0x176   : > { %3683 = vmatprep.subr.bf16.mxu1 %v3774_v1 }
 0x178   : > { %2372 = vmatmul.mubr.bf16.gmra.mrb[68].mxu1 %v1186_v57 }
 0x179   : > { %2379 = vmatprep.mubr.bf16.mxu1 %v4459_v11  ;;  %3691 = vmatpush3.bf16.msra.mxu1 %v3774_v1  ;;  %v3777_v11 = vld [vmem:[%s5038_s6 + $0x228] sm:$0xff]  }
 0x17a   : > { %3684 = vmatprep.subr.bf16.mxu1 %v3775_v16 }
 0x17c   : > { %2525 = vmatmul.mubr.bf16.vlgmr.msra.gmra.mrb[68].mxu0 %v1122_v5 }
 0x17d   : > { %3628 = vmatpush3.bf16.msra.mxu0 %v4350_v8  ;;  %2532 = vmatprep.mubr.bf16.mxu0 %v1187_v6  ;;  %v967_v8 = vld [vmem:[#allocation2 + $0x61] sm:$0xff] }
 0x17e   : > { %3629 = vmatprep.subr.bf16.mxu0 %v3773_v31  ;;  %3692 = vmatpush3.bf16.msra.mxu1 %v3775_v16  ;;  %v996_v24 = vpack.c.bf16 %v968_v46, %v967_v8 }
 0x17f   : > { %3685 = vmatprep.subr.bf16.mxu1 %v3776_v53 }
 0x180   : > { %2380 = vmatmul.mubr.bf16.gmra.mrb[72].mxu1 %v1187_v6 }
 0x181   : > { %3630 = vmatpush3.bf16.msra.mxu0 %v3773_v31  ;;  %2387 = vmatprep.mubr.bf16.mxu1 %v4472_v32 }
 0x182   : > { %3631 = vmatprep.subr.bf16.mxu0 %v3774_v1  ;;  %3693 = vmatpush3.bf16.msra.mxu1 %v3776_v53 }
 0x183   : > { %3686 = vmatprep.subr.bf16.mxu1 %v3777_v11 }
 0x184   : > { %2533 = vmatmul.mubr.bf16.gmra.mrb[72].mxu0 %v1123_v62 }
 0x185   : > { %2540 = vmatprep.mubr.bf16.mxu0 %v4306_v38  ;;  %3632 = vmatpush3.bf16.msra.mxu0 %v3774_v1  ;;  %v3779_v38 = vld [vmem:[%s5038_s6 + $0x238] sm:$0xff]   ;;  %v1055_v1 = vld [vmem:[#allocation2 + $0x182] sm:$0xff] }
 0x186   : > { %3633 = vmatprep.subr.bf16.mxu0 %v3775_v16  ;;  %3694 = vmatpush3.bf16.msra.mxu1 %v3777_v11  ;;  %v4657_v56 = vpack.c.bf16 %v1056_v33, %v1055_v1 }
 0x187   : > { %3687 = vmatprep.subr.bf16.mxu1 %v3778_v7 }
 0x188   : > { %2388 = vmatmul.mubr.bf16.gmra.mrb[76].mxu1 %v996_v24 }
 0x189   : > { %3634 = vmatpush3.bf16.msra.mxu0 %v3775_v16  ;;  %2395 = vmatprep.mubr.bf16.mxu1 %v4481_v25 }
 0x18a   : > { %3635 = vmatprep.subr.bf16.mxu0 %v3776_v53  ;;  %3695 = vmatpush3.bf16.msra.mxu1 %v3778_v7 }
 0x18b   : > { %3688 = vmatprep.subr.bf16.mxu1 %v3779_v38 }
 0x18c   : > { %2541 = vmatmul.mubr.bf16.gmra.mrb[76].mxu0 %v1124_v26  ;;  %v1230_v26 = vld [vmem:[#allocation2 + $0xc2] sm:$0xff] }
 0x18d   : > { %2548 = vmatprep.mubr.bf16.mxu0 %v4314_v43  ;;  %3636 = vmatpush3.bf16.msra.mxu0 %v3776_v53 }
 0x18e   : > { %3637 = vmatprep.subr.bf16.mxu0 %v3777_v11  ;;  %3696 = vmatpush3.bf16.msra.mxu1 %v3779_v38 }
 0x190   : > { %2396 = vmatmul.mubr.bf16.gmra.mrb[80].mxu1 %v4314_v43  ;;  %v4629_v43 = vld [vmem:[%s5039_s7] ss:$0 sm:$0xff] }
 0x191   : > { %3638 = vmatpush3.bf16.msra.mxu0 %v3777_v11  ;;  %2403 = vmatprep.mubr.bf16.mxu1 %v4489_v39 }
 0x192   : > { %3639 = vmatprep.subr.bf16.mxu0 %v3778_v7 }
 0x194   : > { %2549 = vmatmul.mubr.bf16.gmra.mrb[80].mxu0 %v4464_v21  ;;  %v2047_v21 = vadd.f32 %v4531_v58, %v4629_v43 }
 0x195   : > { %2556 = vmatprep.mubr.bf16.mxu0 %v4325_v45  ;;  %3640 = vmatpush3.bf16.msra.mxu0 %v3778_v7 }
 0x196   : > { %3641 = vmatprep.subr.bf16.mxu0 %v3779_v38 }
 0x198   : > { %2404 = vmatmul.mubr.bf16.gmra.mrb[84].mxu1 %v4325_v45 }
 0x199   : > { %3642 = vmatpush3.bf16.msra.mxu0 %v3779_v38  ;;  %2411 = vmatprep.mubr.bf16.mxu1 %v4497_v23  ;;  %v1231_v38 = vld [vmem:[#allocation2 + $0xca] sm:$0xff] }
 0x19c   : > { %2557 = vmatmul.mubr.bf16.gmra.mrb[84].mxu0 %v4476_v28 }
 0x19d   : > { %2564 = vmatprep.mubr.bf16.mxu0 %v4336_v51 }
 0x1a0   : > { %2412 = vmatmul.mubr.bf16.gmra.mrb[88].mxu1 %v4336_v51  ;;  %v2044_v51 = vadd.f32 %v4521_v13, %v4629_v43 }
 0x1a1   : > { %2419 = vmatprep.mubr.bf16.mxu1 %v4505_v49 }
 0x1a4   : > { %2565 = vmatmul.mubr.bf16.gmra.mrb[88].mxu0 %v4484_v29 }
 0x1a5   : > { %2572 = vmatprep.mubr.bf16.mxu0 %v4352_v9 }
 0x1a8   : > { %2420 = vmatmul.mubr.bf16.gmra.mrb[92].mxu1 %v4352_v9 }
 0x1a9   : > { %2427 = vmatprep.mubr.bf16.mxu1 %v4513_v15 }
 0x1ac   : > { %2573 = vmatmul.mubr.bf16.gmra.mrb[92].mxu0 %v4492_v60 }
 0x1ad   : > { %2580 = vmatprep.mubr.bf16.mxu0 %v4354_v12 }
 0x1b0   : > { %2428 = vmatmul.mubr.bf16.gmra.mrb[96].mxu1 %v4354_v12 }
 0x1b1   : > { %2435 = vmatprep.mubr.bf16.mxu1 %v4523_v36 }
 0x1b4   : > { %2581 = vmatmul.mubr.bf16.gmra.mrb[96].mxu0 %v4500_v4 }
 0x1b5   : > { %2588 = vmatprep.mubr.bf16.mxu0 %v4362_v55 }
 0x1b8   : > { %2436 = vmatmul.mubr.bf16.gmra.mrb[100].mxu1 %v4362_v55 }
 0x1b9   : > { %2443 = vmatprep.mubr.bf16.mxu1 %v4533_v20 }
 0x1bc   : > { %2589 = vmatmul.mubr.bf16.gmra.mrb[100].mxu0 %v4508_v44 }
 0x1bd   : > { %2596 = vmatprep.mubr.bf16.mxu0 %v4374_v3 }
 0x1c0   : > { %2444 = vmatmul.mubr.bf16.gmra.mrb[104].mxu1 %v4374_v3 }
 0x1c1   : > { %2451 = vmatprep.mubr.bf16.mxu1 %v4541_v40 }
 0x1c4   : > { %2597 = vmatmul.mubr.bf16.gmra.mrb[104].mxu0 %v4516_v37 }
 0x1c5   : > { %2604 = vmatprep.mubr.bf16.mxu0 %v4388_v34 }
 0x1c8   : > { %2452 = vmatmul.mubr.bf16.gmra.mrb[108].mxu1 %v4388_v34 }
 0x1c9   : > { %2459 = vmatprep.mubr.bf16.mxu1 %v4549_v30 }
 0x1cb   : > { %v3166_v45 = vpop.f32.mrb[4].mxu1 }
 0x1cc   : > { %2605 = vmatmul.mubr.bf16.gmra.mrb[108].mxu0 %v4526_v19  ;;  %v3167_v12 = vpop.f32.mrb[5].mxu1 }
 0x1cd   : > { %2612 = vmatprep.mubr.bf16.mxu0 %v4390_v18  ;;  %v3168_v55 = vadd.f32 %v3167_v12, %v3166_v45  ;;  %v3169_v34 = vpop.f32.mrb[6].mxu1 }
 0x1ce   : > { %v3170_v25 = vpop.f32.mrb[7].mxu1 }
 0x1cf   : > { %v3272_v9 = vpop.f32.mrb[4].mxu0  ;;  %v3171_v29 = vadd.f32 %v3170_v25, %v3169_v34  ;;  %v2052_v19 = vadd.f32 %v3168_v55, %v4629_v43 }
 0x1d0   : > { %v3273_v3 = vpop.f32.mrb[5].mxu0  ;;  %2460 = vmatmul.mubr.bf16.gmra.mrb[112].mxu1 %v4390_v18 }
 0x1d1   : > { %v3274_v32 = vadd.f32 %v3273_v3, %v3272_v9  ;;  %v3275_v28 = vpop.f32.mrb[6].mxu0  ;;  %2467 = vmatprep.mubr.bf16.mxu1 %v4557_v63  ;;  %v1201_v3 = vpack.c.bf16 %v1185_v0, %v1184_v50  ;;  %v1238_v50 = vld [vmem:[#allocation2 + $0x122] sm:$0xff]  ;;  %v1239_v0 = vld [vmem:[#allocation2 + $0x12a] sm:$0xff] }
 0x1d2   : > { %v3276_v39 = vpop.f32.mrb[7].mxu0 }
 0x1d3   : > { %v4638_v60 = vadd.f32 %v3274_v32, %v2044_v51  ;;  %v3277_v23 = vadd.f32 %v3276_v39, %v3275_v28  ;;  %v3172_v49 = vpop.f32.mrb[8].mxu1  ;;  %v1256_v32 = vpack.c.bf16 %v1231_v38, %v1230_v26  ;;  %v1222_v38 = vld [vmem:[#allocation2 + $0x62] sm:$0xff] }
 0x1d4   : > { %2613 = vmatmul.mubr.bf16.gmra.mrb[112].mxu0 %v4536_v17  ;;  %v3173_v15 = vpop.f32.mrb[9].mxu1  ;;  %v2055_v17 = vadd.f32 %v3171_v29, %v4629_v43 }
 0x1d5   : > { %v4643_v4 = vadd.f32 %v3277_v23, %v2047_v21  ;;  %2620 = vmatprep.mubr.bf16.mxu0 %v4398_v2  ;;  %v3174_v37 = vadd.f32 %v3173_v15, %v3172_v49  ;;  %v3175_v36 = vpop.f32.mrb[10].mxu1  ;;  %v1232_v49 = vld [vmem:[#allocation2 + $0xda] sm:$0xff] }
 0x1d6   : > { %v3176_v40 = vpop.f32.mrb[11].mxu1 }
 0x1d7   : > { %v3278_v44 = vpop.f32.mrb[8].mxu0  ;;  %v3177_v18 = vadd.f32 %v3176_v40, %v3175_v36  ;;  %v2060_v5 = vadd.f32 %v3174_v37, %v4629_v43  ;;  %v1235_v36 = vld [vmem:[#allocation2 + $0xfa] sm:$0xff] }
 0x1d8   : > { %v3279_v13 = vpop.f32.mrb[9].mxu0  ;;  %2468 = vmatmul.mubr.bf16.gmra.mrb[116].mxu1 %v4398_v2  ;;  %v3780_v40 = vld [vmem:[#allocation2] sm:$0xff] }
 0x1d9   : > { %v3280_v58 = vadd.f32 %v3279_v13, %v3278_v44  ;;  %v3281_v20 = vpop.f32.mrb[10].mxu0  ;;  %2475 = vmatprep.mubr.bf16.mxu1 %v4565_v59  ;;  %v2063_v53 = vadd.f32 %v3177_v18, %v4629_v43  ;;  %v1233_v44 = vld [vmem:[#allocation2 + $0xe2] sm:$0xff]  ;;  %v1234_v13 = vld [vmem:[#allocation2 + $0xf2] sm:$0xff]  ;;  %v1137_v18 = vpack.c.bf16 %v3780_v40, %v3780_v40  ;;  %v1243_v40 = vld [vmem:[#allocation2 + $0x15a] sm:$0xff] }
 0x1da   : > { %v3282_v30 = vpop.f32.mrb[11].mxu0  ;;  %v1258_v33 = vpack.c.bf16 %v1235_v36, %v1234_v13  ;;  %v1241_v13 = vld [vmem:[#allocation2 + $0x142] sm:$0xff] }
 0x1db   : > { %v4648_v63 = vadd.f32 %v3280_v58, %v2052_v19  ;;  %v3283_v61 = vadd.f32 %v3282_v30, %v3281_v20  ;;  %v3178_v22 = vpop.f32.mrb[12].mxu1  ;;  %v1218_v30 = vld [vmem:[#allocation2 + $0x32] sm:$0xff] }
 0x1dc   : > { %2621 = vmatmul.mubr.bf16.gmra.mrb[116].mxu0 %v4544_v47  ;;  %v3179_v57 = vpop.f32.mrb[13].mxu1 }
 0x1dd   : > { %v4653_v52 = vadd.f32 %v3283_v61, %v2055_v17  ;;  %2628 = vmatprep.mubr.bf16.mxu0 %v4403_v42  ;;  %v3180_v27 = vadd.f32 %v3179_v57, %v3178_v22  ;;  %v3181_v35 = vpop.f32.mrb[14].mxu1 }
 0x1de   : > { %v3182_v16 = vpop.f32.mrb[15].mxu1 }
 0x1df   : > { %v3284_v31 = vpop.f32.mrb[12].mxu0  ;;  %v3183_v47 = vadd.f32 %v3182_v16, %v3181_v35  ;;  %v1220_v16 = vld [vmem:[#allocation2 + $0x4a] sm:$0xff] }
 0x1e0   : > { %v3285_v41 = vpop.f32.mrb[13].mxu0  ;;  %2476 = vmatmul.mubr.bf16.gmra.mrb[120].mxu1 %v4403_v42  ;;  %v2068_v42 = vadd.f32 %v3180_v27, %v4629_v43 }
 0x1e1   : > { %v3286_v6 = vadd.f32 %v3285_v41, %v3284_v31  ;;  %v3287_v2 = vpop.f32.mrb[14].mxu0  ;;  %2483 = vmatprep.mubr.bf16.mxu1 %v4657_v56  ;;  %v2071_v28 = vadd.f32 %v3183_v47, %v4629_v43  ;;  %v1257_v31 = vpack.c.bf16 %v1233_v44, %v1232_v49  ;;  %v1236_v47 = vld [vmem:[#allocation2 + $0x10a] sm:$0xff] }
 0x1e2   : > { %v3288_v10 = vpop.f32.mrb[15].mxu0 }
 0x1e3   : > { %v4660_v62 = vadd.f32 %v3286_v6, %v2060_v5  ;;  %v3289_v11 = vadd.f32 %v3288_v10, %v3287_v2  ;;  %v3184_v46 = vpop.f32.mrb[16].mxu1  ;;  %v1237_v10 = vld [vmem:[#allocation2 + $0x112] sm:$0xff] }
 0x1e4   : > { %2629 = vmatmul.mubr.bf16.gmra.mrb[120].mxu0 %v4552_v48  ;;  %v3185_v24 = vpop.f32.mrb[17].mxu1 }
 0x1e5   : > { %v4665_v8 = vadd.f32 %v3289_v11, %v2063_v53  ;;  %2636 = vmatprep.mubr.bf16.mxu0 %v4417_v14  ;;  %v3186_v45 = vadd.f32 %v3185_v24, %v3184_v46  ;;  %v3187_v9 = vpop.f32.mrb[18].mxu1  ;;  %v1221_v46 = vld [vmem:[#allocation2 + $0x52] sm:$0xff] }
 0x1e6   : > { %v3188_v55 = vpop.f32.mrb[19].mxu1 }
 0x1e7   : > { %v3290_v7 = vpop.f32.mrb[16].mxu0  ;;  %v3189_v34 = vadd.f32 %v3188_v55, %v3187_v9 }
 0x1e8   : > { %v3291_v51 = vpop.f32.mrb[17].mxu0  ;;  %2484 = vmatmul.mubr.bf16.gmra.mrb[124].mxu1 %v4417_v14  ;;  %v1219_v14 = vld [vmem:[#allocation2 + $0x3a] sm:$0xff] }
 0x1e9   : > { %v3292_v12 = vadd.f32 %v3291_v51, %v3290_v7  ;;  %v3293_v48 = vpop.f32.mrb[18].mxu0  ;;  %3655 = vmatprep.mubr.bf16.mxu1 %v1256_v32  ;;  %v2079_v27 = vadd.f32 %v3189_v34, %v4629_v43  ;;  %v1250_v5 = vpack.c.bf16 %v1219_v14, %v1218_v30  ;;  %v1251_v34 = vpack.c.bf16 %v1221_v46, %v1220_v16 }
 0x1ea   : > { %v3294_v21 = vpop.f32.mrb[19].mxu0 }
 0x1eb   : > { %v4670_v25 = vadd.f32 %v3292_v12, %v2068_v42  ;;  %v3295_v29 = vadd.f32 %v3294_v21, %v3293_v48  ;;  %v3190_v23 = vpop.f32.mrb[20].mxu1  ;;  %v1259_v48 = vpack.c.bf16 %v1237_v10, %v1236_v47  ;;  %v1260_v21 = vpack.c.bf16 %v1239_v0, %v1238_v50  ;;  %v1228_v0 = vld [vmem:[#allocation2 + $0xaa] sm:$0xff] }
 0x1ec   : > { %2637 = vmatmul.mubr.bf16.gmra.mrb[124].mxu0 %v4560_v54  ;;  %v3191_v37 = vpop.f32.mrb[21].mxu1  ;;  %v2076_v54 = vadd.f32 %v3186_v45, %v4629_v43  ;;  %v1223_v45 = vld [vmem:[#allocation2 + $0x6a] sm:$0xff] }
 0x1ed   : > { %v4674_v39 = vadd.f32 %v3295_v29, %v2071_v28  ;;  %2644 = vmatprep.mubr.bf16.mxu0 %v1201_v3  ;;  %v3192_v19 = vadd.f32 %v3191_v37, %v3190_v23  ;;  %v3193_v20 = vpop.f32.mrb[22].mxu1  ;;  %v1252_v23 = vpack.c.bf16 %v1223_v45, %v1222_v38  ;;  %v1240_v37 = vld [vmem:[#allocation2 + $0x13a] sm:$0xff] }
 0x1ee   : > { %v3194_v22 = vpop.f32.mrb[23].mxu1 }
 0x1ef   : > { %v3296_v15 = vpop.f32.mrb[20].mxu0  ;;  %v3195_v57 = vadd.f32 %v3194_v22, %v3193_v20  ;;  %v2084_v51 = vadd.f32 %v3192_v19, %v4629_v43  ;;  %v1242_v20 = vld [vmem:[#allocation2 + $0x152] sm:$0xff] }
 0x1f0   : > { %v3297_v58 = vpop.f32.mrb[21].mxu0  ;;  %3656 = vmatmul.mubr.bf16.vlgmr.msra.gmra.mrb[128].mxu1 %v1257_v31 }
 0x1f1   : > { %v3298_v17 = vadd.f32 %v3297_v58, %v3296_v15  ;;  %v3299_v61 = vpop.f32.mrb[22].mxu0  ;;  %3659 = vmatprep.mubr.bf16.mxu1 %v1258_v33  ;;  %v2087_v32 = vadd.f32 %v3195_v57, %v4629_v43  ;;  %v1224_v15 = vld [vmem:[#allocation2 + $0x7a] sm:$0xff]  ;;  %v1225_v58 = vld [vmem:[#allocation2 + $0x82] sm:$0xff] }
 0x1f2   : > { %v3300_v1 = vpop.f32.mrb[23].mxu0 }
 0x1f3   : > { %v4678_v41 = vadd.f32 %v3298_v17, %v2076_v54  ;;  %v3301_v35 = vadd.f32 %v3300_v1, %v3299_v61  ;;  %v3196_v2 = vpop.f32.mrb[24].mxu1  ;;  %v1226_v54 = vld [vmem:[#allocation2 + $0x92] sm:$0xff]  ;;  %v1227_v17 = vld [vmem:[#allocation2 + $0x9a] sm:$0xff]  ;;  %v1261_v1 = vpack.c.bf16 %v1241_v13, %v1240_v37 }
 0x1f4   : > { %2645 = vmatmul.mubr.bf16.gmra.mrb[128].mxu0 %v1137_v18  ;;  %v3197_v11 = vpop.f32.mrb[25].mxu1  ;;  %v1254_v10 = vpack.c.bf16 %v1227_v17, %v1226_v54 }
 0x1f5   : > { %v4680_v6 = vadd.f32 %v3301_v35, %v2079_v27  ;;  %3643 = vmatprep.mubr.bf16.mxu0 %v1250_v5  ;;  %v3198_v7 = vadd.f32 %v3197_v11, %v3196_v2  ;;  %v3199_v26 = vpop.f32.mrb[26].mxu1  ;;  %v1253_v35 = vpack.c.bf16 %v1225_v58, %v1224_v15  ;;  %v1262_v5 = vpack.c.bf16 %v1243_v40, %v1242_v20 }
 0x1f6   : > { %v3200_v12 = vpop.f32.mrb[27].mxu1 }
 0x1f7   : > { %v3302_v53 = vpop.f32.mrb[24].mxu0  ;;  %v3201_v55 = vadd.f32 %v3200_v12, %v3199_v26  ;;  %v2092_v61 = vadd.f32 %v3198_v7, %v4629_v43  ;;  %v1229_v7 = vld [vmem:[#allocation2 + $0xb2] sm:$0xff] }
 0x1f8   : > { %v3303_v24 = vpop.f32.mrb[25].mxu0  ;;  %3660 = vmatmul.mubr.bf16.gmra.mrb[132].mxu1 %v1259_v48 }
 0x1f9   : > { %v3304_v9 = vadd.f32 %v3303_v24, %v3302_v53  ;;  %v3305_v42 = vpop.f32.mrb[26].mxu0  ;;  %3663 = vmatprep.mubr.bf16.mxu1 %v1260_v21  ;;  %v2095_v2 = vadd.f32 %v3201_v55, %v4629_v43  ;;  %v1255_v55 = vpack.c.bf16 %v1229_v7, %v1228_v0 }
 0x1fa   : > { %v3306_v3 = vpop.f32.mrb[27].mxu0 }
 0x1fb   : > { %v4684_v28 = vadd.f32 %v3304_v9, %v2084_v51  ;;  %v3307_v29 = vadd.f32 %v3306_v3, %v3305_v42  ;;  %v3202_v44 = vpop.f32.mrb[28].mxu1 }
 0x1fc   : > { %3644 = vmatmul.mubr.bf16.vlgmr.msra.gmra.mrb[132].mxu0 %v1251_v34  ;;  %v3203_v19 = vpop.f32.mrb[29].mxu1 }
 0x1fd   : > { %v4686_v49 = vadd.f32 %v3307_v29, %v2087_v32  ;;  %3647 = vmatprep.mubr.bf16.mxu0 %v1252_v23  ;;  %v3204_v18 = vadd.f32 %v3203_v19, %v3202_v44  ;;  %v3205_v14 = vpop.f32.mrb[30].mxu1  ;;  %v1248_v32 = vld [vmem:[#allocation2 + $0x19a] sm:$0xff]  ;;  %v1249_v29 = vld [vmem:[#allocation2 + $0x1a2] sm:$0xff] }
 0x1fe   : > { %v3206_v57 = vpop.f32.mrb[31].mxu1  ;;  %v1265_v13 = vpack.c.bf16 %v1249_v29, %v1248_v32 }
 0x1ff   : > { %v3308_v36 = vpop.f32.mrb[28].mxu0  ;;  %v3207_v33 = vadd.f32 %v3206_v57, %v3205_v14  ;;  %v2100_v45 = vadd.f32 %v3204_v18, %v4629_v43 }
 0x200   : > { %v3309_v30 = vpop.f32.mrb[29].mxu0  ;;  %3664 = vmatmul.mubr.bf16.gmra.mrb[136].mxu1 %v1261_v1 }
 0x201   : > { %v3310_v22 = vadd.f32 %v3309_v30, %v3308_v36  ;;  %v3311_v31 = vpop.f32.mrb[30].mxu0  ;;  %3667 = vmatprep.mubr.bf16.mxu1 %v1262_v5  ;;  %v2103_v3 = vadd.f32 %v3207_v33, %v4629_v43 }
 0x202   : > { %v3312_v27 = vpop.f32.mrb[31].mxu0 }
 0x203   : > { %v4690_v16 = vadd.f32 %v3310_v22, %v2092_v61  ;;  %v3313_v47 = vadd.f32 %v3312_v27, %v3311_v31  ;;  %v3208_v11 = vpop.f32.mrb[32].mxu1 }
 0x204   : > { %3648 = vmatmul.mubr.bf16.gmra.mrb[136].mxu0 %v1253_v35  ;;  %v3209_v50 = vpop.f32.mrb[33].mxu1 }
 0x205   : > { %v4692_v53 = vadd.f32 %v3313_v47, %v2095_v2  ;;  %3651 = vmatprep.mubr.bf16.mxu0 %v1254_v10  ;;  %v3210_v24 = vadd.f32 %v3209_v50, %v3208_v11  ;;  %v3211_v38 = vpop.f32.mrb[34].mxu1 }
 0x206   : > { %v3212_v42 = vpop.f32.mrb[35].mxu1 }
 0x207   : > { %v3314_v46 = vpop.f32.mrb[32].mxu0  ;;  %v3213_v12 = vadd.f32 %v3212_v42, %v3211_v38  ;;  %v2108_v20 = vadd.f32 %v3210_v24, %v4629_v43 }
 0x208   : > { %v3315_v26 = vpop.f32.mrb[33].mxu0  ;;  %3668 = vmatmul.mubr.bf16.gmra.mrb[140].mxu1 %v4565_v59 }
 0x209   : > { %v3316_v51 = vadd.f32 %v3315_v26, %v3314_v46  ;;  %v3317_v9 = vpop.f32.mrb[34].mxu0  ;;  %3671 = vmatprep.mubr.bf16.mxu1 %v4657_v56  ;;  %v2111_v56 = vadd.f32 %v3213_v12, %v4629_v43 }
 0x20a   : > { %v3318_v48 = vpop.f32.mrb[35].mxu0 }
 0x20b   : > { %v4696_v34 = vadd.f32 %v3316_v51, %v2100_v45  ;;  %v3319_v21 = vadd.f32 %v3318_v48, %v3317_v9  ;;  %v3214_v44 = vpop.f32.mrb[36].mxu1 }
 0x20c   : > { %3652 = vmatmul.mubr.bf16.gmra.mrb[140].mxu0 %v1255_v55  ;;  %v3215_v37 = vpop.f32.mrb[37].mxu1 }
 0x20d   : > { %v4700_v23 = vadd.f32 %v3319_v21, %v2103_v3  ;;  %v3216_v36 = vadd.f32 %v3215_v37, %v3214_v44  ;;  %v3217_v58 = vpop.f32.mrb[38].mxu1 }
 0x20e   : > { %v3218_v30 = vpop.f32.mrb[39].mxu1 }
 0x20f   : > { %v3320_v15 = vpop.f32.mrb[36].mxu0  ;;  %v3219_v59 = vadd.f32 %v3218_v30, %v3217_v58  ;;  %v2116_v35 = vadd.f32 %v3216_v36, %v4629_v43 }
 0x210   : > { %v3321_v19 = vpop.f32.mrb[37].mxu0  ;;  %3672 = vmatmul.mubr.bf16.gmra.mrb[144].mxu1 %v1265_v13 }
 0x211   : > { %v3322_v40 = vadd.f32 %v3321_v19, %v3320_v15  ;;  %v3323_v18 = vpop.f32.mrb[38].mxu0  ;;  %v2119_v46 = vadd.f32 %v3219_v59, %v4629_v43 }
 0x212   : > { %v3324_v14 = vpop.f32.mrb[39].mxu0 }
 0x213   : > { %v4704_v54 = vadd.f32 %v3322_v40, %v2108_v20  ;;  %v3325_v17 = vadd.f32 %v3324_v14, %v3323_v18  ;;  %v3220_v22 = vpop.f32.mrb[40].mxu1 }
 0x214   : > { %v3221_v57 = vpop.f32.mrb[41].mxu1 }
 0x215   : > { %v4706_v61 = vadd.f32 %v3325_v17, %v2111_v56  ;;  %v3222_v1 = vadd.f32 %v3221_v57, %v3220_v22  ;;  %v3223_v27 = vpop.f32.mrb[42].mxu1 }
 0x216   : > { %v3224_v47 = vpop.f32.mrb[43].mxu1 }
 0x217   : > { %v3326_v31 = vpop.f32.mrb[40].mxu0  ;;  %v3225_v10 = vadd.f32 %v3224_v47, %v3223_v27  ;;  %v2124_v42 = vadd.f32 %v3222_v1, %v4629_v43 }
 0x218   : > { %v3327_v33 = vpop.f32.mrb[41].mxu0 }
 0x219   : > { %v3328_v5 = vadd.f32 %v3327_v33, %v3326_v31  ;;  %v3329_v2 = vpop.f32.mrb[42].mxu0  ;;  %v2127_v32 = vadd.f32 %v3225_v10, %v4629_v43 }
 0x21a   : > { %v3330_v11 = vpop.f32.mrb[43].mxu0 }
 0x21b   : > { %v4710_v50 = vadd.f32 %v3328_v5, %v2116_v35  ;;  %v3331_v0 = vadd.f32 %v3330_v11, %v3329_v2  ;;  %v3226_v24 = vpop.f32.mrb[44].mxu1 }
 0x21c   : > { %v3227_v38 = vpop.f32.mrb[45].mxu1 }
 0x21d   : > { %v4712_v7 = vadd.f32 %v3331_v0, %v2119_v46  ;;  %v3228_v45 = vadd.f32 %v3227_v38, %v3226_v24  ;;  %v3229_v9 = vpop.f32.mrb[46].mxu1 }
 0x21e   : > { %v3230_v55 = vpop.f32.mrb[47].mxu1 }
 0x21f   : > { %v3332_v26 = vpop.f32.mrb[44].mxu0  ;;  %v3231_v3 = vadd.f32 %v3230_v55, %v3229_v9  ;;  %v2132_v40 = vadd.f32 %v3228_v45, %v4629_v43 }
 0x220   : > { %v3333_v51 = vpop.f32.mrb[45].mxu0 }
 0x221   : > { %v3334_v12 = vadd.f32 %v3333_v51, %v3332_v26  ;;  %v3335_v48 = vpop.f32.mrb[46].mxu0  ;;  %v2135_v17 = vadd.f32 %v3231_v3, %v4629_v43 }
 0x222   : > { %v3336_v21 = vpop.f32.mrb[47].mxu0 }
 0x223   : > { %v4716_v29 = vadd.f32 %v3334_v12, %v2124_v42  ;;  %v3337_v44 = vadd.f32 %v3336_v21, %v3335_v48  ;;  %v3232_v37 = vpop.f32.mrb[48].mxu1 }
 0x224   : > { %v3233_v36 = vpop.f32.mrb[49].mxu1 }
 0x225   : > { %v4718_v15 = vadd.f32 %v3337_v44, %v2127_v32  ;;  %v3234_v19 = vadd.f32 %v3233_v36, %v3232_v37  ;;  %v3235_v20 = vpop.f32.mrb[50].mxu1 }
 0x226   : > { %v3236_v59 = vpop.f32.mrb[51].mxu1 }
 0x227   : > { %v3338_v13 = vpop.f32.mrb[48].mxu0  ;;  %v3237_v14 = vadd.f32 %v3236_v59, %v3235_v20  ;;  %v2140_v47 = vadd.f32 %v3234_v19, %v4629_v43 }
 0x228   : > { %v3339_v58 = vpop.f32.mrb[49].mxu0 }
 0x229   : > { %v3340_v18 = vadd.f32 %v3339_v58, %v3338_v13  ;;  %v3341_v30 = vpop.f32.mrb[50].mxu0  ;;  %v2143_v26 = vadd.f32 %v3237_v14, %v4629_v43 }
 0x22a   : > { %v3342_v56 = vpop.f32.mrb[51].mxu0 }
 0x22b   : > { %v4722_v22 = vadd.f32 %v3340_v18, %v2132_v40  ;;  %v3343_v31 = vadd.f32 %v3342_v56, %v3341_v30  ;;  %v3238_v1 = vpop.f32.mrb[52].mxu1 }
 0x22c   : > { %v3239_v27 = vpop.f32.mrb[53].mxu1 }
 0x22d   : > { %v4724_v57 = vadd.f32 %v3343_v31, %v2135_v17  ;;  %v3240_v35 = vadd.f32 %v3239_v27, %v3238_v1  ;;  %v3241_v2 = vpop.f32.mrb[54].mxu1 }
 0x22e   : > { %v3242_v46 = vpop.f32.mrb[55].mxu1 }
 0x22f   : > { %v3344_v33 = vpop.f32.mrb[52].mxu0  ;;  %v3243_v0 = vadd.f32 %v3242_v46, %v3241_v2  ;;  %v2148_v21 = vadd.f32 %v3240_v35, %v4629_v43 }
 0x230   : > { %v3345_v5 = vpop.f32.mrb[53].mxu0 }
 0x231   : > { %v3346_v10 = vadd.f32 %v3345_v5, %v3344_v33  ;;  %v3347_v11 = vpop.f32.mrb[54].mxu0  ;;  %v2151_v19 = vadd.f32 %v3243_v0, %v4629_v43 }
 0x232   : > { %v3348_v24 = vpop.f32.mrb[55].mxu0 }
 0x233   : > { %v4728_v38 = vadd.f32 %v3346_v10, %v2140_v47  ;;  %v3349_v45 = vadd.f32 %v3348_v24, %v3347_v11  ;;  %v3244_v9 = vpop.f32.mrb[56].mxu1 }
 0x234   : > { %v3245_v12 = vpop.f32.mrb[57].mxu1 }
 0x235   : > { %v4730_v51 = vadd.f32 %v3349_v45, %v2143_v26  ;;  %v3246_v48 = vadd.f32 %v3245_v12, %v3244_v9  ;;  %v3247_v3 = vpop.f32.mrb[58].mxu1 }
 0x236   : > { %v3248_v37 = vpop.f32.mrb[59].mxu1 }
 0x237   : > { %v3350_v42 = vpop.f32.mrb[56].mxu0  ;;  %v3249_v13 = vadd.f32 %v3248_v37, %v3247_v3  ;;  %v2156_v31 = vadd.f32 %v3246_v48, %v4629_v43 }
 0x238   : > { %v3351_v55 = vpop.f32.mrb[57].mxu0 }
 0x239   : > { %v3352_v32 = vadd.f32 %v3351_v55, %v3350_v42  ;;  %v3353_v44 = vpop.f32.mrb[58].mxu0  ;;  %v2159_v2 = vadd.f32 %v3249_v13, %v4629_v43 }
 0x23a   : > { %v3354_v36 = vpop.f32.mrb[59].mxu0 }
 0x23b   : > { %v4734_v58 = vadd.f32 %v3352_v32, %v2148_v21  ;;  %v3355_v20 = vadd.f32 %v3354_v36, %v3353_v44  ;;  %v3250_v18 = vpop.f32.mrb[60].mxu1 }
 0x23c   : > { %v3251_v59 = vpop.f32.mrb[61].mxu1 }
 0x23d   : > { %v4736_v40 = vadd.f32 %v3355_v20, %v2151_v19  ;;  %v3252_v14 = vadd.f32 %v3251_v59, %v3250_v18  ;;  %v3253_v17 = vpop.f32.mrb[62].mxu1 }
 0x23e   : > { %v3254_v27 = vpop.f32.mrb[63].mxu1 }
 0x23f   : > { %v3356_v30 = vpop.f32.mrb[60].mxu0  ;;  %v3255_v35 = vadd.f32 %v3254_v27, %v3253_v17  ;;  %v2164_v42 = vadd.f32 %v3252_v14, %v4629_v43 }
 0x240   : > { %v3357_v56 = vpop.f32.mrb[61].mxu0 }
 0x241   : > { %v3358_v1 = vadd.f32 %v3357_v56, %v3356_v30  ;;  %v3359_v33 = vpop.f32.mrb[62].mxu0  ;;  %v2167_v44 = vadd.f32 %v3255_v35, %v4629_v43 }
 0x242   : > { %v3360_v5 = vpop.f32.mrb[63].mxu0 }
 0x243   : > { %v4740_v47 = vadd.f32 %v3358_v1, %v2156_v31  ;;  %v3361_v10 = vadd.f32 %v3360_v5, %v3359_v33  ;;  %v3384_v46 = vpop.f32.mrb[64].mxu1 }
 0x244   : > { %v3385_v24 = vpop.f32.mrb[65].mxu1 }
 0x245   : > { %v4742_v11 = vadd.f32 %v3361_v10, %v2159_v2  ;;  %v3386_v45 = vadd.f32 %v3385_v24, %v3384_v46  ;;  %v3387_v9 = vpop.f32.mrb[66].mxu1 }
 0x246   : > { %v3388_v55 = vpop.f32.mrb[67].mxu1 }
 0x247   : > { %v3362_v0 = vpop.f32.mrb[64].mxu0  ;;  %v2366_v3 = vadd.f32 %v3386_v45, %v4638_v60  ;;  %v3389_v32 = vadd.f32 %v3388_v55, %v3387_v9 }
 0x248   : > { %v3363_v26 = vpop.f32.mrb[65].mxu0 }
 0x249   : > { %v3364_v12 = vadd.f32 %v3363_v26, %v3362_v0  ;;  %v3365_v48 = vpop.f32.mrb[66].mxu0  ;;  %v2369_v36 = vadd.f32 %v3389_v32, %v4643_v4 }
 0x24a   : > { %v3366_v21 = vpop.f32.mrb[67].mxu0 }
 0x24b   : > { %v4747_v37 = vadd.f32 %v3364_v12, %v2164_v42  ;;  %v3367_v13 = vadd.f32 %v3366_v21, %v3365_v48  ;;  %v3390_v20 = vpop.f32.mrb[68].mxu1 }
 0x24c   : > { %v3391_v30 = vpop.f32.mrb[69].mxu1 }
 0x24d   : > { %v4750_v19 = vadd.f32 %v3367_v13, %v2167_v44  ;;  %v3392_v59 = vadd.f32 %v3391_v30, %v3390_v20  ;;  %v3393_v56 = vpop.f32.mrb[70].mxu1 }
 0x24e   : > { %v3394_v60 = vpop.f32.mrb[71].mxu1 }
 0x24f   : > { %v3496_v18 = vpop.f32.mrb[68].mxu0  ;;  %v2374_v1 = vadd.f32 %v3392_v59, %v4648_v63  ;;  %v3395_v33 = vadd.f32 %v3394_v60, %v3393_v56 }
 0x250   : > { %v3497_v14 = vpop.f32.mrb[69].mxu0 }
 0x251   : > { %v3498_v17 = vadd.f32 %v3497_v14, %v3496_v18  ;;  %v3499_v31 = vpop.f32.mrb[70].mxu0  ;;  %v2377_v4 = vadd.f32 %v3395_v33, %v4653_v52 }
 0x252   : > { %v3500_v43 = vpop.f32.mrb[71].mxu0 }
 0x253   : > { %v3501_v27 = vadd.f32 %v3500_v43, %v3499_v31  ;;  %v4753_v35 = vadd.f32 %v3498_v17, %v2366_v3  ;;  %v3396_v2 = vpop.f32.mrb[72].mxu1 }
 0x254   : > { %v3397_v46 = vpop.f32.mrb[73].mxu1 }
 0x255   : > { %v4756_v5 = vadd.f32 %v3501_v27, %v2369_v36  ;;  %v3398_v0 = vadd.f32 %v3397_v46, %v3396_v2  ;;  %v3399_v26 = vpop.f32.mrb[74].mxu1 }
 0x256   : > { %v3400_v42 = vpop.f32.mrb[75].mxu1 }
 0x257   : > { %v3502_v10 = vpop.f32.mrb[72].mxu0  ;;  %v2382_v63 = vadd.f32 %v3398_v0, %v4660_v62  ;;  %v3401_v12 = vadd.f32 %v3400_v42, %v3399_v26 }
 0x258   : > { %v3503_v24 = vpop.f32.mrb[73].mxu0 }
 0x259   : > { %v3504_v45 = vadd.f32 %v3503_v24, %v3502_v10  ;;  %v3505_v9 = vpop.f32.mrb[74].mxu0  ;;  %v2385_v52 = vadd.f32 %v3401_v12, %v4665_v8 }
 0x25a   : > { %v3506_v48 = vpop.f32.mrb[75].mxu0 }
 0x25b   : > { %v3507_v55 = vadd.f32 %v3506_v48, %v3505_v9  ;;  %v4759_v3 = vadd.f32 %v3504_v45, %v2374_v1  ;;  %v3402_v32 = vpop.f32.mrb[76].mxu1 }
 0x25c   : > { %v3403_v13 = vpop.f32.mrb[77].mxu1 }
 0x25d   : > { %v4762_v21 = vadd.f32 %v3507_v55, %v2377_v4  ;;  %v3404_v36 = vadd.f32 %v3403_v13, %v3402_v32  ;;  %v3405_v18 = vpop.f32.mrb[78].mxu1 }
 0x25e   : > { %v3406_v14 = vpop.f32.mrb[79].mxu1 }
 0x25f   : > { %v3508_v44 = vpop.f32.mrb[76].mxu0  ;;  %v2390_v62 = vadd.f32 %v3404_v36, %v4670_v25  ;;  %v3407_v56 = vadd.f32 %v3406_v14, %v3405_v18 }
 0x260   : > { %v3509_v20 = vpop.f32.mrb[77].mxu0 }
 0x261   : > { %v3510_v30 = vadd.f32 %v3509_v20, %v3508_v44  ;;  %v3511_v59 = vpop.f32.mrb[78].mxu0  ;;  %v2393_v8 = vadd.f32 %v3407_v56, %v4674_v39 }
 0x262   : > { %v3512_v17 = vpop.f32.mrb[79].mxu0 }
 0x263   : > { %v3513_v31 = vadd.f32 %v3512_v17, %v3511_v59  ;;  %v4765_v60 = vadd.f32 %v3510_v30, %v2382_v63  ;;  %v3408_v33 = vpop.f32.mrb[80].mxu1 }
 0x264   : > { %v3409_v27 = vpop.f32.mrb[81].mxu1 }
 0x265   : > { %v4768_v1 = vadd.f32 %v3513_v31, %v2385_v52  ;;  %v3410_v4 = vadd.f32 %v3409_v27, %v3408_v33  ;;  %v3411_v10 = vpop.f32.mrb[82].mxu1 }
 0x266   : > { %v3412_v24 = vpop.f32.mrb[83].mxu1 }
 0x267   : > { %v3514_v43 = vpop.f32.mrb[80].mxu0  ;;  %v2398_v25 = vadd.f32 %v3410_v4, %v4678_v41  ;;  %v3413_v26 = vadd.f32 %v3412_v24, %v3411_v10 }
 0x268   : > { %v3515_v2 = vpop.f32.mrb[81].mxu0 }
 0x269   : > { %v3516_v46 = vadd.f32 %v3515_v2, %v3514_v43  ;;  %v3517_v0 = vpop.f32.mrb[82].mxu0  ;;  %v2401_v39 = vadd.f32 %v3413_v26, %v4680_v6 }
 0x26a   : > { %v3518_v45 = vpop.f32.mrb[83].mxu0 }
 0x26b   : > { %v3519_v9 = vadd.f32 %v3518_v45, %v3517_v0  ;;  %v4771_v42 = vadd.f32 %v3516_v46, %v2390_v62  ;;  %v3414_v12 = vpop.f32.mrb[84].mxu1 }
 0x26c   : > { %v3415_v55 = vpop.f32.mrb[85].mxu1 }
 0x26d   : > { %v4774_v63 = vadd.f32 %v3519_v9, %v2393_v8  ;;  %v3416_v52 = vadd.f32 %v3415_v55, %v3414_v12  ;;  %v3417_v44 = vpop.f32.mrb[86].mxu1 }
 0x26e   : > { %v3418_v20 = vpop.f32.mrb[87].mxu1 }
 0x26f   : > { %v3520_v48 = vpop.f32.mrb[84].mxu0  ;;  %v2406_v41 = vadd.f32 %v3416_v52, %v4684_v28  ;;  %v3419_v18 = vadd.f32 %v3418_v20, %v3417_v44 }
 0x270   : > { %v3521_v32 = vpop.f32.mrb[85].mxu0 }
 0x271   : > { %v3522_v13 = vadd.f32 %v3521_v32, %v3520_v48  ;;  %v3523_v36 = vpop.f32.mrb[86].mxu0  ;;  %v2409_v6 = vadd.f32 %v3419_v18, %v4686_v49 }
 0x272   : > { %v3524_v30 = vpop.f32.mrb[87].mxu0 }
 0x273   : > { %v3525_v59 = vadd.f32 %v3524_v30, %v3523_v36  ;;  %v4777_v14 = vadd.f32 %v3522_v13, %v2398_v25  ;;  %v3420_v56 = vpop.f32.mrb[88].mxu1 }
 0x274   : > { %v3421_v31 = vpop.f32.mrb[89].mxu1 }
 0x275   : > { %v4780_v62 = vadd.f32 %v3525_v59, %v2401_v39  ;;  %v3422_v8 = vadd.f32 %v3421_v31, %v3420_v56  ;;  %v3423_v43 = vpop.f32.mrb[90].mxu1 }
 0x276   : > { %v3424_v2 = vpop.f32.mrb[91].mxu1 }
 0x277   : > { %v3526_v17 = vpop.f32.mrb[88].mxu0  ;;  %v2414_v28 = vadd.f32 %v3422_v8, %v4690_v16  ;;  %v3425_v10 = vadd.f32 %v3424_v2, %v3423_v43 }
 0x278   : > { %v3527_v33 = vpop.f32.mrb[89].mxu0 }
 0x279   : > { %v3528_v27 = vadd.f32 %v3527_v33, %v3526_v17  ;;  %v3529_v4 = vpop.f32.mrb[90].mxu0  ;;  %v2417_v49 = vadd.f32 %v3425_v10, %v4692_v53 }
 0x27a   : > { %v3530_v46 = vpop.f32.mrb[91].mxu0 }
 0x27b   : > { %v3531_v0 = vadd.f32 %v3530_v46, %v3529_v4  ;;  %v4783_v24 = vadd.f32 %v3528_v27, %v2406_v41  ;;  %v3426_v26 = vpop.f32.mrb[92].mxu1 }
 0x27c   : > { %v3427_v9 = vpop.f32.mrb[93].mxu1 }
 0x27d   : > { %v4786_v25 = vadd.f32 %v3531_v0, %v2409_v6  ;;  %v3428_v39 = vadd.f32 %v3427_v9, %v3426_v26  ;;  %v3429_v48 = vpop.f32.mrb[94].mxu1 }
 0x27e   : > { %v3430_v32 = vpop.f32.mrb[95].mxu1 }
 0x27f   : > { %v3532_v45 = vpop.f32.mrb[92].mxu0  ;;  %v2422_v16 = vadd.f32 %v3428_v39, %v4696_v34  ;;  %v3431_v44 = vadd.f32 %v3430_v32, %v3429_v48 }
 0x280   : > { %v3533_v12 = vpop.f32.mrb[93].mxu0 }
 0x281   : > { %v3534_v55 = vadd.f32 %v3533_v12, %v3532_v45  ;;  %v3535_v52 = vpop.f32.mrb[94].mxu0  ;;  %v2425_v53 = vadd.f32 %v3431_v44, %v4700_v23 }
 0x282   : > { %v3536_v13 = vpop.f32.mrb[95].mxu0 }
 0x283   : > { %v3537_v36 = vadd.f32 %v3536_v13, %v3535_v52  ;;  %v4789_v20 = vadd.f32 %v3534_v55, %v2414_v28  ;;  %v3432_v18 = vpop.f32.mrb[96].mxu1 }
 0x284   : > { %v3433_v59 = vpop.f32.mrb[97].mxu1 }
 0x285   : > { %v4792_v41 = vadd.f32 %v3537_v36, %v2417_v49  ;;  %v3434_v6 = vadd.f32 %v3433_v59, %v3432_v18  ;;  %v3435_v17 = vpop.f32.mrb[98].mxu1 }
 0x286   : > { %v3436_v33 = vpop.f32.mrb[99].mxu1 }
 0x287   : > { %v3538_v30 = vpop.f32.mrb[96].mxu0  ;;  %v2430_v34 = vadd.f32 %v3434_v6, %v4704_v54  ;;  %v3437_v43 = vadd.f32 %v3436_v33, %v3435_v17 }
 0x288   : > { %v3539_v56 = vpop.f32.mrb[97].mxu0 }
 0x289   : > { %v3540_v31 = vadd.f32 %v3539_v56, %v3538_v30  ;;  %v3541_v8 = vpop.f32.mrb[98].mxu0  ;;  %v2433_v23 = vadd.f32 %v3437_v43, %v4706_v61 }
 0x28a   : > { %v3542_v27 = vpop.f32.mrb[99].mxu0 }
 0x28b   : > { %v3543_v4 = vadd.f32 %v3542_v27, %v3541_v8  ;;  %v4795_v2 = vadd.f32 %v3540_v31, %v2422_v16  ;;  %v3438_v10 = vpop.f32.mrb[100].mxu1 }
 0x28c   : > { %v3439_v0 = vpop.f32.mrb[101].mxu1 }
 0x28d   : > { %v4798_v28 = vadd.f32 %v3543_v4, %v2425_v53  ;;  %v3440_v49 = vadd.f32 %v3439_v0, %v3438_v10  ;;  %v3441_v45 = vpop.f32.mrb[102].mxu1 }
 0x28e   : > { %v3442_v12 = vpop.f32.mrb[103].mxu1 }
 0x28f   : > { %v3544_v46 = vpop.f32.mrb[100].mxu0  ;;  %v2438_v54 = vadd.f32 %v3440_v49, %v4710_v50  ;;  %v3443_v48 = vadd.f32 %v3442_v12, %v3441_v45 }
 0x290   : > { %v3545_v26 = vpop.f32.mrb[101].mxu0 }
 0x291   : > { %v3546_v9 = vadd.f32 %v3545_v26, %v3544_v46  ;;  %v3547_v39 = vpop.f32.mrb[102].mxu0  ;;  %v2441_v61 = vadd.f32 %v3443_v48, %v4712_v7 }
 0x292   : > { %v3548_v55 = vpop.f32.mrb[103].mxu0 }
 0x293   : > { %v3549_v52 = vadd.f32 %v3548_v55, %v3547_v39  ;;  %v4801_v32 = vadd.f32 %v3546_v9, %v2430_v34  ;;  %v3444_v44 = vpop.f32.mrb[104].mxu1 }
 0x294   : > { %v3445_v36 = vpop.f32.mrb[105].mxu1 }
 0x295   : > { %v4804_v16 = vadd.f32 %v3549_v52, %v2433_v23  ;;  %v3446_v53 = vadd.f32 %v3445_v36, %v3444_v44  ;;  %v3447_v30 = vpop.f32.mrb[106].mxu1 }
 0x296   : > { %v3448_v56 = vpop.f32.mrb[107].mxu1 }
 0x297   : > { %v3550_v13 = vpop.f32.mrb[104].mxu0  ;;  %v2446_v50 = vadd.f32 %v3446_v53, %v4716_v29  ;;  %v3449_v17 = vadd.f32 %v3448_v56, %v3447_v30 }
 0x298   : > { %v3551_v18 = vpop.f32.mrb[105].mxu0 }
 0x299   : > { %v3552_v59 = vadd.f32 %v3551_v18, %v3550_v13  ;;  %v3553_v6 = vpop.f32.mrb[106].mxu0  ;;  %v2449_v7 = vadd.f32 %v3449_v17, %v4718_v15 }
 0x29a   : > { %v3554_v31 = vpop.f32.mrb[107].mxu0 }
 0x29b   : > { %v3555_v8 = vadd.f32 %v3554_v31, %v3553_v6  ;;  %v4807_v33 = vadd.f32 %v3552_v59, %v2438_v54  ;;  %v3450_v43 = vpop.f32.mrb[108].mxu1 }
 0x29c   : > { %v3451_v4 = vpop.f32.mrb[109].mxu1 }
 0x29d   : > { %v4810_v34 = vadd.f32 %v3555_v8, %v2441_v61  ;;  %v3452_v23 = vadd.f32 %v3451_v4, %v3450_v43  ;;  %v3453_v46 = vpop.f32.mrb[110].mxu1 }
 0x29e   : > { %v3454_v26 = vpop.f32.mrb[111].mxu1 }
 0x29f   : > { %v3556_v27 = vpop.f32.mrb[108].mxu0  ;;  %v2454_v29 = vadd.f32 %v3452_v23, %v4722_v22  ;;  %v3455_v45 = vadd.f32 %v3454_v26, %v3453_v46 }
 0x2a0   : > { %v3557_v10 = vpop.f32.mrb[109].mxu0 }
 0x2a1   : > { %v3558_v0 = vadd.f32 %v3557_v10, %v3556_v27  ;;  %v3559_v49 = vpop.f32.mrb[110].mxu0  ;;  %v2457_v15 = vadd.f32 %v3455_v45, %v4724_v57 }
 0x2a2   : > { %v3560_v9 = vpop.f32.mrb[111].mxu0 }
 0x2a3   : > { %v3561_v39 = vadd.f32 %v3560_v9, %v3559_v49  ;;  %v4813_v12 = vadd.f32 %v3558_v0, %v2446_v50  ;;  %v3456_v48 = vpop.f32.mrb[112].mxu1 }
 0x2a4   : > { %v3457_v52 = vpop.f32.mrb[113].mxu1 }
 0x2a5   : > { %v4816_v54 = vadd.f32 %v3561_v39, %v2449_v7  ;;  %v3458_v61 = vadd.f32 %v3457_v52, %v3456_v48  ;;  %v3459_v13 = vpop.f32.mrb[114].mxu1 }
 0x2a6   : > { %v3460_v18 = vpop.f32.mrb[115].mxu1 }
 0x2a7   : > { %v3562_v55 = vpop.f32.mrb[112].mxu0  ;;  %v2462_v22 = vadd.f32 %v3458_v61, %v4728_v38  ;;  %v3461_v30 = vadd.f32 %v3460_v18, %v3459_v13 }
 0x2a8   : > { %v3563_v44 = vpop.f32.mrb[113].mxu0 }
 0x2a9   : > { %v3564_v36 = vadd.f32 %v3563_v44, %v3562_v55  ;;  %v3565_v53 = vpop.f32.mrb[114].mxu0  ;;  %v2465_v57 = vadd.f32 %v3461_v30, %v4730_v51 }
 0x2aa   : > { %v3566_v59 = vpop.f32.mrb[115].mxu0 }
 0x2ab   : > { %v3567_v6 = vadd.f32 %v3566_v59, %v3565_v53  ;;  %v4819_v56 = vadd.f32 %v3564_v36, %v2454_v29  ;;  %v3462_v17 = vpop.f32.mrb[116].mxu1 }
 0x2ac   : > { %v3463_v8 = vpop.f32.mrb[117].mxu1 }
 0x2ad   : > { %v4822_v50 = vadd.f32 %v3567_v6, %v2457_v15  ;;  %v3464_v7 = vadd.f32 %v3463_v8, %v3462_v17  ;;  %v3465_v27 = vpop.f32.mrb[118].mxu1 }
 0x2ae   : > { %v3466_v10 = vpop.f32.mrb[119].mxu1 }
 0x2af   : > { %v3568_v31 = vpop.f32.mrb[116].mxu0  ;;  %v2470_v38 = vadd.f32 %v3464_v7, %v4734_v58  ;;  %v3467_v46 = vadd.f32 %v3466_v10, %v3465_v27 }
 0x2b0   : > { %v3569_v43 = vpop.f32.mrb[117].mxu0 }
 0x2b1   : > { %v3570_v4 = vadd.f32 %v3569_v43, %v3568_v31  ;;  %v3571_v23 = vpop.f32.mrb[118].mxu0  ;;  %v2473_v51 = vadd.f32 %v3467_v46, %v4736_v40 }
 0x2b2   : > { %v3572_v0 = vpop.f32.mrb[119].mxu0 }
 0x2b3   : > { %v3573_v49 = vadd.f32 %v3572_v0, %v3571_v23  ;;  %v4825_v26 = vadd.f32 %v3570_v4, %v2462_v22  ;;  %v3468_v45 = vpop.f32.mrb[120].mxu1 }
 0x2b4   : > { %v3469_v39 = vpop.f32.mrb[121].mxu1 }
 0x2b5   : > { %v4828_v29 = vadd.f32 %v3573_v49, %v2465_v57  ;;  %v3470_v15 = vadd.f32 %v3469_v39, %v3468_v45  ;;  %v3471_v55 = vpop.f32.mrb[122].mxu1 }
 0x2b6   : > { %v3472_v44 = vpop.f32.mrb[123].mxu1 }
 0x2b7   : > { %v3574_v9 = vpop.f32.mrb[120].mxu0  ;;  %v2478_v58 = vadd.f32 %v3470_v15, %v4740_v47  ;;  %v3473_v13 = vadd.f32 %v3472_v44, %v3471_v55 }
 0x2b8   : > { %v3575_v48 = vpop.f32.mrb[121].mxu0 }
 0x2b9   : > { %v3576_v52 = vadd.f32 %v3575_v48, %v3574_v9  ;;  %v3577_v61 = vpop.f32.mrb[122].mxu0  ;;  %v2481_v40 = vadd.f32 %v3473_v13, %v4742_v11 }
 0x2ba   : > { %v3578_v36 = vpop.f32.mrb[123].mxu0 }
 0x2bb   : > { %v3579_v53 = vadd.f32 %v3578_v36, %v3577_v61  ;;  %v4831_v18 = vadd.f32 %v3576_v52, %v2470_v38  ;;  %v3474_v30 = vpop.f32.mrb[124].mxu1 }
 0x2bc   : > { %v3475_v6 = vpop.f32.mrb[125].mxu1 }
 0x2bd   : > { %v4834_v22 = vadd.f32 %v3579_v53, %v2473_v51  ;;  %v3476_v57 = vadd.f32 %v3475_v6, %v3474_v30  ;;  %v3477_v31 = vpop.f32.mrb[126].mxu1 }
 0x2be   : > { %v3478_v43 = vpop.f32.mrb[127].mxu1 }
 0x2bf   : > { %v3580_v59 = vpop.f32.mrb[124].mxu0  ;;  %v2486_v47 = vadd.f32 %v3476_v57, %v4747_v37  ;;  %v3479_v27 = vadd.f32 %v3478_v43, %v3477_v31 }
 0x2c0   : > { %v3581_v17 = vpop.f32.mrb[125].mxu0 }
 0x2c1   : > { %v3582_v8 = vadd.f32 %v3581_v17, %v3580_v59  ;;  %v3583_v7 = vpop.f32.mrb[126].mxu0  ;;  %v2489_v11 = vadd.f32 %v3479_v27, %v4750_v19 }
 0x2c2   : > { %v3584_v4 = vpop.f32.mrb[127].mxu0 }
 0x2c3   : > { %v3585_v23 = vadd.f32 %v3584_v4, %v3583_v7  ;;  %v4837_v10 = vadd.f32 %v3582_v8, %v2478_v58  ;;  %v3657_v46 = vpop.f32.mrb[128].mxu1 }
 0x2c4   : > { %v4850_v0 = vadd.f32 %v3657_v46, %v4795_v2  ;;  %v2735_v49 = vpop.f32.mrb[129].mxu1 }
 0x2c5   : > { %v4840_v38 = vadd.f32 %v3585_v23, %v2481_v40  ;;  %v4853_v19 = vadd.f32 %v2735_v49, %v4789_v20  ;;  %v3658_v45 = vpop.f32.mrb[130].mxu1 }
 0x2c6   : > { %2828 = vst [vmem:[%s4847_s13 + $0x70] sm:$0xff] %v4850_v0  ;;  %v4858_v15 = vadd.f32 %v3658_v45, %v4798_v28  ;;  %v2738_v48 = vpop.f32.mrb[131].mxu1 }
 0x2c7   : > { %v3586_v37 = vpop.f32.mrb[128].mxu0  ;;  %2826 = vst [vmem:[%s4847_s13 + $0x60] sm:$0xff] %v4853_v19  ;;  %v4863_v55 = vadd.f32 %v2738_v48, %v4792_v41 }
 0x2c8   : > { %v3587_v51 = vpop.f32.mrb[129].mxu0  ;;  %2829 = vst [vmem:[%s4847_s13 + $0x78] sm:$0xff] %v4858_v15 }
 0x2c9   : > { %v3588_v9 = vadd.f32 %v3587_v51, %v3586_v37  ;;  %v3589_v39 = vpop.f32.mrb[130].mxu0  ;;  %2827 = vst [vmem:[%s4847_s13 + $0x68] sm:$0xff] %v4863_v55 }
 0x2ca   : > { %v3590_v2 = vpop.f32.mrb[131].mxu0 }
 0x2cb   : > { %v3591_v20 = vadd.f32 %v3590_v2, %v3589_v39  ;;  %v4867_v52 = vadd.f32 %v3588_v9, %v2486_v47  ;;  %v3661_v28 = vpop.f32.mrb[132].mxu1 }
 0x2cc   : > { %v4874_v58 = vadd.f32 %v3661_v28, %v4807_v33  ;;  %v2751_v13 = vpop.f32.mrb[133].mxu1 }
 0x2cd   : > { %v4871_v61 = vadd.f32 %v3591_v20, %v2489_v11  ;;  %v4878_v53 = vadd.f32 %v2751_v13, %v4801_v32  ;;  %v3662_v40 = vpop.f32.mrb[134].mxu1 }
 0x2ce   : > { %2832 = vst [vmem:[%s4847_s13 + $0x90] sm:$0xff] %v4874_v58  ;;  %v4884_v33 = vadd.f32 %v3662_v40, %v4810_v34  ;;  %v2754_v6 = vpop.f32.mrb[135].mxu1 }
 0x2cf   : > { %v3645_v44 = vpop.f32.mrb[132].mxu0  ;;  %2830 = vst [vmem:[%s4847_s13 + $0x80] sm:$0xff] %v4878_v53  ;;  %v4891_v32 = vadd.f32 %v2754_v6, %v4804_v16 }
 0x2d0   : > { %v2696_v41 = vadd.f32 %v3645_v44, %v4759_v3  ;;  %v2687_v36 = vpop.f32.mrb[133].mxu0  ;;  %2833 = vst [vmem:[%s4847_s13 + $0x98] sm:$0xff] %v4884_v33 }
 0x2d1   : > { %v2688_v30 = vadd.f32 %v2687_v36, %v4753_v35  ;;  %v3646_v59 = vpop.f32.mrb[134].mxu0  ;;  %2831 = vst [vmem:[%s4847_s13 + $0x88] sm:$0xff] %v4891_v32 }
 0x2d2   : > { %2816 = vst [vmem:[%s4847_s13 + $0x10] sm:$0xff] %v2696_v41  ;;  %v2699_v3 = vadd.f32 %v3646_v59, %v4762_v21  ;;  %v2690_v57 = vpop.f32.mrb[135].mxu0  ;;  %v2886_v7 = vmul.f32 %v2696_v41, %v2696_v41 }
 0x2d3   : > { %2814 = vst [vmem:[%s4847_s13] sm:$0xff] %v2688_v30  ;;  %v2691_v17 = vadd.f32 %v2690_v57, %v4756_v5  ;;  %v2884_v35 = vmul.f32 %v2688_v30, %v2688_v30  ;;  %v3665_v8 = vpop.f32.mrb[136].mxu1 }
 0x2d4   : > { %2817 = vst [vmem:[%s4847_s13 + $0x18] sm:$0xff] %v2699_v3  ;;  %v4902_v47 = vadd.f32 %v3665_v8, %v4819_v56  ;;  %v2767_v27 = vpop.f32.mrb[137].mxu1  ;;  %v2887_v46 = vmul.f32 %v2699_v3, %v2699_v3 }
 0x2d5   : > { %2815 = vst [vmem:[%s4847_s13 + $0x8] sm:$0xff] %v2691_v17  ;;  %v2846_v34 = vadd.f32 %v2691_v17, %v2688_v30  ;;  %v2885_v31 = vmul.f32 %v2691_v17, %v2691_v17  ;;  %v4906_v23 = vadd.f32 %v2767_v27, %v4813_v12  ;;  %v3666_v11 = vpop.f32.mrb[138].mxu1 }
 0x2d6   : > { %2836 = vst [vmem:[%s4847_s13 + $0xb0] sm:$0xff] %v4902_v47  ;;  %v2770_v45 = vpop.f32.mrb[139].mxu1  ;;  %v4916_v12 = vadd.f32 %v3666_v11, %v4822_v50 }
 0x2d7   : > { %v2847_v21 = vadd.f32 %v2846_v34, %v2696_v41  ;;  %v2916_v43 = vadd.f32 %v2885_v31, %v2884_v35  ;;  %v3649_v16 = vpop.f32.mrb[136].mxu0  ;;  %2834 = vst [vmem:[%s4847_s13 + $0xa0] sm:$0xff] %v4906_v23  ;;  %v4924_v20 = vadd.f32 %v2770_v45, %v4816_v54 }
 0x2d8   : > { %v2712_v5 = vadd.f32 %v3649_v16, %v4771_v42  ;;  %v2703_v4 = vpop.f32.mrb[137].mxu0  ;;  %2837 = vst [vmem:[%s4847_s13 + $0xb8] sm:$0xff] %v4916_v12 }
 0x2d9   : > { %v2917_v37 = vadd.f32 %v2916_v43, %v2886_v7  ;;  %v2704_v49 = vadd.f32 %v2703_v4, %v4765_v60  ;;  %v2848_v51 = vadd.f32 %v2847_v21, %v2699_v3  ;;  %v3650_v56 = vpop.f32.mrb[138].mxu0  ;;  %2835 = vst [vmem:[%s4847_s13 + $0xa8] sm:$0xff] %v4924_v20 }
 0x2da   : > { %2820 = vst [vmem:[%s4847_s13 + $0x30] sm:$0xff] %v2712_v5  ;;  %v2715_v42 = vadd.f32 %v3650_v56, %v4774_v63  ;;  %v2706_v9 = vpop.f32.mrb[139].mxu0  ;;  %v2890_v13 = vmul.f32 %v2712_v5, %v2712_v5 }
 0x2db   : > { %2818 = vst [vmem:[%s4847_s13 + $0x20] sm:$0xff] %v2704_v49  ;;  %v2849_v39 = vadd.f32 %v2848_v51, %v2704_v49  ;;  %v2888_v48 = vmul.f32 %v2704_v49, %v2704_v49  ;;  %v2918_v2 = vadd.f32 %v2917_v37, %v2887_v46  ;;  %v2707_v60 = vadd.f32 %v2706_v9, %v4768_v1  ;;  %v3669_v50 = vpop.f32.mrb[140].mxu1 }
 0x2dc   : > { %2821 = vst [vmem:[%s4847_s13 + $0x38] sm:$0xff] %v2715_v42  ;;  %v4930_v40 = vadd.f32 %v3669_v50, %v4831_v18  ;;  %v2783_v30 = vpop.f32.mrb[141].mxu1  ;;  %v2891_v57 = vmul.f32 %v2715_v42, %v2715_v42 }
 0x2dd   : > { %v2919_v28 = vadd.f32 %v2918_v2, %v2888_v48  ;;  %2819 = vst [vmem:[%s4847_s13 + $0x28] sm:$0xff] %v2707_v60  ;;  %v2850_v44 = vadd.f32 %v2849_v39, %v2707_v60  ;;  %v2889_v63 = vmul.f32 %v2707_v60, %v2707_v60  ;;  %v4934_v6 = vadd.f32 %v2783_v30, %v4825_v26  ;;  %v3670_v3 = vpop.f32.mrb[142].mxu1 }
 0x2de   : > { %2840 = vst [vmem:[%s4847_s13 + $0xd0] sm:$0xff] %v4930_v40  ;;  %v2786_v31 = vpop.f32.mrb[143].mxu1  ;;  %v4944_v26 = vadd.f32 %v3670_v3, %v4834_v22 }
 0x2df   : > { %v2851_v41 = vadd.f32 %v2850_v44, %v2712_v5  ;;  %v2920_v36 = vadd.f32 %v2919_v28, %v2889_v63  ;;  %v3653_v1 = vpop.f32.mrb[140].mxu0  ;;  %2838 = vst [vmem:[%s4847_s13 + $0xc0] sm:$0xff] %v4934_v6  ;;  %v4952_v16 = vadd.f32 %v2786_v31, %v4828_v29  ;;  %v2898_v28 = vmul.f32 %v4850_v0, %v4850_v0 }
 0x2e0   : > { %v2728_v54 = vadd.f32 %v3653_v1, %v4783_v24  ;;  %v2719_v59 = vpop.f32.mrb[141].mxu0  ;;  %2841 = vst [vmem:[%s4847_s13 + $0xd8] sm:$0xff] %v4944_v26  ;;  %v2899_v63 = vmul.f32 %v4858_v15, %v4858_v15 }
 0x2e1   : > { %v2921_v17 = vadd.f32 %v2920_v36, %v2890_v13  ;;  %v2720_v35 = vadd.f32 %v2719_v59, %v4777_v14  ;;  %v2852_v34 = vadd.f32 %v2851_v41, %v2715_v42  ;;  %v3654_v18 = vpop.f32.mrb[142].mxu0  ;;  %2839 = vst [vmem:[%s4847_s13 + $0xc8] sm:$0xff] %v4952_v16  ;;  %v2900_v13 = vmul.f32 %v4878_v53, %v4878_v53 }
 0x2e2   : > { %2824 = vst [vmem:[%s4847_s13 + $0x50] sm:$0xff] %v2728_v54  ;;  %v2731_v24 = vadd.f32 %v3654_v18, %v4786_v25  ;;  %v2722_v8 = vpop.f32.mrb[143].mxu0  ;;  %v2894_v4 = vmul.f32 %v2728_v54, %v2728_v54 }
 0x2e3   : > { %2822 = vst [vmem:[%s4847_s13 + $0x40] sm:$0xff] %v2720_v35  ;;  %v2853_v7 = vadd.f32 %v2852_v34, %v2720_v35  ;;  %v2892_v21 = vmul.f32 %v2720_v35, %v2720_v35  ;;  %v2922_v43 = vadd.f32 %v2921_v17, %v2891_v57  ;;  %v2723_v14 = vadd.f32 %v2722_v8, %v4780_v62  ;;  %v3673_v22 = vpop.f32.mrb[144].mxu1 }
 0x2e4   : > { %2825 = vst [vmem:[%s4847_s13 + $0x58] sm:$0xff] %v2731_v24  ;;  %v4958_v62 = vadd.f32 %v3673_v22, %v4867_v52  ;;  %v2799_v37 = vpop.f32.mrb[145].mxu1  ;;  %v2895_v51 = vmul.f32 %v2731_v24, %v2731_v24  ;;  %v2896_v52 = vmul.f32 %v4853_v19, %v4853_v19 }
 0x2e5   : > { %v2923_v27 = vadd.f32 %v2922_v43, %v2892_v21  ;;  %2823 = vst [vmem:[%s4847_s13 + $0x48] sm:$0xff] %v2723_v14  ;;  %v2854_v25 = vadd.f32 %v2853_v7, %v2723_v14  ;;  %v2893_v5 = vmul.f32 %v2723_v14, %v2723_v14  ;;  %v2800_v29 = vadd.f32 %v2799_v37, %v4837_v10  ;;  %v3674_v49 = vpop.f32.mrb[146].mxu1 }
 0x2e6   : > { %2844 = vst [vmem:[%s4847_s13 + $0xf0] sm:$0xff] %v4958_v62  ;;  %v4964_v42 = vadd.f32 %v3674_v49, %v4871_v61  ;;  %v2802_v9 = vpop.f32.mrb[147].mxu1  ;;  %v2897_v10 = vmul.f32 %v4863_v55, %v4863_v55  ;;  %v2909_v14 = vmul.f32 %v4952_v16, %v4952_v16 }
 0x2e7   : > { %v2855_v11 = vadd.f32 %v2854_v25, %v2728_v54  ;;  %v2924_v46 = vadd.f32 %v2923_v27, %v2893_v5  ;;  %2842 = vst [vmem:[%s4847_s13 + $0xe0] sm:$0xff] %v2800_v29  ;;  %v2803_v39 = vadd.f32 %v2802_v9, %v4840_v38 }
 0x2e8   : > { %2845 = vst [vmem:[%s4847_s13 + $0xf8] sm:$0xff] %v4964_v42 }
 0x2e9   : > { %v2856_v56 = vadd.f32 %v2855_v11, %v2731_v24  ;;  %v2925_v45 = vadd.f32 %v2924_v46, %v2894_v4  ;;  %2843 = vst [vmem:[%s4847_s13 + $0xe8] sm:$0xff] %v2803_v39  ;;  %v2912_v11 = vmul.f32 %v2800_v29, %v2800_v29 }
 0x2eb   : > { %v2857_v48 = vadd.f32 %v2856_v56, %v4853_v19  ;;  %v2926_v2 = vadd.f32 %v2925_v45, %v2895_v51  ;;  %v2914_v51 = vmul.f32 %v4958_v62, %v4958_v62  ;;  %v2915_v45 = vmul.f32 %v4964_v42, %v4964_v42 }
 0x2ed   : > { %v2858_v60 = vadd.f32 %v2857_v48, %v4863_v55  ;;  %v2927_v61 = vadd.f32 %v2926_v2, %v2896_v52  ;;  %v2901_v55 = vmul.f32 %v4891_v32, %v4891_v32 }
 0x2ef   : > { %v2859_v38 = vadd.f32 %v2858_v60, %v4850_v0  ;;  %v2928_v44 = vadd.f32 %v2927_v61, %v2897_v10  ;;  %v2902_v0 = vmul.f32 %v4874_v58, %v4874_v58 }
 0x2f1   : > { %v2860_v19 = vadd.f32 %v2859_v38, %v4858_v15  ;;  %v2929_v50 = vadd.f32 %v2928_v44, %v2898_v28  ;;  %v2903_v15 = vmul.f32 %v4884_v33, %v4884_v33 }
 0x2f3   : > { %v2861_v41 = vadd.f32 %v2860_v19, %v4878_v53  ;;  %v2930_v36 = vadd.f32 %v2929_v50, %v2899_v63  ;;  %v2904_v53 = vmul.f32 %v4906_v23, %v4906_v23 }
 0x2f5   : > { %v2931_v1 = vadd.f32 %v2930_v36, %v2900_v13  ;;  %v2862_v30 = vadd.f32 %v2861_v41, %v4891_v32  ;;  %v2905_v32 = vmul.f32 %v4924_v20, %v4924_v20 }
 0x2f7   : > { %v2863_v54 = vadd.f32 %v2862_v30, %v4874_v58  ;;  %v2932_v59 = vadd.f32 %v2931_v1, %v2901_v55  ;;  %v2906_v58 = vmul.f32 %v4902_v47, %v4902_v47 }
 0x2f9   : > { %v2864_v3 = vadd.f32 %v2863_v54, %v4884_v33  ;;  %v2933_v57 = vadd.f32 %v2932_v59, %v2902_v0  ;;  %v2907_v33 = vmul.f32 %v4916_v12, %v4916_v12 }
 0x2fb   : > { %v2865_v17 = vadd.f32 %v2864_v3, %v4906_v23  ;;  %v2934_v35 = vadd.f32 %v2933_v57, %v2903_v15  ;;  %v2908_v23 = vmul.f32 %v4934_v6, %v4934_v6 }
 0x2fd   : > { %v2866_v34 = vadd.f32 %v2865_v17, %v4924_v20  ;;  %v2935_v18 = vadd.f32 %v2934_v35, %v2904_v53 }
 0x2ff   : > { %v2867_v31 = vadd.f32 %v2866_v34, %v4902_v47  ;;  %v2936_v24 = vadd.f32 %v2935_v18, %v2905_v32  ;;  %v2910_v47 = vmul.f32 %v4930_v40, %v4930_v40 }
 0x301   : > { %v2868_v8 = vadd.f32 %v2867_v31, %v4916_v12  ;;  %v2937_v7 = vadd.f32 %v2936_v24, %v2906_v58  ;;  %v2911_v12 = vmul.f32 %v4944_v26, %v4944_v26 }
 0x303   : > { %v2869_v21 = vadd.f32 %v2868_v8, %v4934_v6  ;;  %v2938_v43 = vadd.f32 %v2937_v7, %v2907_v33 }
 0x305   : > { %v2870_v20 = vadd.f32 %v2869_v21, %v4952_v16  ;;  %v2939_v27 = vadd.f32 %v2938_v43, %v2908_v23  ;;  %v2913_v16 = vmul.f32 %v2803_v39, %v2803_v39 }
 0x307   : > { %v2871_v25 = vadd.f32 %v2870_v20, %v4930_v40  ;;  %v2940_v5 = vadd.f32 %v2939_v27, %v2909_v14 }
 0x309   : > { %v2941_v22 = vadd.f32 %v2940_v5, %v2910_v47  ;;  %v2872_v4 = vadd.f32 %v2871_v25, %v4944_v26 }
 0x30b   : > { %v2873_v6 = vadd.f32 %v2872_v4, %v2800_v29  ;;  %v2942_v46 = vadd.f32 %v2941_v22, %v2911_v12 }
 0x30d   : > { %v2943_v37 = vadd.f32 %v2942_v46, %v2912_v11  ;;  %v2874_v49 = vadd.f32 %v2873_v6, %v2803_v39 }
 0x30f   : > { %v2875_v56 = vadd.f32 %v2874_v49, %v4958_v62  ;;  %v2944_v40 = vadd.f32 %v2943_v37, %v2913_v16 }
 0x311   : > { %v2876_v9 = vadd.f32 %v2875_v56, %v4964_v42  ;;  %v2945_v52 = vadd.f32 %v2944_v40, %v2914_v51 }
 0x313   : > { %v2877_v26 = vrot.slane %v2876_v9, 4  ;;  %v2946_v48 = vadd.f32 %v2945_v52, %v2915_v45 }
 0x315   : > { %v2878_v29 = vadd.f32 %v2877_v26, %v2876_v9  ;;  %v2947_v2 = vrot.slane %v2946_v48, 4 }
 0x317   : > { %v2879_v10 = vrot.slane %v2878_v29, 2  ;;  %v2948_v60 = vadd.f32 %v2947_v2, %v2946_v48 }
 0x319   : > { %v2880_v39 = vadd.f32 %v2879_v10, %v2878_v29  ;;  %v2949_v61 = vrot.slane %v2948_v60, 2 }
 0x31b   : > { %v2881_v28 = vrot.slane %v2880_v39, 1  ;;  %v2950_v38 = vadd.f32 %v2949_v61, %v2948_v60 }
 0x31d   : > { %v2882_v62 = vadd.f32 %v2881_v28, %v2880_v39  ;;  %v2951_v44 = vrot.slane %v2950_v38, 1 }
 0x31f   : > { %2883 = vst [vmem:[%s357_s16] sm:$0x1] %v2882_v62  ;;  %v2952_v42 = vadd.f32 %v2951_v44, %v2950_v38 }
 0x321   : > { %2953 = vst [vmem:[%s357_s16 + $0x1] sm:$0x1] %v2952_v42 }
 0x322 PF: > { %s20_s30 = sadd.s32 1, %s3787_s30  }
 0x323   : > { %p17_p4 = scmp.ge.s32.totalorder %s20_s30, 4  }
 0x325   :  { %19 = sbr.rel (!%p17_p4) target bundleno = 1 (0x1), region = 99 }

</bundles_post_ra>
